<compile_context>
chip_gen: v5e
topology: v5e:2x2
jax: 0.10.0
libtpu: 0.0.40
codegen_flags: <defaults>
</compile_context>

<pallas_src>
import functools

import jax
import jax.numpy as jnp
from jax.experimental import pallas as pl
from jax.experimental.pallas import tpu as pltpu

_BN_EPS = 1e-5
_LANE = 128


def _round_up(x, m=_LANE):
    return ((x + m - 1) // m) * m


# ----------------------------------------------------------------------------
# Fused CGC kernel
# ----------------------------------------------------------------------------
def _cgc_kernel(*refs, T, P, S, n_exp_rest, n_gate_rest, he1, hg1, dout):
    it = iter(refs)
    xs_ref = next(it)                        # [T+1, tb, Din_pad]        f32
    w1_ref, s1_ref = next(it), next(it)      # [T+1, Din_pad, Ncat] bf16 / [T+1,1,Ncat] f32
    exp_rest = [(next(it), next(it)) for _ in range(n_exp_rest)]    # [E,K,N] bf16 / [E,1,N] f32
    gate_rest = [(next(it), next(it)) for _ in range(n_gate_rest)]  # [T+1,K,N] bf16 / [T+1,1,N] f32
    wgo_ref, sgo_ref = next(it), next(it)    # [T+1, Glast, Emax_pad] bf16 / [T+1,1,Emax_pad] f32
    o_ref = next(it)                         # [tb, (T+1)*dout]          f32

    def dense(h, w, s):
        # bf16 MXU operands, f32 accumulation; bias/BN-shift + ReLU in f32 (VPU).
        z = jnp.dot(h.astype(jnp.bfloat16), w, preferred_element_type=jnp.float32)
        return jnp.maximum(z + s, 0.0)

    def gate_scores(gh, g):
        for w_ref, s_ref in gate_rest:
            gh = dense(gh, w_ref[g], s_ref[g])
        logits = jnp.dot(gh.astype(jnp.bfloat16), wgo_ref[g],
                         preferred_element_type=jnp.float32) + sgo_ref[g]
        logits = logits - jnp.max(logits, axis=-1, keepdims=True)
        p = jnp.exp(logits)                  # padded columns (-1e30) underflow to exactly 0
        return p * pl.reciprocal(jnp.sum(p, axis=-1, keepdims=True), approx=True)

    def expert_tail(h, e):                   # layers >= 2 of one expert
        for w_ref, s_ref in exp_rest:
            h = dense(h, w_ref[e], s_ref[e])
        return h

    # --- shared source first: its experts feed every gate --------------------
    # Merged layer 1 = [S shared experts | shared gate] in one lane-dense matmul.
    z = dense(xs_ref[T], w1_ref[T], s1_ref[T])
    sc_shared = gate_scores(z[:, S * he1: S * he1 + hg1], T)
    shared_out = [expert_tail(z[:, k * he1:(k + 1) * he1], T * P + k)
                  for k in range(S)]         # only cross-gate live values: S tiles

    acc = sc_shared[:, 0:1] * shared_out[0]
    for k in range(1, S):
        acc = acc + sc_shared[:, k:k + 1] * shared_out[k]
    o_ref[:, T * dout:(T + 1) * dout] = acc.astype(o_ref.dtype)   # 128-aligned unmasked store

    # --- task sources: stream specific experts straight into the accumulator --
    for t in range(T):
        z = dense(xs_ref[t], w1_ref[t], s1_ref[t])   # merged [P specific experts | gate t]
        sc = gate_scores(z[:, P * he1: P * he1 + hg1], t)
        acc = sc[:, P:P + 1] * shared_out[0]
        for k in range(1, S):
            acc = acc + sc[:, P + k:P + k + 1] * shared_out[k]
        for k in range(P):
            h = expert_tail(z[:, k * he1:(k + 1) * he1], t * P + k)
            acc = acc + sc[:, k:k + 1] * h
        o_ref[:, t * dout:(t + 1) * dout] = acc.astype(o_ref.dtype)


# ----------------------------------------------------------------------------
# Parameter construction (deterministic, synthetic; bias + eval-BN pre-folded,
# dims zero-padded to multiples of 128, weights pre-cast to bf16)
# ----------------------------------------------------------------------------
def _fold_dense_bn(key, din, dout, use_bn, gamma=None, beta=None, mean=None,
                   var=None, eps=_BN_EPS):
    kw, kb = jax.random.split(key)
    w = jax.random.normal(kw, (din, dout), jnp.float32) * (1.0 / jnp.sqrt(din))
    b = jax.random.normal(kb, (dout,), jnp.float32) * 0.01
    if use_bn:
        # Full eval-mode BatchNorm fold (defaults match a freshly-initialized BN).
        gamma = jnp.ones((dout,), jnp.float32) if gamma is None else gamma
        beta = jnp.zeros((dout,), jnp.float32) if beta is None else beta
        mean = jnp.zeros((dout,), jnp.float32) if mean is None else mean
        var = jnp.ones((dout,), jnp.float32) if var is None else var
        scale = gamma / jnp.sqrt(var + eps)
        w = w * scale[None, :]
        b = (b - mean) * scale + beta
    return w, b


def _pad_wb(w, b, kpad, npad, pad_bias_value=0.0):
    k, n = w.shape
    wp = jnp.zeros((kpad, npad), jnp.float32).at[:k, :n].set(w)
    bp = jnp.full((npad,), pad_bias_value, jnp.float32).at[:n].set(b)
    return wp, bp


def init_cgc_params(key, input_dim, num_shared_experts, num_specific_experts,
                    num_tasks, expert_hidden_units, gate_hidden_units,
                    use_batchnorm=True):
    T, P, S = num_tasks, num_specific_experts, num_shared_experts
    E = T * P + S
    din_pad = _round_up(input_dim)
    exp_dims = [input_dim] + list(expert_hidden_units)
    exp_pad = [din_pad] + [_round_up(h) for h in expert_hidden_units]
    gate_dims = [input_dim] + list(gate_hidden_units)
    gate_pad = [din_pad] + [_round_up(h) for h in gate_hidden_units]
    emax = P + S
    emax_pad = _round_up(emax)

    k_exp, k_gate = jax.random.split(key)
    exp_keys = jax.random.split(k_exp, E)
    gate_keys = jax.random.split(k_gate, T + 1)
    bf16 = lambda a: a.astype(jnp.bfloat16)

    # Experts: order = [task0 specific..., task1 specific..., ..., shared...]
    expert_layers = []
    for li in range(len(expert_hidden_units)):
        ws, ss = [], []
        for e in range(E):
            kk = jax.random.fold_in(exp_keys[e], li)
            w, b = _fold_dense_bn(kk, exp_dims[li], exp_dims[li + 1], use_batchnorm)
            wp, bp = _pad_wb(w, b, exp_pad[li], exp_pad[li + 1])
            ws.append(wp)
            ss.append(bp)
        expert_layers.append((bf16(jnp.stack(ws)), jnp.stack(ss)[:, None, :]))

    # Gate hidden layers (all T+1 gates stacked).
    gate_hidden_layers = []
    for li in range(len(gate_hidden_units)):
        ws, ss = [], []
        for g in range(T + 1):
            kk = jax.random.fold_in(gate_keys[g], li)
            w, b = _fold_dense_bn(kk, gate_dims[li], gate_dims[li + 1], use_batchnorm)
            wp, bp = _pad_wb(w, b, gate_pad[li], gate_pad[li + 1])
            ws.append(wp)
            ss.append(bp)
        gate_hidden_layers.append((bf16(jnp.stack(ws)), jnp.stack(ss)[:, None, :]))

    # Gate output layers, padded to emax_pad; padded logits get bias -1e30
    # (kept in the f32 shift so they underflow to exactly 0 after exp).
    wos, sos = [], []
    for g in range(T + 1):
        out_sz = emax if g < T else S
        kk = jax.random.fold_in(gate_keys[g], 1000)
        w, b = _fold_dense_bn(kk, gate_dims[-1], out_sz, use_bn=False)
        wp, bp = _pad_wb(w, b, gate_pad[-1], emax_pad, pad_bias_value=-1e30)
        wos.append(wp)
        sos.append(bp)
    gate_out = (bf16(jnp.stack(wos)), jnp.stack(sos)[:, None, :])

    # Merged per-source first-layer slabs: [experts of source | source's gate].
    he1, hg1 = exp_pad[1], gate_pad[1]
    we1, se1 = expert_layers[0]
    wg1, sg1 = gate_hidden_layers[0]
    ncat_max = max(P, S) * he1 + hg1
    w1cat, s1cat = [], []
    for src in range(T + 1):
        exps = ([src * P + k for k in range(P)] if src < T
                else [T * P + k for k in range(S)])
        wcat = jnp.concatenate([we1[e] for e in exps] + [wg1[src]], axis=-1)
        scat = jnp.concatenate([se1[e] for e in exps] + [sg1[src]], axis=-1)
        pad = ncat_max - wcat.shape[-1]
        if pad:
            wcat = jnp.pad(wcat, ((0, 0), (0, pad)))
            scat = jnp.pad(scat, ((0, 0), (0, pad)))
        w1cat.append(wcat)
        s1cat.append(scat)
    w1cat = jnp.stack(w1cat)         # bf16 [T+1, Din_pad, Ncat_max]
    s1cat = jnp.stack(s1cat)         # f32  [T+1, 1, Ncat_max]

    return dict(
        w1cat=w1cat, s1cat=s1cat,
        expert_rest=expert_layers[1:], gate_rest=gate_hidden_layers[1:],
        expert_l1=expert_layers[0], gate_l1=gate_hidden_layers[0],   # reference only
        gate_out=gate_out,
        num_tasks=T, num_specific=P, num_shared=S,
        din=input_dim, din_pad=din_pad,
        he1=he1, hg1=hg1,
        dout=expert_hidden_units[-1], dout_pad=exp_pad[-1],
        emax_pad=emax_pad)


# ----------------------------------------------------------------------------
# Forward wrapper (single fused pallas_call)
# ----------------------------------------------------------------------------
def _default_batch_tile(B):
    # >=2 grid steps when possible so the "parallel" batch axis can shard
    # across v7x's two TensorCores; tile is a multiple of 8, capped at 512 rows
    # (fits the ~48 MiB v7x VMEM budget; v5e/v6e can pass 1024-2048 explicitly).
    if B % 16 == 0:
        tb = min(512, B // 2)
        while tb >= 8 and (B % tb != 0 or tb % 8 != 0):
            tb -= 8
        if tb >= 8:
            return tb
    return B


def cgc_forward(xs, params, *, batch_tile=None):
    """xs: [num_tasks+1, B, Din]; xs[i] is task i's input, xs[-1] the shared one.

    Returns a list of (num_tasks+1) arrays of shape [B, expert_out_dim].
    """
    T, P, S = params["num_tasks"], params["num_specific"], params["num_shared"]
    n_in, B, din = xs.shape
    assert n_in == T + 1 and din == params["din"]
    din_pad = params["din_pad"]
    dout, dout_pad = params["dout"], params["dout_pad"]

    # Zero-pad the lane (feature) dim to 128 so layer-1 loads are unmasked;
    # layer-1 weight rows for the padded columns are zero, so this is exact.
    if din_pad > din:
        xs = jnp.pad(xs, ((0, 0), (0, 0), (0, din_pad - din)))

    tb = _default_batch_tile(B) if batch_tile is None else batch_tile
    assert B % tb == 0 and (tb == B or tb % 8 == 0)

    flat_weights = [params["w1cat"], params["s1cat"]]
    for w, s in params["expert_rest"] + params["gate_rest"] + [params["gate_out"]]:
        flat_weights += [w, s]

    kernel = functools.partial(
        _cgc_kernel,
        T=T, P=P, S=S,
        n_exp_rest=len(params["expert_rest"]),
        n_gate_rest=len(params["gate_rest"]),
        he1=params["he1"], hg1=params["hg1"], dout=dout_pad)

    out_shape = jax.ShapeDtypeStruct((B, (T + 1) * dout_pad), jnp.float32)

    def build(single_buffer_weights):
        in_specs = [pl.BlockSpec((T + 1, tb, din_pad), lambda b: (0, b, 0))]
        for arr in flat_weights:
            # Weights are tiny and batch-invariant: constant index maps keep
            # them VMEM-resident across batch tiles; single-buffering halves
            # their VMEM residency (matters on v7x's 64 MiB at production dims).
            idx = lambda b, _nd=arr.ndim: (0,) * _nd
            if single_buffer_weights:
                in_specs.append(pl.BlockSpec(arr.shape, idx,
                                             pipeline_mode=pl.Buffered(1)))
            else:
                in_specs.append(pl.BlockSpec(arr.shape, idx))
        out_specs = pl.BlockSpec((tb, (T + 1) * dout_pad), lambda b: (b, 0))
        return pl.pallas_call(
            kernel,
            out_shape=out_shape,
            grid_spec=pltpu.PrefetchScalarGridSpec(
                num_scalar_prefetch=0,
                grid=(pl.cdiv(B, tb),),
                in_specs=in_specs,
                out_specs=out_specs),
            compiler_params=pltpu.CompilerParams(
                dimension_semantics=("parallel",),          # shards batch over v7x's 2 TCs
                vmem_limit_bytes=48 * 1024 * 1024))          # > v5e/v6e scoped defaults, < v7x 64 MiB

    try:
        slab = jax.block_until_ready(build(True)(xs, *flat_weights))
    except Exception:
        # Fallback if this JAX build rejects single-buffered (Buffered(1)) inputs.
        slab = build(False)(xs, *flat_weights)

    return [slab[:, g * dout_pad: g * dout_pad + dout] for g in range(T + 1)]


# ----------------------------------------------------------------------------
# Pure-JAX f32 reference (un-merged layer 1, exact softmax) for a sanity check
# ----------------------------------------------------------------------------
def cgc_reference(xs, params):
    T, P, S = params["num_tasks"], params["num_specific"], params["num_shared"]
    E = T * P + S
    din, din_pad, dout = params["din"], params["din_pad"], params["dout"]
    f32 = lambda a: a.astype(jnp.float32)
    x = jnp.pad(xs, ((0, 0), (0, 0), (0, din_pad - din))) if din_pad > din else xs

    we1, se1 = params["expert_l1"]
    wg1, sg1 = params["gate_l1"]
    wgo, sgo = params["gate_out"]

    expert_out = []
    for e in range(E):
        src = (e // P) if e < T * P else T
        h = jnp.maximum(x[src] @ f32(we1[e]) + se1[e], 0.0)
        for w, s in params["expert_rest"]:
            h = jnp.maximum(h @ f32(w[e]) + s[e], 0.0)
        expert_out.append(h)

    outs = []
    for g in range(T + 1):
        src = g if g < T else T
        h = jnp.maximum(x[src] @ f32(wg1[g]) + sg1[g], 0.0)
        for w, s in params["gate_rest"]:
            h = jnp.maximum(h @ f32(w[g]) + s[g], 0.0)
        scores = jax.nn.softmax(h @ f32(wgo[g]) + sgo[g], axis=-1)
        if g < T:
            cols = [(k, g * P + k) for k in range(P)] + \
                   [(P + k, T * P + k) for k in range(S)]
        else:
            cols = [(k, T * P + k) for k in range(S)]
        acc = sum(scores[:, c:c + 1] * expert_out[e_idx] for c, e_idx in cols)
        outs.append(acc[:, :dout])
    return outs


# ----------------------------------------------------------------------------
if __name__ == "__main__":
    # Small configuration consistent with the module's constructor.
    B = 16                       # 2 batch tiles of 8 -> 2-step parallel grid
    input_dim = 32
    num_shared_experts = 1
    num_specific_experts = 1
    num_tasks = 2
    expert_hidden_units = [64, 32]
    gate_hidden_units = [32, 16]

    key = jax.random.PRNGKey(0)
    k_x, k_p = jax.random.split(key)

    # xs[i] is task i's input, xs[-1] is the shared input (num_tasks+1 slices).
    xs = jax.random.normal(k_x, (num_tasks + 1, B, input_dim), jnp.float32)

    params = init_cgc_params(k_p, input_dim, num_shared_experts,
                             num_specific_experts, num_tasks,
                             expert_hidden_units, gate_hidden_units)

    outputs = cgc_forward(xs, params)
    outputs = [jax.block_until_ready(o) for o in outputs]
    refs = cgc_reference(xs, params)

    expected_out_dim = expert_hidden_units[-1]
    assert len(outputs) == num_tasks + 1
    for o, r in zip(outputs, refs):
        assert o.shape == (B, expected_out_dim)
        assert bool(jnp.all(jnp.isfinite(o)))
        assert bool(jnp.allclose(o, r, rtol=5e-2, atol=5e-2))

    print("KERNEL_OK")
</pallas_src>

<mosaic_0001>
module attributes {stable_mosaic.version = 11 : i64} {
  func.func @_cgc_kernel(%arg0: i32, %arg1: memref<3x8x128xf32, #tpu.memory_space<vmem>>, %arg2: memref<3x128x256xbf16, #tpu.memory_space<vmem>>, %arg3: memref<3x1x256xf32, #tpu.memory_space<vmem>>, %arg4: memref<3x128x128xbf16, #tpu.memory_space<vmem>>, %arg5: memref<3x1x128xf32, #tpu.memory_space<vmem>>, %arg6: memref<3x128x128xbf16, #tpu.memory_space<vmem>>, %arg7: memref<3x1x128xf32, #tpu.memory_space<vmem>>, %arg8: memref<3x128x128xbf16, #tpu.memory_space<vmem>>, %arg9: memref<3x1x128xf32, #tpu.memory_space<vmem>>, %arg10: memref<8x384xf32, #tpu.memory_space<vmem>>) attributes {dimension_semantics = [#tpu.dimension_semantics<parallel>], iteration_bounds = array<i64: 2>, scalar_prefetch = 0 : i64, scratch_operands = 0 : i64, tpu.core_type = #tpu.core_type<tc>, window_params = [{transform_indices = @transform_0, window_bounds = array<i64: 3, 8, 128>}, {pipeline_mode = #tpu.pipeline_mode<synchronous>, transform_indices = @transform_1, window_bounds = array<i64: 3, 128, 256>}, {pipeline_mode = #tpu.pipeline_mode<synchronous>, transform_indices = @transform_2, window_bounds = array<i64: 3, 1, 256>}, {pipeline_mode = #tpu.pipeline_mode<synchronous>, transform_indices = @transform_3, window_bounds = array<i64: 3, 128, 128>}, {pipeline_mode = #tpu.pipeline_mode<synchronous>, transform_indices = @transform_4, window_bounds = array<i64: 3, 1, 128>}, {pipeline_mode = #tpu.pipeline_mode<synchronous>, transform_indices = @transform_5, window_bounds = array<i64: 3, 128, 128>}, {pipeline_mode = #tpu.pipeline_mode<synchronous>, transform_indices = @transform_6, window_bounds = array<i64: 3, 1, 128>}, {pipeline_mode = #tpu.pipeline_mode<synchronous>, transform_indices = @transform_7, window_bounds = array<i64: 3, 128, 128>}, {pipeline_mode = #tpu.pipeline_mode<synchronous>, transform_indices = @transform_8, window_bounds = array<i64: 3, 1, 128>}, {transform_indices = @transform_9, window_bounds = array<i64: 8, 384>}]} {
    %c2 = arith.constant 2 : index
    %c0 = arith.constant 0 : index
    %c0_0 = arith.constant 0 : index
    %0 = vector.load %arg1[%c2, %c0, %c0_0] : memref<3x8x128xf32, #tpu.memory_space<vmem>>, vector<1x8x128xf32>
    %1 = vector.shape_cast %0 : vector<1x8x128xf32> to vector<8x128xf32>
    %c2_1 = arith.constant 2 : index
    %c0_2 = arith.constant 0 : index
    %c0_3 = arith.constant 0 : index
    %2 = vector.load %arg2[%c2_1, %c0_2, %c0_3] : memref<3x128x256xbf16, #tpu.memory_space<vmem>>, vector<1x128x256xbf16>
    %3 = vector.shape_cast %2 : vector<1x128x256xbf16> to vector<128x256xbf16>
    %c2_4 = arith.constant 2 : index
    %c0_5 = arith.constant 0 : index
    %c0_6 = arith.constant 0 : index
    %4 = vector.load %arg3[%c2_4, %c0_5, %c0_6] : memref<3x1x256xf32, #tpu.memory_space<vmem>>, vector<1x1x256xf32>
    %5 = vector.shape_cast %4 : vector<1x1x256xf32> to vector<1x256xf32>
    %6 = arith.truncf %1 : vector<8x128xf32> to vector<8x128xbf16>
    %cst = arith.constant dense<0.000000e+00> : vector<8x256xf32>
    %7 = tpu.matmul %6, %3, %cst {dimension_numbers = #tpu.dot_dimension_numbers<[1], [0], [0], [1], [0, 0, 1, 1], [], []>} : vector<8x128xbf16>, vector<128x256xbf16>, vector<8x256xf32> -> vector<8x256xf32>
    %8 = vector.broadcast %5 : vector<1x256xf32> to vector<8x256xf32>
    %9 = arith.addf %7, %8 : vector<8x256xf32>
    %cst_7 = arith.constant 0.000000e+00 : f32
    %10 = vector.broadcast %cst_7 : f32 to vector<8x256xf32>
    %11 = arith.maximumf %9, %10 : vector<8x256xf32>
    %12 = vector.extract_strided_slice %11 {offsets = [0, 128], sizes = [8, 128], strides = [1, 1]} : vector<8x256xf32> to vector<8x128xf32>
    %c2_8 = arith.constant 2 : index
    %c0_9 = arith.constant 0 : index
    %c0_10 = arith.constant 0 : index
    %13 = vector.load %arg6[%c2_8, %c0_9, %c0_10] : memref<3x128x128xbf16, #tpu.memory_space<vmem>>, vector<1x128x128xbf16>
    %14 = vector.shape_cast %13 : vector<1x128x128xbf16> to vector<128x128xbf16>
    %c2_11 = arith.constant 2 : index
    %c0_12 = arith.constant 0 : index
    %c0_13 = arith.constant 0 : index
    %15 = vector.load %arg7[%c2_11, %c0_12, %c0_13] : memref<3x1x128xf32, #tpu.memory_space<vmem>>, vector<1x1x128xf32>
    %16 = vector.shape_cast %15 : vector<1x1x128xf32> to vector<1x128xf32>
    %17 = arith.truncf %12 : vector<8x128xf32> to vector<8x128xbf16>
    %cst_14 = arith.constant dense<0.000000e+00> : vector<8x128xf32>
    %18 = tpu.matmul %17, %14, %cst_14 {dimension_numbers = #tpu.dot_dimension_numbers<[1], [0], [0], [1], [0, 0, 1, 1], [], []>} : vector<8x128xbf16>, vector<128x128xbf16>, vector<8x128xf32> -> vector<8x128xf32>
    %19 = vector.broadcast %16 : vector<1x128xf32> to vector<8x128xf32>
    %20 = arith.addf %18, %19 : vector<8x128xf32>
    %cst_15 = arith.constant 0.000000e+00 : f32
    %21 = vector.broadcast %cst_15 : f32 to vector<8x128xf32>
    %22 = arith.maximumf %20, %21 : vector<8x128xf32>
    %23 = arith.truncf %22 : vector<8x128xf32> to vector<8x128xbf16>
    %c2_16 = arith.constant 2 : index
    %c0_17 = arith.constant 0 : index
    %c0_18 = arith.constant 0 : index
    %24 = vector.load %arg8[%c2_16, %c0_17, %c0_18] : memref<3x128x128xbf16, #tpu.memory_space<vmem>>, vector<1x128x128xbf16>
    %25 = vector.shape_cast %24 : vector<1x128x128xbf16> to vector<128x128xbf16>
    %cst_19 = arith.constant dense<0.000000e+00> : vector<8x128xf32>
    %26 = tpu.matmul %23, %25, %cst_19 {dimension_numbers = #tpu.dot_dimension_numbers<[1], [0], [0], [1], [0, 0, 1, 1], [], []>} : vector<8x128xbf16>, vector<128x128xbf16>, vector<8x128xf32> -> vector<8x128xf32>
    %c2_20 = arith.constant 2 : index
    %c0_21 = arith.constant 0 : index
    %c0_22 = arith.constant 0 : index
    %27 = vector.load %arg9[%c2_20, %c0_21, %c0_22] : memref<3x1x128xf32, #tpu.memory_space<vmem>>, vector<1x1x128xf32>
    %28 = vector.shape_cast %27 : vector<1x1x128xf32> to vector<1x128xf32>
    %29 = vector.broadcast %28 : vector<1x128xf32> to vector<8x128xf32>
    %30 = arith.addf %26, %29 : vector<8x128xf32>
    %cst_23 = arith.constant dense<0xFF800000> : vector<8xf32>
    %31 = vector.multi_reduction <maximumf>, %30, %cst_23 [1] : vector<8x128xf32> to vector<8xf32>
    %32 = vector.shape_cast %31 : vector<8xf32> to vector<8x1xf32>
    %33 = vector.broadcast %32 : vector<8x1xf32> to vector<8x128xf32>
    %34 = arith.subf %30, %33 : vector<8x128xf32>
    %35 = math.exp %34 : vector<8x128xf32>
    %cst_24 = arith.constant dense<0.000000e+00> : vector<8xf32>
    %36 = vector.multi_reduction <add>, %35, %cst_24 [1] : vector<8x128xf32> to vector<8xf32>
    %37 = vector.shape_cast %36 : vector<8xf32> to vector<8x1xf32>
    %38 = tpu.reciprocal %37 {approx = true} : vector<8x1xf32> -> vector<8x1xf32>
    %39 = vector.broadcast %38 : vector<8x1xf32> to vector<8x128xf32>
    %40 = arith.mulf %35, %39 : vector<8x128xf32>
    %41 = vector.extract_strided_slice %11 {offsets = [0, 0], sizes = [8, 128], strides = [1, 1]} : vector<8x256xf32> to vector<8x128xf32>
    %c2_25 = arith.constant 2 : index
    %c0_26 = arith.constant 0 : index
    %c0_27 = arith.constant 0 : index
    %42 = vector.load %arg4[%c2_25, %c0_26, %c0_27] : memref<3x128x128xbf16, #tpu.memory_space<vmem>>, vector<1x128x128xbf16>
    %43 = vector.shape_cast %42 : vector<1x128x128xbf16> to vector<128x128xbf16>
    %c2_28 = arith.constant 2 : index
    %c0_29 = arith.constant 0 : index
    %c0_30 = arith.constant 0 : index
    %44 = vector.load %arg5[%c2_28, %c0_29, %c0_30] : memref<3x1x128xf32, #tpu.memory_space<vmem>>, vector<1x1x128xf32>
    %45 = vector.shape_cast %44 : vector<1x1x128xf32> to vector<1x128xf32>
    %46 = arith.truncf %41 : vector<8x128xf32> to vector<8x128xbf16>
    %cst_31 = arith.constant dense<0.000000e+00> : vector<8x128xf32>
    %47 = tpu.matmul %46, %43, %cst_31 {dimension_numbers = #tpu.dot_dimension_numbers<[1], [0], [0], [1], [0, 0, 1, 1], [], []>} : vector<8x128xbf16>, vector<128x128xbf16>, vector<8x128xf32> -> vector<8x128xf32>
    %48 = vector.broadcast %45 : vector<1x128xf32> to vector<8x128xf32>
    %49 = arith.addf %47, %48 : vector<8x128xf32>
    %cst_32 = arith.constant 0.000000e+00 : f32
    %50 = vector.broadcast %cst_32 : f32 to vector<8x128xf32>
    %51 = arith.maximumf %49, %50 : vector<8x128xf32>
    %52 = vector.extract_strided_slice %40 {offsets = [0, 0], sizes = [8, 1], strides = [1, 1]} : vector<8x128xf32> to vector<8x1xf32>
    %53 = vector.broadcast %52 : vector<8x1xf32> to vector<8x128xf32>
    %54 = arith.mulf %53, %51 : vector<8x128xf32>
    %c0_33 = arith.constant 0 : index
    %c256 = arith.constant 256 : index
    %55 = vector.load %arg10[%c0_33, %c256] : memref<8x384xf32, #tpu.memory_space<vmem>>, vector<8x128xf32>
    tpu.vector_store %arg10[%c0_33, %c256], %54 {strides = array<i32>} : memref<8x384xf32, #tpu.memory_space<vmem>>, vector<8x128xf32>,
    %c0_34 = arith.constant 0 : index
    %c0_35 = arith.constant 0 : index
    %c0_36 = arith.constant 0 : index
    %56 = vector.load %arg1[%c0_34, %c0_35, %c0_36] : memref<3x8x128xf32, #tpu.memory_space<vmem>>, vector<1x8x128xf32>
    %57 = vector.shape_cast %56 : vector<1x8x128xf32> to vector<8x128xf32>
    %c0_37 = arith.constant 0 : index
    %c0_38 = arith.constant 0 : index
    %c0_39 = arith.constant 0 : index
    %58 = vector.load %arg2[%c0_37, %c0_38, %c0_39] : memref<3x128x256xbf16, #tpu.memory_space<vmem>>, vector<1x128x256xbf16>
    %59 = vector.shape_cast %58 : vector<1x128x256xbf16> to vector<128x256xbf16>
    %c0_40 = arith.constant 0 : index
    %c0_41 = arith.constant 0 : index
    %c0_42 = arith.constant 0 : index
    %60 = vector.load %arg3[%c0_40, %c0_41, %c0_42] : memref<3x1x256xf32, #tpu.memory_space<vmem>>, vector<1x1x256xf32>
    %61 = vector.shape_cast %60 : vector<1x1x256xf32> to vector<1x256xf32>
    %62 = arith.truncf %57 : vector<8x128xf32> to vector<8x128xbf16>
    %cst_43 = arith.constant dense<0.000000e+00> : vector<8x256xf32>
    %63 = tpu.matmul %62, %59, %cst_43 {dimension_numbers = #tpu.dot_dimension_numbers<[1], [0], [0], [1], [0, 0, 1, 1], [], []>} : vector<8x128xbf16>, vector<128x256xbf16>, vector<8x256xf32> -> vector<8x256xf32>
    %64 = vector.broadcast %61 : vector<1x256xf32> to vector<8x256xf32>
    %65 = arith.addf %63, %64 : vector<8x256xf32>
    %cst_44 = arith.constant 0.000000e+00 : f32
    %66 = vector.broadcast %cst_44 : f32 to vector<8x256xf32>
    %67 = arith.maximumf %65, %66 : vector<8x256xf32>
    %68 = vector.extract_strided_slice %67 {offsets = [0, 128], sizes = [8, 128], strides = [1, 1]} : vector<8x256xf32> to vector<8x128xf32>
    %c0_45 = arith.constant 0 : index
    %c0_46 = arith.constant 0 : index
    %c0_47 = arith.constant 0 : index
    %69 = vector.load %arg6[%c0_45, %c0_46, %c0_47] : memref<3x128x128xbf16, #tpu.memory_space<vmem>>, vector<1x128x128xbf16>
    %70 = vector.shape_cast %69 : vector<1x128x128xbf16> to vector<128x128xbf16>
    %c0_48 = arith.constant 0 : index
    %c0_49 = arith.constant 0 : index
    %c0_50 = arith.constant 0 : index
    %71 = vector.load %arg7[%c0_48, %c0_49, %c0_50] : memref<3x1x128xf32, #tpu.memory_space<vmem>>, vector<1x1x128xf32>
    %72 = vector.shape_cast %71 : vector<1x1x128xf32> to vector<1x128xf32>
    %73 = arith.truncf %68 : vector<8x128xf32> to vector<8x128xbf16>
    %cst_51 = arith.constant dense<0.000000e+00> : vector<8x128xf32>
    %74 = tpu.matmul %73, %70, %cst_51 {dimension_numbers = #tpu.dot_dimension_numbers<[1], [0], [0], [1], [0, 0, 1, 1], [], []>} : vector<8x128xbf16>, vector<128x128xbf16>, vector<8x128xf32> -> vector<8x128xf32>
    %75 = vector.broadcast %72 : vector<1x128xf32> to vector<8x128xf32>
    %76 = arith.addf %74, %75 : vector<8x128xf32>
    %cst_52 = arith.constant 0.000000e+00 : f32
    %77 = vector.broadcast %cst_52 : f32 to vector<8x128xf32>
    %78 = arith.maximumf %76, %77 : vector<8x128xf32>
    %79 = arith.truncf %78 : vector<8x128xf32> to vector<8x128xbf16>
    %c0_53 = arith.constant 0 : index
    %c0_54 = arith.constant 0 : index
    %c0_55 = arith.constant 0 : index
    %80 = vector.load %arg8[%c0_53, %c0_54, %c0_55] : memref<3x128x128xbf16, #tpu.memory_space<vmem>>, vector<1x128x128xbf16>
    %81 = vector.shape_cast %80 : vector<1x128x128xbf16> to vector<128x128xbf16>
    %cst_56 = arith.constant dense<0.000000e+00> : vector<8x128xf32>
    %82 = tpu.matmul %79, %81, %cst_56 {dimension_numbers = #tpu.dot_dimension_numbers<[1], [0], [0], [1], [0, 0, 1, 1], [], []>} : vector<8x128xbf16>, vector<128x128xbf16>, vector<8x128xf32> -> vector<8x128xf32>
    %c0_57 = arith.constant 0 : index
    %c0_58 = arith.constant 0 : index
    %c0_59 = arith.constant 0 : index
    %83 = vector.load %arg9[%c0_57, %c0_58, %c0_59] : memref<3x1x128xf32, #tpu.memory_space<vmem>>, vector<1x1x128xf32>
    %84 = vector.shape_cast %83 : vector<1x1x128xf32> to vector<1x128xf32>
    %85 = vector.broadcast %84 : vector<1x128xf32> to vector<8x128xf32>
    %86 = arith.addf %82, %85 : vector<8x128xf32>
    %cst_60 = arith.constant dense<0xFF800000> : vector<8xf32>
    %87 = vector.multi_reduction <maximumf>, %86, %cst_60 [1] : vector<8x128xf32> to vector<8xf32>
    %88 = vector.shape_cast %87 : vector<8xf32> to vector<8x1xf32>
    %89 = vector.broadcast %88 : vector<8x1xf32> to vector<8x128xf32>
    %90 = arith.subf %86, %89 : vector<8x128xf32>
    %91 = math.exp %90 : vector<8x128xf32>
    %cst_61 = arith.constant dense<0.000000e+00> : vector<8xf32>
    %92 = vector.multi_reduction <add>, %91, %cst_61 [1] : vector<8x128xf32> to vector<8xf32>
    %93 = vector.shape_cast %92 : vector<8xf32> to vector<8x1xf32>
    %94 = tpu.reciprocal %93 {approx = true} : vector<8x1xf32> -> vector<8x1xf32>
    %95 = vector.broadcast %94 : vector<8x1xf32> to vector<8x128xf32>
    %96 = arith.mulf %91, %95 : vector<8x128xf32>
    %97 = vector.extract_strided_slice %96 {offsets = [0, 1], sizes = [8, 1], strides = [1, 1]} : vector<8x128xf32> to vector<8x1xf32>
    %98 = vector.broadcast %97 : vector<8x1xf32> to vector<8x128xf32>
    %99 = arith.mulf %98, %51 : vector<8x128xf32>
    %100 = vector.extract_strided_slice %67 {offsets = [0, 0], sizes = [8, 128], strides = [1, 1]} : vector<8x256xf32> to vector<8x128xf32>
    %c0_62 = arith.constant 0 : index
    %c0_63 = arith.constant 0 : index
    %c0_64 = arith.constant 0 : index
    %101 = vector.load %arg4[%c0_62, %c0_63, %c0_64] : memref<3x128x128xbf16, #tpu.memory_space<vmem>>, vector<1x128x128xbf16>
    %102 = vector.shape_cast %101 : vector<1x128x128xbf16> to vector<128x128xbf16>
    %c0_65 = arith.constant 0 : index
    %c0_66 = arith.constant 0 : index
    %c0_67 = arith.constant 0 : index
    %103 = vector.load %arg5[%c0_65, %c0_66, %c0_67] : memref<3x1x128xf32, #tpu.memory_space<vmem>>, vector<1x1x128xf32>
    %104 = vector.shape_cast %103 : vector<1x1x128xf32> to vector<1x128xf32>
    %105 = arith.truncf %100 : vector<8x128xf32> to vector<8x128xbf16>
    %cst_68 = arith.constant dense<0.000000e+00> : vector<8x128xf32>
    %106 = tpu.matmul %105, %102, %cst_68 {dimension_numbers = #tpu.dot_dimension_numbers<[1], [0], [0], [1], [0, 0, 1, 1], [], []>} : vector<8x128xbf16>, vector<128x128xbf16>, vector<8x128xf32> -> vector<8x128xf32>
    %107 = vector.broadcast %104 : vector<1x128xf32> to vector<8x128xf32>
    %108 = arith.addf %106, %107 : vector<8x128xf32>
    %cst_69 = arith.constant 0.000000e+00 : f32
    %109 = vector.broadcast %cst_69 : f32 to vector<8x128xf32>
    %110 = arith.maximumf %108, %109 : vector<8x128xf32>
    %111 = vector.extract_strided_slice %96 {offsets = [0, 0], sizes = [8, 1], strides = [1, 1]} : vector<8x128xf32> to vector<8x1xf32>
    %112 = vector.broadcast %111 : vector<8x1xf32> to vector<8x128xf32>
    %113 = arith.mulf %112, %110 : vector<8x128xf32>
    %114 = arith.addf %99, %113 : vector<8x128xf32>
    %c0_70 = arith.constant 0 : index
    %c0_71 = arith.constant 0 : index
    %115 = vector.load %arg10[%c0_70, %c0_71] : memref<8x384xf32, #tpu.memory_space<vmem>>, vector<8x128xf32>
    tpu.vector_store %arg10[%c0_70, %c0_71], %114 {strides = array<i32>} : memref<8x384xf32, #tpu.memory_space<vmem>>, vector<8x128xf32>,
    %c1 = arith.constant 1 : index
    %c0_72 = arith.constant 0 : index
    %c0_73 = arith.constant 0 : index
    %116 = vector.load %arg1[%c1, %c0_72, %c0_73] : memref<3x8x128xf32, #tpu.memory_space<vmem>>, vector<1x8x128xf32>
    %117 = vector.shape_cast %116 : vector<1x8x128xf32> to vector<8x128xf32>
    %c1_74 = arith.constant 1 : index
    %c0_75 = arith.constant 0 : index
    %c0_76 = arith.constant 0 : index
    %118 = vector.load %arg2[%c1_74, %c0_75, %c0_76] : memref<3x128x256xbf16, #tpu.memory_space<vmem>>, vector<1x128x256xbf16>
    %119 = vector.shape_cast %118 : vector<1x128x256xbf16> to vector<128x256xbf16>
    %c1_77 = arith.constant 1 : index
    %c0_78 = arith.constant 0 : index
    %c0_79 = arith.constant 0 : index
    %120 = vector.load %arg3[%c1_77, %c0_78, %c0_79] : memref<3x1x256xf32, #tpu.memory_space<vmem>>, vector<1x1x256xf32>
    %121 = vector.shape_cast %120 : vector<1x1x256xf32> to vector<1x256xf32>
    %122 = arith.truncf %117 : vector<8x128xf32> to vector<8x128xbf16>
    %cst_80 = arith.constant dense<0.000000e+00> : vector<8x256xf32>
    %123 = tpu.matmul %122, %119, %cst_80 {dimension_numbers = #tpu.dot_dimension_numbers<[1], [0], [0], [1], [0, 0, 1, 1], [], []>} : vector<8x128xbf16>, vector<128x256xbf16>, vector<8x256xf32> -> vector<8x256xf32>
    %124 = vector.broadcast %121 : vector<1x256xf32> to vector<8x256xf32>
    %125 = arith.addf %123, %124 : vector<8x256xf32>
    %cst_81 = arith.constant 0.000000e+00 : f32
    %126 = vector.broadcast %cst_81 : f32 to vector<8x256xf32>
    %127 = arith.maximumf %125, %126 : vector<8x256xf32>
    %128 = vector.extract_strided_slice %127 {offsets = [0, 128], sizes = [8, 128], strides = [1, 1]} : vector<8x256xf32> to vector<8x128xf32>
    %c1_82 = arith.constant 1 : index
    %c0_83 = arith.constant 0 : index
    %c0_84 = arith.constant 0 : index
    %129 = vector.load %arg6[%c1_82, %c0_83, %c0_84] : memref<3x128x128xbf16, #tpu.memory_space<vmem>>, vector<1x128x128xbf16>
    %130 = vector.shape_cast %129 : vector<1x128x128xbf16> to vector<128x128xbf16>
    %c1_85 = arith.constant 1 : index
    %c0_86 = arith.constant 0 : index
    %c0_87 = arith.constant 0 : index
    %131 = vector.load %arg7[%c1_85, %c0_86, %c0_87] : memref<3x1x128xf32, #tpu.memory_space<vmem>>, vector<1x1x128xf32>
    %132 = vector.shape_cast %131 : vector<1x1x128xf32> to vector<1x128xf32>
    %133 = arith.truncf %128 : vector<8x128xf32> to vector<8x128xbf16>
    %cst_88 = arith.constant dense<0.000000e+00> : vector<8x128xf32>
    %134 = tpu.matmul %133, %130, %cst_88 {dimension_numbers = #tpu.dot_dimension_numbers<[1], [0], [0], [1], [0, 0, 1, 1], [], []>} : vector<8x128xbf16>, vector<128x128xbf16>, vector<8x128xf32> -> vector<8x128xf32>
    %135 = vector.broadcast %132 : vector<1x128xf32> to vector<8x128xf32>
    %136 = arith.addf %134, %135 : vector<8x128xf32>
    %cst_89 = arith.constant 0.000000e+00 : f32
    %137 = vector.broadcast %cst_89 : f32 to vector<8x128xf32>
    %138 = arith.maximumf %136, %137 : vector<8x128xf32>
    %139 = arith.truncf %138 : vector<8x128xf32> to vector<8x128xbf16>
    %c1_90 = arith.constant 1 : index
    %c0_91 = arith.constant 0 : index
    %c0_92 = arith.constant 0 : index
    %140 = vector.load %arg8[%c1_90, %c0_91, %c0_92] : memref<3x128x128xbf16, #tpu.memory_space<vmem>>, vector<1x128x128xbf16>
    %141 = vector.shape_cast %140 : vector<1x128x128xbf16> to vector<128x128xbf16>
    %cst_93 = arith.constant dense<0.000000e+00> : vector<8x128xf32>
    %142 = tpu.matmul %139, %141, %cst_93 {dimension_numbers = #tpu.dot_dimension_numbers<[1], [0], [0], [1], [0, 0, 1, 1], [], []>} : vector<8x128xbf16>, vector<128x128xbf16>, vector<8x128xf32> -> vector<8x128xf32>
    %c1_94 = arith.constant 1 : index
    %c0_95 = arith.constant 0 : index
    %c0_96 = arith.constant 0 : index
    %143 = vector.load %arg9[%c1_94, %c0_95, %c0_96] : memref<3x1x128xf32, #tpu.memory_space<vmem>>, vector<1x1x128xf32>
    %144 = vector.shape_cast %143 : vector<1x1x128xf32> to vector<1x128xf32>
    %145 = vector.broadcast %144 : vector<1x128xf32> to vector<8x128xf32>
    %146 = arith.addf %142, %145 : vector<8x128xf32>
    %cst_97 = arith.constant dense<0xFF800000> : vector<8xf32>
    %147 = vector.multi_reduction <maximumf>, %146, %cst_97 [1] : vector<8x128xf32> to vector<8xf32>
    %148 = vector.shape_cast %147 : vector<8xf32> to vector<8x1xf32>
    %149 = vector.broadcast %148 : vector<8x1xf32> to vector<8x128xf32>
    %150 = arith.subf %146, %149 : vector<8x128xf32>
    %151 = math.exp %150 : vector<8x128xf32>
    %cst_98 = arith.constant dense<0.000000e+00> : vector<8xf32>
    %152 = vector.multi_reduction <add>, %151, %cst_98 [1] : vector<8x128xf32> to vector<8xf32>
    %153 = vector.shape_cast %152 : vector<8xf32> to vector<8x1xf32>
    %154 = tpu.reciprocal %153 {approx = true} : vector<8x1xf32> -> vector<8x1xf32>
    %155 = vector.broadcast %154 : vector<8x1xf32> to vector<8x128xf32>
    %156 = arith.mulf %151, %155 : vector<8x128xf32>
    %157 = vector.extract_strided_slice %156 {offsets = [0, 1], sizes = [8, 1], strides = [1, 1]} : vector<8x128xf32> to vector<8x1xf32>
    %158 = vector.broadcast %157 : vector<8x1xf32> to vector<8x128xf32>
    %159 = arith.mulf %158, %51 : vector<8x128xf32>
    %160 = vector.extract_strided_slice %127 {offsets = [0, 0], sizes = [8, 128], strides = [1, 1]} : vector<8x256xf32> to vector<8x128xf32>
    %c1_99 = arith.constant 1 : index
    %c0_100 = arith.constant 0 : index
    %c0_101 = arith.constant 0 : index
    %161 = vector.load %arg4[%c1_99, %c0_100, %c0_101] : memref<3x128x128xbf16, #tpu.memory_space<vmem>>, vector<1x128x128xbf16>
    %162 = vector.shape_cast %161 : vector<1x128x128xbf16> to vector<128x128xbf16>
    %c1_102 = arith.constant 1 : index
    %c0_103 = arith.constant 0 : index
    %c0_104 = arith.constant 0 : index
    %163 = vector.load %arg5[%c1_102, %c0_103, %c0_104] : memref<3x1x128xf32, #tpu.memory_space<vmem>>, vector<1x1x128xf32>
    %164 = vector.shape_cast %163 : vector<1x1x128xf32> to vector<1x128xf32>
    %165 = arith.truncf %160 : vector<8x128xf32> to vector<8x128xbf16>
    %cst_105 = arith.constant dense<0.000000e+00> : vector<8x128xf32>
    %166 = tpu.matmul %165, %162, %cst_105 {dimension_numbers = #tpu.dot_dimension_numbers<[1], [0], [0], [1], [0, 0, 1, 1], [], []>} : vector<8x128xbf16>, vector<128x128xbf16>, vector<8x128xf32> -> vector<8x128xf32>
    %167 = vector.broadcast %164 : vector<1x128xf32> to vector<8x128xf32>
    %168 = arith.addf %166, %167 : vector<8x128xf32>
    %cst_106 = arith.constant 0.000000e+00 : f32
    %169 = vector.broadcast %cst_106 : f32 to vector<8x128xf32>
    %170 = arith.maximumf %168, %169 : vector<8x128xf32>
    %171 = vector.extract_strided_slice %156 {offsets = [0, 0], sizes = [8, 1], strides = [1, 1]} : vector<8x128xf32> to vector<8x1xf32>
    %172 = vector.broadcast %171 : vector<8x1xf32> to vector<8x128xf32>
    %173 = arith.mulf %172, %170 : vector<8x128xf32>
    %174 = arith.addf %159, %173 : vector<8x128xf32>
    %c0_107 = arith.constant 0 : index
    %c128 = arith.constant 128 : index
    %175 = vector.load %arg10[%c0_107, %c128] : memref<8x384xf32, #tpu.memory_space<vmem>>, vector<8x128xf32>
    tpu.vector_store %arg10[%c0_107, %c128], %174 {strides = array<i32>} : memref<8x384xf32, #tpu.memory_space<vmem>>, vector<8x128xf32>,
    return
  }
  func.func @transform_0(%arg0: i32) -> (i32, i32, i32) {
    %c0_i32 = arith.constant 0 : i32
    %c0_i32_0 = arith.constant 0 : i32
    %c0_i32_1 = arith.constant 0 : i32
    return %c0_i32, %arg0, %c0_i32_0 : i32, i32, i32
  }
  func.func @transform_1(%arg0: i32) -> (i32, i32, i32) {
    %c0_i32 = arith.constant 0 : i32
    %c0_i32_0 = arith.constant 0 : i32
    %c0_i32_1 = arith.constant 0 : i32
    %c0_i32_2 = arith.constant 0 : i32
    return %c0_i32, %c0_i32_0, %c0_i32_1 : i32, i32, i32
  }
  func.func @transform_2(%arg0: i32) -> (i32, i32, i32) {
    %c0_i32 = arith.constant 0 : i32
    %c0_i32_0 = arith.constant 0 : i32
    %c0_i32_1 = arith.constant 0 : i32
    %c0_i32_2 = arith.constant 0 : i32
    return %c0_i32, %c0_i32_0, %c0_i32_1 : i32, i32, i32
  }
  func.func @transform_3(%arg0: i32) -> (i32, i32, i32) {
    %c0_i32 = arith.constant 0 : i32
    %c0_i32_0 = arith.constant 0 : i32
    %c0_i32_1 = arith.constant 0 : i32
    %c0_i32_2 = arith.constant 0 : i32
    return %c0_i32, %c0_i32_0, %c0_i32_1 : i32, i32, i32
  }
  func.func @transform_4(%arg0: i32) -> (i32, i32, i32) {
    %c0_i32 = arith.constant 0 : i32
    %c0_i32_0 = arith.constant 0 : i32
    %c0_i32_1 = arith.constant 0 : i32
    %c0_i32_2 = arith.constant 0 : i32
    return %c0_i32, %c0_i32_0, %c0_i32_1 : i32, i32, i32
  }
  func.func @transform_5(%arg0: i32) -> (i32, i32, i32) {
    %c0_i32 = arith.constant 0 : i32
    %c0_i32_0 = arith.constant 0 : i32
    %c0_i32_1 = arith.constant 0 : i32
    %c0_i32_2 = arith.constant 0 : i32
    return %c0_i32, %c0_i32_0, %c0_i32_1 : i32, i32, i32
  }
  func.func @transform_6(%arg0: i32) -> (i32, i32, i32) {
    %c0_i32 = arith.constant 0 : i32
    %c0_i32_0 = arith.constant 0 : i32
    %c0_i32_1 = arith.constant 0 : i32
    %c0_i32_2 = arith.constant 0 : i32
    return %c0_i32, %c0_i32_0, %c0_i32_1 : i32, i32, i32
  }
  func.func @transform_7(%arg0: i32) -> (i32, i32, i32) {
    %c0_i32 = arith.constant 0 : i32
    %c0_i32_0 = arith.constant 0 : i32
    %c0_i32_1 = arith.constant 0 : i32
    %c0_i32_2 = arith.constant 0 : i32
    return %c0_i32, %c0_i32_0, %c0_i32_1 : i32, i32, i32
  }
  func.func @transform_8(%arg0: i32) -> (i32, i32, i32) {
    %c0_i32 = arith.constant 0 : i32
    %c0_i32_0 = arith.constant 0 : i32
    %c0_i32_1 = arith.constant 0 : i32
    %c0_i32_2 = arith.constant 0 : i32
    return %c0_i32, %c0_i32_0, %c0_i32_1 : i32, i32, i32
  }
  func.func @transform_9(%arg0: i32) -> (i32, i32) {
    %c0_i32 = arith.constant 0 : i32
    %c0_i32_0 = arith.constant 0 : i32
    return %arg0, %c0_i32 : i32, i32
  }
}

module attributes {stable_mosaic.version = 11 : i64} {
  func.func @_cgc_kernel(%arg0: i32, %arg1: memref<3x8x128xf32, #tpu.memory_space<vmem>>, %arg2: memref<3x128x256xbf16, #tpu.memory_space<vmem>>, %arg3: memref<3x1x256xf32, #tpu.memory_space<vmem>>, %arg4: memref<3x128x128xbf16, #tpu.memory_space<vmem>>, %arg5: memref<3x1x128xf32, #tpu.memory_space<vmem>>, %arg6: memref<3x128x128xbf16, #tpu.memory_space<vmem>>, %arg7: memref<3x1x128xf32, #tpu.memory_space<vmem>>, %arg8: memref<3x128x128xbf16, #tpu.memory_space<vmem>>, %arg9: memref<3x1x128xf32, #tpu.memory_space<vmem>>, %arg10: memref<8x384xf32, #tpu.memory_space<vmem>>) attributes {dimension_semantics = [#tpu.dimension_semantics<parallel>], iteration_bounds = array<i64: 2>, scalar_prefetch = 0 : i64, scratch_operands = 0 : i64, tpu.core_type = #tpu.core_type<tc>, window_params = [{transform_indices = @transform_0, window_bounds = array<i64: 3, 8, 128>}, {pipeline_mode = #tpu.pipeline_mode<synchronous>, transform_indices = @transform_1, window_bounds = array<i64: 3, 128, 256>}, {pipeline_mode = #tpu.pipeline_mode<synchronous>, transform_indices = @transform_2, window_bounds = array<i64: 3, 1, 256>}, {pipeline_mode = #tpu.pipeline_mode<synchronous>, transform_indices = @transform_3, window_bounds = array<i64: 3, 128, 128>}, {pipeline_mode = #tpu.pipeline_mode<synchronous>, transform_indices = @transform_4, window_bounds = array<i64: 3, 1, 128>}, {pipeline_mode = #tpu.pipeline_mode<synchronous>, transform_indices = @transform_5, window_bounds = array<i64: 3, 128, 128>}, {pipeline_mode = #tpu.pipeline_mode<synchronous>, transform_indices = @transform_6, window_bounds = array<i64: 3, 1, 128>}, {pipeline_mode = #tpu.pipeline_mode<synchronous>, transform_indices = @transform_7, window_bounds = array<i64: 3, 128, 128>}, {pipeline_mode = #tpu.pipeline_mode<synchronous>, transform_indices = @transform_8, window_bounds = array<i64: 3, 1, 128>}, {transform_indices = @transform_9, window_bounds = array<i64: 8, 384>}]} {
    %c2 = arith.constant 2 : index
    %c0 = arith.constant 0 : index
    %c0_0 = arith.constant 0 : index
    %0 = vector.load %arg1[%c2, %c0, %c0_0] : memref<3x8x128xf32, #tpu.memory_space<vmem>>, vector<1x8x128xf32>
    %1 = vector.shape_cast %0 : vector<1x8x128xf32> to vector<8x128xf32>
    %c2_1 = arith.constant 2 : index
    %c0_2 = arith.constant 0 : index
    %c0_3 = arith.constant 0 : index
    %2 = vector.load %arg2[%c2_1, %c0_2, %c0_3] : memref<3x128x256xbf16, #tpu.memory_space<vmem>>, vector<1x128x256xbf16>
    %3 = vector.shape_cast %2 : vector<1x128x256xbf16> to vector<128x256xbf16>
    %c2_4 = arith.constant 2 : index
    %c0_5 = arith.constant 0 : index
    %c0_6 = arith.constant 0 : index
    %4 = vector.load %arg3[%c2_4, %c0_5, %c0_6] : memref<3x1x256xf32, #tpu.memory_space<vmem>>, vector<1x1x256xf32>
    %5 = vector.shape_cast %4 : vector<1x1x256xf32> to vector<1x256xf32>
    %6 = arith.truncf %1 : vector<8x128xf32> to vector<8x128xbf16>
    %cst = arith.constant dense<0.000000e+00> : vector<8x256xf32>
    %7 = tpu.matmul %6, %3, %cst {dimension_numbers = #tpu.dot_dimension_numbers<[1], [0], [0], [1], [0, 0, 1, 1], [], []>} : vector<8x128xbf16>, vector<128x256xbf16>, vector<8x256xf32> -> vector<8x256xf32>
    %8 = vector.broadcast %5 : vector<1x256xf32> to vector<8x256xf32>
    %9 = arith.addf %7, %8 : vector<8x256xf32>
    %cst_7 = arith.constant 0.000000e+00 : f32
    %10 = vector.broadcast %cst_7 : f32 to vector<8x256xf32>
    %11 = arith.maximumf %9, %10 : vector<8x256xf32>
    %12 = vector.extract_strided_slice %11 {offsets = [0, 128], sizes = [8, 128], strides = [1, 1]} : vector<8x256xf32> to vector<8x128xf32>
    %c2_8 = arith.constant 2 : index
    %c0_9 = arith.constant 0 : index
    %c0_10 = arith.constant 0 : index
    %13 = vector.load %arg6[%c2_8, %c0_9, %c0_10] : memref<3x128x128xbf16, #tpu.memory_space<vmem>>, vector<1x128x128xbf16>
    %14 = vector.shape_cast %13 : vector<1x128x128xbf16> to vector<128x128xbf16>
    %c2_11 = arith.constant 2 : index
    %c0_12 = arith.constant 0 : index
    %c0_13 = arith.constant 0 : index
    %15 = vector.load %arg7[%c2_11, %c0_12, %c0_13] : memref<3x1x128xf32, #tpu.memory_space<vmem>>, vector<1x1x128xf32>
    %16 = vector.shape_cast %15 : vector<1x1x128xf32> to vector<1x128xf32>
    %17 = arith.truncf %12 : vector<8x128xf32> to vector<8x128xbf16>
    %cst_14 = arith.constant dense<0.000000e+00> : vector<8x128xf32>
    %18 = tpu.matmul %17, %14, %cst_14 {dimension_numbers = #tpu.dot_dimension_numbers<[1], [0], [0], [1], [0, 0, 1, 1], [], []>} : vector<8x128xbf16>, vector<128x128xbf16>, vector<8x128xf32> -> vector<8x128xf32>
    %19 = vector.broadcast %16 : vector<1x128xf32> to vector<8x128xf32>
    %20 = arith.addf %18, %19 : vector<8x128xf32>
    %cst_15 = arith.constant 0.000000e+00 : f32
    %21 = vector.broadcast %cst_15 : f32 to vector<8x128xf32>
    %22 = arith.maximumf %20, %21 : vector<8x128xf32>
    %23 = arith.truncf %22 : vector<8x128xf32> to vector<8x128xbf16>
    %c2_16 = arith.constant 2 : index
    %c0_17 = arith.constant 0 : index
    %c0_18 = arith.constant 0 : index
    %24 = vector.load %arg8[%c2_16, %c0_17, %c0_18] : memref<3x128x128xbf16, #tpu.memory_space<vmem>>, vector<1x128x128xbf16>
    %25 = vector.shape_cast %24 : vector<1x128x128xbf16> to vector<128x128xbf16>
    %cst_19 = arith.constant dense<0.000000e+00> : vector<8x128xf32>
    %26 = tpu.matmul %23, %25, %cst_19 {dimension_numbers = #tpu.dot_dimension_numbers<[1], [0], [0], [1], [0, 0, 1, 1], [], []>} : vector<8x128xbf16>, vector<128x128xbf16>, vector<8x128xf32> -> vector<8x128xf32>
    %c2_20 = arith.constant 2 : index
    %c0_21 = arith.constant 0 : index
    %c0_22 = arith.constant 0 : index
    %27 = vector.load %arg9[%c2_20, %c0_21, %c0_22] : memref<3x1x128xf32, #tpu.memory_space<vmem>>, vector<1x1x128xf32>
    %28 = vector.shape_cast %27 : vector<1x1x128xf32> to vector<1x128xf32>
    %29 = vector.broadcast %28 : vector<1x128xf32> to vector<8x128xf32>
    %30 = arith.addf %26, %29 : vector<8x128xf32>
    %cst_23 = arith.constant dense<0xFF800000> : vector<8xf32>
    %31 = vector.multi_reduction <maximumf>, %30, %cst_23 [1] : vector<8x128xf32> to vector<8xf32>
    %32 = vector.shape_cast %31 : vector<8xf32> to vector<8x1xf32>
    %33 = vector.broadcast %32 : vector<8x1xf32> to vector<8x128xf32>
    %34 = arith.subf %30, %33 : vector<8x128xf32>
    %35 = math.exp %34 : vector<8x128xf32>
    %cst_24 = arith.constant dense<0.000000e+00> : vector<8xf32>
    %36 = vector.multi_reduction <add>, %35, %cst_24 [1] : vector<8x128xf32> to vector<8xf32>
    %37 = vector.shape_cast %36 : vector<8xf32> to vector<8x1xf32>
    %38 = tpu.reciprocal %37 {approx = true} : vector<8x1xf32> -> vector<8x1xf32>
    %39 = vector.broadcast %38 : vector<8x1xf32> to vector<8x128xf32>
    %40 = arith.mulf %35, %39 : vector<8x128xf32>
    %41 = vector.extract_strided_slice %11 {offsets = [0, 0], sizes = [8, 128], strides = [1, 1]} : vector<8x256xf32> to vector<8x128xf32>
    %c2_25 = arith.constant 2 : index
    %c0_26 = arith.constant 0 : index
    %c0_27 = arith.constant 0 : index
    %42 = vector.load %arg4[%c2_25, %c0_26, %c0_27] : memref<3x128x128xbf16, #tpu.memory_space<vmem>>, vector<1x128x128xbf16>
    %43 = vector.shape_cast %42 : vector<1x128x128xbf16> to vector<128x128xbf16>
    %c2_28 = arith.constant 2 : index
    %c0_29 = arith.constant 0 : index
    %c0_30 = arith.constant 0 : index
    %44 = vector.load %arg5[%c2_28, %c0_29, %c0_30] : memref<3x1x128xf32, #tpu.memory_space<vmem>>, vector<1x1x128xf32>
    %45 = vector.shape_cast %44 : vector<1x1x128xf32> to vector<1x128xf32>
    %46 = arith.truncf %41 : vector<8x128xf32> to vector<8x128xbf16>
    %cst_31 = arith.constant dense<0.000000e+00> : vector<8x128xf32>
    %47 = tpu.matmul %46, %43, %cst_31 {dimension_numbers = #tpu.dot_dimension_numbers<[1], [0], [0], [1], [0, 0, 1, 1], [], []>} : vector<8x128xbf16>, vector<128x128xbf16>, vector<8x128xf32> -> vector<8x128xf32>
    %48 = vector.broadcast %45 : vector<1x128xf32> to vector<8x128xf32>
    %49 = arith.addf %47, %48 : vector<8x128xf32>
    %cst_32 = arith.constant 0.000000e+00 : f32
    %50 = vector.broadcast %cst_32 : f32 to vector<8x128xf32>
    %51 = arith.maximumf %49, %50 : vector<8x128xf32>
    %52 = vector.extract_strided_slice %40 {offsets = [0, 0], sizes = [8, 1], strides = [1, 1]} : vector<8x128xf32> to vector<8x1xf32>
    %53 = vector.broadcast %52 : vector<8x1xf32> to vector<8x128xf32>
    %54 = arith.mulf %53, %51 : vector<8x128xf32>
    %c0_33 = arith.constant 0 : index
    %c256 = arith.constant 256 : index
    %55 = vector.load %arg10[%c0_33, %c256] : memref<8x384xf32, #tpu.memory_space<vmem>>, vector<8x128xf32>
    tpu.vector_store %arg10[%c0_33, %c256], %54 {strides = array<i32>} : memref<8x384xf32, #tpu.memory_space<vmem>>, vector<8x128xf32>,
    %c0_34 = arith.constant 0 : index
    %c0_35 = arith.constant 0 : index
    %c0_36 = arith.constant 0 : index
    %56 = vector.load %arg1[%c0_34, %c0_35, %c0_36] : memref<3x8x128xf32, #tpu.memory_space<vmem>>, vector<1x8x128xf32>
    %57 = vector.shape_cast %56 : vector<1x8x128xf32> to vector<8x128xf32>
    %c0_37 = arith.constant 0 : index
    %c0_38 = arith.constant 0 : index
    %c0_39 = arith.constant 0 : index
    %58 = vector.load %arg2[%c0_37, %c0_38, %c0_39] : memref<3x128x256xbf16, #tpu.memory_space<vmem>>, vector<1x128x256xbf16>
    %59 = vector.shape_cast %58 : vector<1x128x256xbf16> to vector<128x256xbf16>
    %c0_40 = arith.constant 0 : index
    %c0_41 = arith.constant 0 : index
    %c0_42 = arith.constant 0 : index
    %60 = vector.load %arg3[%c0_40, %c0_41, %c0_42] : memref<3x1x256xf32, #tpu.memory_space<vmem>>, vector<1x1x256xf32>
    %61 = vector.shape_cast %60 : vector<1x1x256xf32> to vector<1x256xf32>
    %62 = arith.truncf %57 : vector<8x128xf32> to vector<8x128xbf16>
    %cst_43 = arith.constant dense<0.000000e+00> : vector<8x256xf32>
    %63 = tpu.matmul %62, %59, %cst_43 {dimension_numbers = #tpu.dot_dimension_numbers<[1], [0], [0], [1], [0, 0, 1, 1], [], []>} : vector<8x128xbf16>, vector<128x256xbf16>, vector<8x256xf32> -> vector<8x256xf32>
    %64 = vector.broadcast %61 : vector<1x256xf32> to vector<8x256xf32>
    %65 = arith.addf %63, %64 : vector<8x256xf32>
    %cst_44 = arith.constant 0.000000e+00 : f32
    %66 = vector.broadcast %cst_44 : f32 to vector<8x256xf32>
    %67 = arith.maximumf %65, %66 : vector<8x256xf32>
    %68 = vector.extract_strided_slice %67 {offsets = [0, 128], sizes = [8, 128], strides = [1, 1]} : vector<8x256xf32> to vector<8x128xf32>
    %c0_45 = arith.constant 0 : index
    %c0_46 = arith.constant 0 : index
    %c0_47 = arith.constant 0 : index
    %69 = vector.load %arg6[%c0_45, %c0_46, %c0_47] : memref<3x128x128xbf16, #tpu.memory_space<vmem>>, vector<1x128x128xbf16>
    %70 = vector.shape_cast %69 : vector<1x128x128xbf16> to vector<128x128xbf16>
    %c0_48 = arith.constant 0 : index
    %c0_49 = arith.constant 0 : index
    %c0_50 = arith.constant 0 : index
    %71 = vector.load %arg7[%c0_48, %c0_49, %c0_50] : memref<3x1x128xf32, #tpu.memory_space<vmem>>, vector<1x1x128xf32>
    %72 = vector.shape_cast %71 : vector<1x1x128xf32> to vector<1x128xf32>
    %73 = arith.truncf %68 : vector<8x128xf32> to vector<8x128xbf16>
    %cst_51 = arith.constant dense<0.000000e+00> : vector<8x128xf32>
    %74 = tpu.matmul %73, %70, %cst_51 {dimension_numbers = #tpu.dot_dimension_numbers<[1], [0], [0], [1], [0, 0, 1, 1], [], []>} : vector<8x128xbf16>, vector<128x128xbf16>, vector<8x128xf32> -> vector<8x128xf32>
    %75 = vector.broadcast %72 : vector<1x128xf32> to vector<8x128xf32>
    %76 = arith.addf %74, %75 : vector<8x128xf32>
    %cst_52 = arith.constant 0.000000e+00 : f32
    %77 = vector.broadcast %cst_52 : f32 to vector<8x128xf32>
    %78 = arith.maximumf %76, %77 : vector<8x128xf32>
    %79 = arith.truncf %78 : vector<8x128xf32> to vector<8x128xbf16>
    %c0_53 = arith.constant 0 : index
    %c0_54 = arith.constant 0 : index
    %c0_55 = arith.constant 0 : index
    %80 = vector.load %arg8[%c0_53, %c0_54, %c0_55] : memref<3x128x128xbf16, #tpu.memory_space<vmem>>, vector<1x128x128xbf16>
    %81 = vector.shape_cast %80 : vector<1x128x128xbf16> to vector<128x128xbf16>
    %cst_56 = arith.constant dense<0.000000e+00> : vector<8x128xf32>
    %82 = tpu.matmul %79, %81, %cst_56 {dimension_numbers = #tpu.dot_dimension_numbers<[1], [0], [0], [1], [0, 0, 1, 1], [], []>} : vector<8x128xbf16>, vector<128x128xbf16>, vector<8x128xf32> -> vector<8x128xf32>
    %c0_57 = arith.constant 0 : index
    %c0_58 = arith.constant 0 : index
    %c0_59 = arith.constant 0 : index
    %83 = vector.load %arg9[%c0_57, %c0_58, %c0_59] : memref<3x1x128xf32, #tpu.memory_space<vmem>>, vector<1x1x128xf32>
    %84 = vector.shape_cast %83 : vector<1x1x128xf32> to vector<1x128xf32>
    %85 = vector.broadcast %84 : vector<1x128xf32> to vector<8x128xf32>
    %86 = arith.addf %82, %85 : vector<8x128xf32>
    %cst_60 = arith.constant dense<0xFF800000> : vector<8xf32>
    %87 = vector.multi_reduction <maximumf>, %86, %cst_60 [1] : vector<8x128xf32> to vector<8xf32>
    %88 = vector.shape_cast %87 : vector<8xf32> to vector<8x1xf32>
    %89 = vector.broadcast %88 : vector<8x1xf32> to vector<8x128xf32>
    %90 = arith.subf %86, %89 : vector<8x128xf32>
    %91 = math.exp %90 : vector<8x128xf32>
    %cst_61 = arith.constant dense<0.000000e+00> : vector<8xf32>
    %92 = vector.multi_reduction <add>, %91, %cst_61 [1] : vector<8x128xf32> to vector<8xf32>
    %93 = vector.shape_cast %92 : vector<8xf32> to vector<8x1xf32>
    %94 = tpu.reciprocal %93 {approx = true} : vector<8x1xf32> -> vector<8x1xf32>
    %95 = vector.broadcast %94 : vector<8x1xf32> to vector<8x128xf32>
    %96 = arith.mulf %91, %95 : vector<8x128xf32>
    %97 = vector.extract_strided_slice %96 {offsets = [0, 1], sizes = [8, 1], strides = [1, 1]} : vector<8x128xf32> to vector<8x1xf32>
    %98 = vector.broadcast %97 : vector<8x1xf32> to vector<8x128xf32>
    %99 = arith.mulf %98, %51 : vector<8x128xf32>
    %100 = vector.extract_strided_slice %67 {offsets = [0, 0], sizes = [8, 128], strides = [1, 1]} : vector<8x256xf32> to vector<8x128xf32>
    %c0_62 = arith.constant 0 : index
    %c0_63 = arith.constant 0 : index
    %c0_64 = arith.constant 0 : index
    %101 = vector.load %arg4[%c0_62, %c0_63, %c0_64] : memref<3x128x128xbf16, #tpu.memory_space<vmem>>, vector<1x128x128xbf16>
    %102 = vector.shape_cast %101 : vector<1x128x128xbf16> to vector<128x128xbf16>
    %c0_65 = arith.constant 0 : index
    %c0_66 = arith.constant 0 : index
    %c0_67 = arith.constant 0 : index
    %103 = vector.load %arg5[%c0_65, %c0_66, %c0_67] : memref<3x1x128xf32, #tpu.memory_space<vmem>>, vector<1x1x128xf32>
    %104 = vector.shape_cast %103 : vector<1x1x128xf32> to vector<1x128xf32>
    %105 = arith.truncf %100 : vector<8x128xf32> to vector<8x128xbf16>
    %cst_68 = arith.constant dense<0.000000e+00> : vector<8x128xf32>
    %106 = tpu.matmul %105, %102, %cst_68 {dimension_numbers = #tpu.dot_dimension_numbers<[1], [0], [0], [1], [0, 0, 1, 1], [], []>} : vector<8x128xbf16>, vector<128x128xbf16>, vector<8x128xf32> -> vector<8x128xf32>
    %107 = vector.broadcast %104 : vector<1x128xf32> to vector<8x128xf32>
    %108 = arith.addf %106, %107 : vector<8x128xf32>
    %cst_69 = arith.constant 0.000000e+00 : f32
    %109 = vector.broadcast %cst_69 : f32 to vector<8x128xf32>
    %110 = arith.maximumf %108, %109 : vector<8x128xf32>
    %111 = vector.extract_strided_slice %96 {offsets = [0, 0], sizes = [8, 1], strides = [1, 1]} : vector<8x128xf32> to vector<8x1xf32>
    %112 = vector.broadcast %111 : vector<8x1xf32> to vector<8x128xf32>
    %113 = arith.mulf %112, %110 : vector<8x128xf32>
    %114 = arith.addf %99, %113 : vector<8x128xf32>
    %c0_70 = arith.constant 0 : index
    %c0_71 = arith.constant 0 : index
    %115 = vector.load %arg10[%c0_70, %c0_71] : memref<8x384xf32, #tpu.memory_space<vmem>>, vector<8x128xf32>
    tpu.vector_store %arg10[%c0_70, %c0_71], %114 {strides = array<i32>} : memref<8x384xf32, #tpu.memory_space<vmem>>, vector<8x128xf32>,
    %c1 = arith.constant 1 : index
    %c0_72 = arith.constant 0 : index
    %c0_73 = arith.constant 0 : index
    %116 = vector.load %arg1[%c1, %c0_72, %c0_73] : memref<3x8x128xf32, #tpu.memory_space<vmem>>, vector<1x8x128xf32>
    %117 = vector.shape_cast %116 : vector<1x8x128xf32> to vector<8x128xf32>
    %c1_74 = arith.constant 1 : index
    %c0_75 = arith.constant 0 : index
    %c0_76 = arith.constant 0 : index
    %118 = vector.load %arg2[%c1_74, %c0_75, %c0_76] : memref<3x128x256xbf16, #tpu.memory_space<vmem>>, vector<1x128x256xbf16>
    %119 = vector.shape_cast %118 : vector<1x128x256xbf16> to vector<128x256xbf16>
    %c1_77 = arith.constant 1 : index
    %c0_78 = arith.constant 0 : index
    %c0_79 = arith.constant 0 : index
    %120 = vector.load %arg3[%c1_77, %c0_78, %c0_79] : memref<3x1x256xf32, #tpu.memory_space<vmem>>, vector<1x1x256xf32>
    %121 = vector.shape_cast %120 : vector<1x1x256xf32> to vector<1x256xf32>
    %122 = arith.truncf %117 : vector<8x128xf32> to vector<8x128xbf16>
    %cst_80 = arith.constant dense<0.000000e+00> : vector<8x256xf32>
    %123 = tpu.matmul %122, %119, %cst_80 {dimension_numbers = #tpu.dot_dimension_numbers<[1], [0], [0], [1], [0, 0, 1, 1], [], []>} : vector<8x128xbf16>, vector<128x256xbf16>, vector<8x256xf32> -> vector<8x256xf32>
    %124 = vector.broadcast %121 : vector<1x256xf32> to vector<8x256xf32>
    %125 = arith.addf %123, %124 : vector<8x256xf32>
    %cst_81 = arith.constant 0.000000e+00 : f32
    %126 = vector.broadcast %cst_81 : f32 to vector<8x256xf32>
    %127 = arith.maximumf %125, %126 : vector<8x256xf32>
    %128 = vector.extract_strided_slice %127 {offsets = [0, 128], sizes = [8, 128], strides = [1, 1]} : vector<8x256xf32> to vector<8x128xf32>
    %c1_82 = arith.constant 1 : index
    %c0_83 = arith.constant 0 : index
    %c0_84 = arith.constant 0 : index
    %129 = vector.load %arg6[%c1_82, %c0_83, %c0_84] : memref<3x128x128xbf16, #tpu.memory_space<vmem>>, vector<1x128x128xbf16>
    %130 = vector.shape_cast %129 : vector<1x128x128xbf16> to vector<128x128xbf16>
    %c1_85 = arith.constant 1 : index
    %c0_86 = arith.constant 0 : index
    %c0_87 = arith.constant 0 : index
    %131 = vector.load %arg7[%c1_85, %c0_86, %c0_87] : memref<3x1x128xf32, #tpu.memory_space<vmem>>, vector<1x1x128xf32>
    %132 = vector.shape_cast %131 : vector<1x1x128xf32> to vector<1x128xf32>
    %133 = arith.truncf %128 : vector<8x128xf32> to vector<8x128xbf16>
    %cst_88 = arith.constant dense<0.000000e+00> : vector<8x128xf32>
    %134 = tpu.matmul %133, %130, %cst_88 {dimension_numbers = #tpu.dot_dimension_numbers<[1], [0], [0], [1], [0, 0, 1, 1], [], []>} : vector<8x128xbf16>, vector<128x128xbf16>, vector<8x128xf32> -> vector<8x128xf32>
    %135 = vector.broadcast %132 : vector<1x128xf32> to vector<8x128xf32>
    %136 = arith.addf %134, %135 : vector<8x128xf32>
    %cst_89 = arith.constant 0.000000e+00 : f32
    %137 = vector.broadcast %cst_89 : f32 to vector<8x128xf32>
    %138 = arith.maximumf %136, %137 : vector<8x128xf32>
    %139 = arith.truncf %138 : vector<8x128xf32> to vector<8x128xbf16>
    %c1_90 = arith.constant 1 : index
    %c0_91 = arith.constant 0 : index
    %c0_92 = arith.constant 0 : index
    %140 = vector.load %arg8[%c1_90, %c0_91, %c0_92] : memref<3x128x128xbf16, #tpu.memory_space<vmem>>, vector<1x128x128xbf16>
    %141 = vector.shape_cast %140 : vector<1x128x128xbf16> to vector<128x128xbf16>
    %cst_93 = arith.constant dense<0.000000e+00> : vector<8x128xf32>
    %142 = tpu.matmul %139, %141, %cst_93 {dimension_numbers = #tpu.dot_dimension_numbers<[1], [0], [0], [1], [0, 0, 1, 1], [], []>} : vector<8x128xbf16>, vector<128x128xbf16>, vector<8x128xf32> -> vector<8x128xf32>
    %c1_94 = arith.constant 1 : index
    %c0_95 = arith.constant 0 : index
    %c0_96 = arith.constant 0 : index
    %143 = vector.load %arg9[%c1_94, %c0_95, %c0_96] : memref<3x1x128xf32, #tpu.memory_space<vmem>>, vector<1x1x128xf32>
    %144 = vector.shape_cast %143 : vector<1x1x128xf32> to vector<1x128xf32>
    %145 = vector.broadcast %144 : vector<1x128xf32> to vector<8x128xf32>
    %146 = arith.addf %142, %145 : vector<8x128xf32>
    %cst_97 = arith.constant dense<0xFF800000> : vector<8xf32>
    %147 = vector.multi_reduction <maximumf>, %146, %cst_97 [1] : vector<8x128xf32> to vector<8xf32>
    %148 = vector.shape_cast %147 : vector<8xf32> to vector<8x1xf32>
    %149 = vector.broadcast %148 : vector<8x1xf32> to vector<8x128xf32>
    %150 = arith.subf %146, %149 : vector<8x128xf32>
    %151 = math.exp %150 : vector<8x128xf32>
    %cst_98 = arith.constant dense<0.000000e+00> : vector<8xf32>
    %152 = vector.multi_reduction <add>, %151, %cst_98 [1] : vector<8x128xf32> to vector<8xf32>
    %153 = vector.shape_cast %152 : vector<8xf32> to vector<8x1xf32>
    %154 = tpu.reciprocal %153 {approx = true} : vector<8x1xf32> -> vector<8x1xf32>
    %155 = vector.broadcast %154 : vector<8x1xf32> to vector<8x128xf32>
    %156 = arith.mulf %151, %155 : vector<8x128xf32>
    %157 = vector.extract_strided_slice %156 {offsets = [0, 1], sizes = [8, 1], strides = [1, 1]} : vector<8x128xf32> to vector<8x1xf32>
    %158 = vector.broadcast %157 : vector<8x1xf32> to vector<8x128xf32>
    %159 = arith.mulf %158, %51 : vector<8x128xf32>
    %160 = vector.extract_strided_slice %127 {offsets = [0, 0], sizes = [8, 128], strides = [1, 1]} : vector<8x256xf32> to vector<8x128xf32>
    %c1_99 = arith.constant 1 : index
    %c0_100 = arith.constant 0 : index
    %c0_101 = arith.constant 0 : index
    %161 = vector.load %arg4[%c1_99, %c0_100, %c0_101] : memref<3x128x128xbf16, #tpu.memory_space<vmem>>, vector<1x128x128xbf16>
    %162 = vector.shape_cast %161 : vector<1x128x128xbf16> to vector<128x128xbf16>
    %c1_102 = arith.constant 1 : index
    %c0_103 = arith.constant 0 : index
    %c0_104 = arith.constant 0 : index
    %163 = vector.load %arg5[%c1_102, %c0_103, %c0_104] : memref<3x1x128xf32, #tpu.memory_space<vmem>>, vector<1x1x128xf32>
    %164 = vector.shape_cast %163 : vector<1x1x128xf32> to vector<1x128xf32>
    %165 = arith.truncf %160 : vector<8x128xf32> to vector<8x128xbf16>
    %cst_105 = arith.constant dense<0.000000e+00> : vector<8x128xf32>
    %166 = tpu.matmul %165, %162, %cst_105 {dimension_numbers = #tpu.dot_dimension_numbers<[1], [0], [0], [1], [0, 0, 1, 1], [], []>} : vector<8x128xbf16>, vector<128x128xbf16>, vector<8x128xf32> -> vector<8x128xf32>
    %167 = vector.broadcast %164 : vector<1x128xf32> to vector<8x128xf32>
    %168 = arith.addf %166, %167 : vector<8x128xf32>
    %cst_106 = arith.constant 0.000000e+00 : f32
    %169 = vector.broadcast %cst_106 : f32 to vector<8x128xf32>
    %170 = arith.maximumf %168, %169 : vector<8x128xf32>
    %171 = vector.extract_strided_slice %156 {offsets = [0, 0], sizes = [8, 1], strides = [1, 1]} : vector<8x128xf32> to vector<8x1xf32>
    %172 = vector.broadcast %171 : vector<8x1xf32> to vector<8x128xf32>
    %173 = arith.mulf %172, %170 : vector<8x128xf32>
    %174 = arith.addf %159, %173 : vector<8x128xf32>
    %c0_107 = arith.constant 0 : index
    %c128 = arith.constant 128 : index
    %175 = vector.load %arg10[%c0_107, %c128] : memref<8x384xf32, #tpu.memory_space<vmem>>, vector<8x128xf32>
    tpu.vector_store %arg10[%c0_107, %c128], %174 {strides = array<i32>} : memref<8x384xf32, #tpu.memory_space<vmem>>, vector<8x128xf32>,
    return
  }
  func.func @transform_0(%arg0: i32) -> (i32, i32, i32) {
    %c0_i32 = arith.constant 0 : i32
    %c0_i32_0 = arith.constant 0 : i32
    %c0_i32_1 = arith.constant 0 : i32
    return %c0_i32, %arg0, %c0_i32_0 : i32, i32, i32
  }
  func.func @transform_1(%arg0: i32) -> (i32, i32, i32) {
    %c0_i32 = arith.constant 0 : i32
    %c0_i32_0 = arith.constant 0 : i32
    %c0_i32_1 = arith.constant 0 : i32
    %c0_i32_2 = arith.constant 0 : i32
    return %c0_i32, %c0_i32_0, %c0_i32_1 : i32, i32, i32
  }
  func.func @transform_2(%arg0: i32) -> (i32, i32, i32) {
    %c0_i32 = arith.constant 0 : i32
    %c0_i32_0 = arith.constant 0 : i32
    %c0_i32_1 = arith.constant 0 : i32
    %c0_i32_2 = arith.constant 0 : i32
    return %c0_i32, %c0_i32_0, %c0_i32_1 : i32, i32, i32
  }
  func.func @transform_3(%arg0: i32) -> (i32, i32, i32) {
    %c0_i32 = arith.constant 0 : i32
    %c0_i32_0 = arith.constant 0 : i32
    %c0_i32_1 = arith.constant 0 : i32
    %c0_i32_2 = arith.constant 0 : i32
    return %c0_i32, %c0_i32_0, %c0_i32_1 : i32, i32, i32
  }
  func.func @transform_4(%arg0: i32) -> (i32, i32, i32) {
    %c0_i32 = arith.constant 0 : i32
    %c0_i32_0 = arith.constant 0 : i32
    %c0_i32_1 = arith.constant 0 : i32
    %c0_i32_2 = arith.constant 0 : i32
    return %c0_i32, %c0_i32_0, %c0_i32_1 : i32, i32, i32
  }
  func.func @transform_5(%arg0: i32) -> (i32, i32, i32) {
    %c0_i32 = arith.constant 0 : i32
    %c0_i32_0 = arith.constant 0 : i32
    %c0_i32_1 = arith.constant 0 : i32
    %c0_i32_2 = arith.constant 0 : i32
    return %c0_i32, %c0_i32_0, %c0_i32_1 : i32, i32, i32
  }
  func.func @transform_6(%arg0: i32) -> (i32, i32, i32) {
    %c0_i32 = arith.constant 0 : i32
    %c0_i32_0 = arith.constant 0 : i32
    %c0_i32_1 = arith.constant 0 : i32
    %c0_i32_2 = arith.constant 0 : i32
    return %c0_i32, %c0_i32_0, %c0_i32_1 : i32, i32, i32
  }
  func.func @transform_7(%arg0: i32) -> (i32, i32, i32) {
    %c0_i32 = arith.constant 0 : i32
    %c0_i32_0 = arith.constant 0 : i32
    %c0_i32_1 = arith.constant 0 : i32
    %c0_i32_2 = arith.constant 0 : i32
    return %c0_i32, %c0_i32_0, %c0_i32_1 : i32, i32, i32
  }
  func.func @transform_8(%arg0: i32) -> (i32, i32, i32) {
    %c0_i32 = arith.constant 0 : i32
    %c0_i32_0 = arith.constant 0 : i32
    %c0_i32_1 = arith.constant 0 : i32
    %c0_i32_2 = arith.constant 0 : i32
    return %c0_i32, %c0_i32_0, %c0_i32_1 : i32, i32, i32
  }
  func.func @transform_9(%arg0: i32) -> (i32, i32) {
    %c0_i32 = arith.constant 0 : i32
    %c0_i32_0 = arith.constant 0 : i32
    return %arg0, %c0_i32 : i32, i32
  }
}

</mosaic_0001>

<bundles_post_ra>
// kernel: tpu_custom_call.1
= control target key start
LH: loop header
LB: loop body
LE: loop exit
PB: predicated region body
PF: predicated region fallthrough
CT: control target
= control target key end

     0   :  { %s3199_s0 = inlined_call_operand.hbm [shape: f32[3,16,128], index: 0, kind: input, shape index: {}]   ;;  %s3200_s1 = inlined_call_operand.hbm [shape: bf16[3,128,256], index: 1, kind: input, shape index: {}]   ;;  %s3201_s2 = inlined_call_operand.hbm [shape: f32[3,1,256], index: 2, kind: input, shape index: {}]   ;;  %s3202_s3 = inlined_call_operand.hbm [shape: bf16[3,128,128], index: 3, kind: input, shape index: {}]   ;;  %s3203_s4 = inlined_call_operand.vmem [shape: f32[3,1,128], index: 4, kind: input, shape index: {}]   ;;  %s3204_s5 = inlined_call_operand.hbm [shape: bf16[3,128,128], index: 5, kind: input, shape index: {}]   ;;  %s3205_s6 = inlined_call_operand.hbm [shape: f32[3,1,128], index: 6, kind: input, shape index: {}]   ;;  %s3206_s7 = inlined_call_operand.hbm [shape: bf16[3,128,128], index: 7, kind: input, shape index: {}]   ;;  %s3207_s8 = inlined_call_operand.vmem [shape: f32[3,1,128], index: 8, kind: input, shape index: {}]   ;;  %s3208_s9 = inlined_call_operand.hbm [shape: f32[16,384], index: 9, kind: output, shape index: {}]  }
   0x1   :  { %3211 = sst [smem:[#allocation20_spill]] %s3200_s1 }
   0x2   :  { %3212 = sst [smem:[#allocation21_spill]] %s3201_s2 }
   0x3   :  { %3213 = sst [smem:[#allocation22_spill]] %s3202_s3 }
   0x4   :  { %3214 = sst [smem:[#allocation23_spill]] %s3204_s5 }
   0x5   :  { %3215 = sst [smem:[#allocation24_spill]] %s3205_s6 }
   0x6   :  { %14 = vsyncpa [#allocation3], 0 }
   0x7   :  { %16 = vsyncpa [#allocation3 + $0x1], 0 }
   0x8   :  { %17 = vsyncpa [#allocation6], 0 }
   0x9   :  { %18 = vsyncpa [#allocation9], 0 }
   0xa   :  { %19 = vsyncpa [#allocation12], 0 }
   0xb   :  { %20 = vsyncpa [#allocation4], 0 }
   0xc   :  { %22 = vsyncpa [#allocation4 + $0x1], 0  ;;  %s2943_s30 = smov 0   ;;  %s2945_s10 = smov 0  }
   0xd   :  { %s2947_s11 = smov 0   ;;  %s2949_s12 = smov 0  }
   0xe LB: > { %s3216_s1 = sld [smem:[#allocation20_spill]]  ;;  %s2967_s16 = sadd.s32 4294967295, %s2874_s12   ;;  %s2874_s12 = sphi %s2949_s12, %s3233_s12   ;;  %s2870_s11 = sphi %s2947_s11, %s3232_s11   ;;  %s2866_s10 = sphi %s2945_s10, %s3231_s10   ;;  %s2862_s30 = sphi %s2943_s30, %s3230_s30  }
   0xf   : > { %p1814_p0 = scmp.ge.s32.totalorder %s2874_s12, 1  ;;  %p49_p1 = scmp.eq.s32.totalorder %s2967_s16, 0 }
  0x10   : > { %p253_p2 = scmp.lt.s32.totalorder %s2874_s12, 3  ;;  %s2876_s18 = smov [#allocation5]  }
  0x11   : > { %s266_s19 = sshll.u32 %s2876_s18, 4  ;;  %s3218_s3 = sld [smem:[#allocation22_spill]]  ;;  %s267_s19 = int_to_ptr.vmem [resolvable:$true] %s266_s19 }
  0x12   : > { %p2972_p3 = pnand %p1814_p0, %p253_p2  ;;  %s2877_s24 = smov [#allocation8]  }
  0x13   : > { %s294_s25 = sshll.u32 %s2877_s24, 4  ;;  %s3209_s26 = smov 128   ;;  %s295_s25 = int_to_ptr.vmem [resolvable:$true] %s294_s25 }
  0x14   : > { %s264_s15 = sshll.u32 %s3216_s1, 4  ;;  %p2470_p4 = pneg %p2972_p3  ;;  %s265_s15 = int_to_ptr.hbm [resolvable:$true] %s264_s15 }
  0x15   : > { %s3210_s27 = smov 8   ;;  %s2880_s28 = smov 64  }
  0x16   : > { %p2984_p6 = pnand %p2470_p4, %p49_p1  ;;  %s2881_s29 = smov 4  }
  0x17   : > { %s292_s22 = sshll.u32 %s3218_s3, 4  ;;  %s3220_s6 = sld [smem:[#allocation24_spill]]  ;;  %s293_s22 = int_to_ptr.hbm [resolvable:$true] %s292_s22 }
  0x18   : > { %2473 = dma.hbm_to_vmem [thread:$0]  (!%p2984_p6), %s265_s15, 6144, %s267_s19, [#allocation6], %s3209_s26, %s3209_s26, %s3210_s27  }
  0x19   : > { %2479 = dma.hbm_to_vmem [thread:$0]  (!%p2984_p6), %s293_s22, 3072, %s295_s25, [#allocation9], %s2880_s28, %s2880_s28, %s2881_s29  }
  0x1a   : > { %s2882_s20 = smov [#allocation11]   ;;  %s3221_s2 = sld [smem:[#allocation21_spill]] }
  0x1b   : > { %s325_s21 = sshll.u32 %s2882_s20, 4  ;;  %s2883_s19 = smov 16   ;;  %s326_s21 = int_to_ptr.vmem [resolvable:$true] %s325_s21 }
  0x1c   : > { %s2884_s26 = smov 1   ;;  %s2885_s22 = smov [#allocation7]  }
  0x1d   : > { %s323_s18 = sshll.u32 %s3220_s6, 4  ;;  %s280_s25 = sshll.u32 %s2885_s22, 4  ;;  %s324_s18 = int_to_ptr.hbm [resolvable:$true] %s323_s18  ;;  %s281_s25 = int_to_ptr.vmem [resolvable:$true] %s280_s25 }
  0x1e   : > { %2485 = dma.hbm_to_vmem [thread:$0]  (!%p2984_p6), %s324_s18, 48, %s326_s21, [#allocation12], %s2883_s19, %s2883_s19, %s2884_s26  }
  0x1f   : > { %s2886_s13 = smov 32   ;;  %s2887_s14 = smov 2  }
  0x20   : > { %s278_s15 = sshll.u32 %s3221_s2, 4  ;;  %s3222_s5 = sld [smem:[#allocation23_spill]]  ;;  %s279_s15 = int_to_ptr.hbm [resolvable:$true] %s278_s15 }
  0x21   : > { %2476 = dma.hbm_to_vmem [thread:$0]  (!%p2984_p6), %s279_s15, 96, %s281_s25, [#allocation6], %s2886_s13, %s2886_s13, %s2887_s14  }
  0x22   : > { %s2888_s26 = smov [#allocation10]   ;;  %s337_s22 = sshll.u32 %s3206_s7, 4  ;;  %s338_s22 = int_to_ptr.hbm [resolvable:$true] %s337_s22 }
  0x23   : > { %s311_s18 = sshll.u32 %s2888_s26, 4  ;;  %s2889_s15 = smov [#allocation13]   ;;  %s312_s18 = int_to_ptr.vmem [resolvable:$true] %s311_s18 }
  0x24   : > { %s339_s25 = sshll.u32 %s2889_s15, 4  ;;  %s1813_s13 = sadd.s32 4294967294, %s2874_s12   ;;  %s340_s25 = int_to_ptr.vmem [resolvable:$true] %s339_s25 }
  0x25   : > { %2488 = dma.hbm_to_vmem [thread:$0]  (!%p2984_p6), %s338_s22, 3072, %s340_s25, [#allocation12], %s2880_s28, %s2880_s28, %s2881_s29  }
  0x26   : > { %s309_s24 = sshll.u32 %s3222_s5, 4  ;;  %s3026_s14 = sadd.s32 1, %s2874_s12   ;;  %s310_s24 = int_to_ptr.hbm [resolvable:$true] %s309_s24 }
  0x27   : > { %2482 = dma.hbm_to_vmem [thread:$0]  (!%p2984_p6), %s310_s24, 3072, %s312_s18, [#allocation9], %s2880_s28, %s2880_s28, %s2881_s29  }
  0x28   : > { %s32_s20 = ssub.s32 %s2874_s12, %s3026_s14  ;;  %s35_s1 = sadd.s32 1, %s2870_s11 }
  0x29   : > { %p33_p7 = scmp.eq.s32.totalorder %s32_s20, 0  ;;  %p42_p8 = scmp.ne.s32.totalorder %s2870_s11, %s2866_s10 }
  0x2a   : > { %p43_p9 = scmp.eq.s32.totalorder %s2874_s12, 0  ;;  %p48_p10 = scmp.ne.s32.totalorder %s2866_s10, %s2862_s30 }
  0x2b   : > { %s3037_s24 = scalar_select %p33_p7, %s2870_s11, %s35_s1  }
  0x2c   : > { %p44_p11 = por %p43_p9, %p42_p8  ;;  %p3041_p12 = por %p49_p1, %p48_p10 }
  0x2d   : > { %p240_p13 = scmp.eq.s32.totalorder %s2967_s16, 1  ;;  %p246_p0 = scmp.eq.s32.totalorder %s1813_s13, 1 }
  0x2e   : > { %p2503_p2 = scmp.lt.s32.totalorder %s2874_s12, 2  ;;  %s356_s28 = sand.u32 1, %s2870_s11  }
  0x2f   : > { %p3048_p4 = por %p240_p13, %p42_p8  ;;  %p3052_p6 = por %p246_p0, %p48_p10 }
  0x30   : > { %s2439_s18 = smul.u32 24, %s356_s28  ;;  %s1822_s21 = sshll.u32 %s2874_s12, 3 }
  0x31   : > { %p3057_p7 = pnand %p2503_p2, %p44_p11  ;;  %s364_s25 = scalar_lea.hbm %s3199_s0, %s1822_s21 }
  0x32   : > { %s365_s13 = sshll.u32 %s364_s25, 4  ;;  %s360_s20 = scalar_lea.vmem [#allocation2], %s2439_s18  ;;  %s366_s13 = int_to_ptr.hbm [resolvable:$true] %s365_s13 }
  0x33   : > { %s367_s1 = sshll.u32 %s360_s20, 4  ;;  %s357_s27 = scalar_lea.sflag [#allocation3], %s356_s28  ;;  %s368_s1 = int_to_ptr.vmem [resolvable:$true] %s367_s1 }
  0x34   : > { %s2766_s2 = sshra.s32 %s366_s13, 4  ;;  %p2770_p9 = pneg %p3057_p7  ;;  %s2767_s2 = int_to_ptr.hbm [resolvable:$true] %s2766_s2 }
  0x35   : > { %s2768_s3 = scalar_lea.hbm %s2767_s2, 24  ;;  %s2773_s22 = scalar_lea.hbm %s3199_s0, 48 }
  0x36   : > { %p2769_p8 = scmp.ne.s32.totalorder %s2767_s2, %s2768_s3  ;;  %p2774_p13 = scmp.lt.s32.totalorder %s2767_s2, %s3199_s0 }
  0x37   : > { %p2775_p0 = scmp.lt.s32.totalorder %s2773_s22, %s2768_s3 }
  0x38   : > { %p2771_p10 = pnand %p2770_p9, %p2769_p8 }
  0x39   : > { %p2776_p2 = por %p2775_p0, %p2774_p13 }
  0x3a   : > { %p2772_p11 = pneg %p2771_p10 }
  0x3c   : > { %p2777_p5 = pnand %p2776_p2, %p2772_p11 }
  0x3e   : > { %2780 = shalt.err (!%p2777_p5)
}
  0x3f   : > { %s2890_s28 = smov 256   ;;  %s3227_s18 = smov 8  }
  0x40   : > { %s3228_s25 = smov 128   ;;  %379 = sbr.rel (%p2972_p3) target bundleno = 1185 (0x4a1), region = 56 }
  0x41   : > { %2492 = dma.hbm_to_vmem [thread:$0]  (!%p3057_p7), %s366_s13, 384, %s368_s1, %s357_s27, %s2890_s28, %s3228_s25, %s3227_s18  }
  0x42   : > { %s3079_s5 = sand.u32 (!%p2972_p3), 1, %s2866_s10  }
  0x43   : > { %s2440_s2 = smul.u32 (!%p2972_p3), 24, %s3079_s5  ;;  %s382_s3 = scalar_lea.sflag (!%p2972_p3), [#allocation3], %s3079_s5 }
  0x45   : > { %s3085_s6 = scalar_lea.vmem [#allocation2], %s2440_s2 }
  0x46   : > { %2841 = dma.done.wait (%p3041_p12), %s382_s3, 384  }
  0x47   : > { %2843 = vsyncadd (%p3041_p12), %s382_s3, 4294966912 }
  0x48   : > { %2845 = dma.done.wait (%p49_p1), [#allocation6], 6240  }
  0x49   : > { %2847 = vsyncadd (%p49_p1), [#allocation6], 4294961056 }
  0x4a   : > { %2849 = dma.done.wait (%p49_p1), [#allocation9], 6144  }
  0x4b   : > { %2851 = vsyncadd (%p49_p1), [#allocation9], 4294961152 }
  0x4c   : > { %2853 = dma.done.wait (%p49_p1), [#allocation12], 3120  }
  0x4d   : > { %2855 = vsyncadd (%p49_p1), [#allocation12], 4294964176  ;;  %v2333_v0 = vld [vmem:[#allocation5 + $0x174] sm:$0xf]  ;;  %v1891_v1 = vld [vmem:[#allocation5 + $0x178] sm:$0xf0] }
  0x4e   : > { %v2331_v2 = vld [vmem:[#allocation5 + $0x164] sm:$0xf]  ;;  %v1894_v3 = vor.u32 %v2333_v0, %v1891_v1  ;;  %v1883_v4 = vld [vmem:[#allocation5 + $0x168] sm:$0xf0]  ;;  %v2329_v6 = vld [vmem:[#allocation5 + $0x154] sm:$0xf] }
  0x4f   : > { %v1886_v5 = vor.u32 %v2331_v2, %v1883_v4  ;;  %v1875_v7 = vld [vmem:[#allocation5 + $0x158] sm:$0xf0]  ;;  %v2327_v11 = vld [vmem:[#allocation5 + $0x144] sm:$0xf]  ;;  %v1867_v12 = vld [vmem:[#allocation5 + $0x148] sm:$0xf0] }
  0x50   : > { %571 = vmatpush.bf16.msra.mxu1 %v1894_v3  ;;  %v2342_v8 = vld [vmem:[#allocation10 + $0xb8] sm:$0xff]  ;;  %v1878_v9 = vor.u32 %v2329_v6, %v1875_v7  ;;  %v2341_v10 = vld [vmem:[#allocation10 + $0xb0] sm:$0xff]  ;;  %v2340_v15 = vld [vmem:[#allocation10 + $0xa8] sm:$0xff]  ;;  %v1870_v16 = vor.u32 %v2327_v11, %v1867_v12  ;;  %s3152_s15 = scalar_lea.vmem [#allocation14], %s2440_s2  ;;  %s2441_s2 = smul.u32 24, %s2967_s16 }
  0x51   : > { %657 = vmatpush.bf16.msra.mxu2 %v2342_v8  ;;  %v2325_v13 = vld [vmem:[#allocation5 + $0x134] sm:$0xf]  ;;  %v1859_v14 = vld [vmem:[#allocation5 + $0x138] sm:$0xf0]  ;;  %v2339_v18 = vld [vmem:[#allocation10 + $0xa0] sm:$0xff]  ;;  %s1683_s27 = sshll.u32 %s3152_s15, 4  ;;  %s1684_s27 = int_to_ptr.vmem [resolvable:$true] %s1683_s27 }
  0x52   : > { %v1862_v17 = vor.u32 %v2325_v13, %v1859_v14  ;;  %v2323_v19 = vld [vmem:[#allocation5 + $0x124] sm:$0xf]  ;;  %v1851_v20 = vld [vmem:[#allocation5 + $0x128] sm:$0xf0]  ;;  %v2321_v23 = vld [vmem:[#allocation5 + $0x114] sm:$0xf]  ;;  %s1681_s17 = scalar_lea.hbm %s3208_s9, %s2441_s2 }
  0x53   : > { %v1854_v21 = vor.u32 %v2323_v19, %v1851_v20  ;;  %v2338_v22 = vld [vmem:[#allocation10 + $0x98] sm:$0xff]  ;;  %v2337_v26 = vld [vmem:[#allocation10 + $0x90] sm:$0xff]  ;;  %v1835_v28 = vld [vmem:[#allocation5 + $0x108] sm:$0xf0]  ;;  %s1685_s23 = sshll.u32 %s1681_s17, 4  ;;  %s1670_s19 = scalar_lea.sflag [#allocation4], %s3079_s5  ;;  %s1686_s23 = int_to_ptr.hbm [resolvable:$true] %s1685_s23 }
  0x54   : > { %572 = vmatpush.bf16.msra.mxu1 %v1886_v5  ;;  %v1843_v24 = vld [vmem:[#allocation5 + $0x118] sm:$0xf0]  ;;  %v2319_v27 = vld [vmem:[#allocation5 + $0x104] sm:$0xf]  ;;  %v2336_v31 = vld [vmem:[#allocation10 + $0x88] sm:$0xff]  ;;  %s2810_s13 = sshra.s32 %s1686_s23, 4  ;;  %s2811_s13 = int_to_ptr.hbm [resolvable:$true] %s2810_s13 }
  0x55   : > { %658 = vmatpush.bf16.msra.mxu2 %v2341_v10  ;;  %v1846_v25 = vor.u32 %v2321_v23, %v1843_v24  ;;  %v1838_v29 = vor.u32 %v2319_v27, %v1835_v28  ;;  %v1830_v30 = vld [vmem:[%s3085_s6 + $0x10] sm:$0xff]  ;;  %v2373_v32 = vld [vmem:[#allocation5 + $0x74] sm:$0xf]  ;;  %v2045_v38 = vld [vmem:[#allocation5 + $0x68] sm:$0xf0]  ;;  %s2812_s16 = scalar_lea.hbm %s2811_s13, 24  ;;  %p2817_p12 = scmp.lt.s32.totalorder %s2811_s13, %s3208_s9 }
  0x56   : > { %v2053_v33 = vld [vmem:[#allocation5 + $0x78] sm:$0xf0]  ;;  %v3104_v34 = vpack.c.bf16 %v1830_v30, %v1830_v30  ;;  %v2335_v35 = vld [vmem:[#allocation10 + $0x80] sm:$0xff]  ;;  %v2369_v40 = vld [vmem:[#allocation5 + $0x54] sm:$0xf]  ;;  %p2813_p1 = scmp.ne.s32.totalorder %s2811_s13, %s2812_s16  ;;  %s2816_s22 = scalar_lea.hbm %s3208_s9, 48 }
  0x57   : > { %v2056_v36 = vor.u32 %v2373_v32, %v2053_v33  ;;  %v2371_v37 = vld [vmem:[#allocation5 + $0x64] sm:$0xf]  ;;  %v2037_v41 = vld [vmem:[#allocation5 + $0x58] sm:$0xf0]  ;;  %v2029_v44 = vld [vmem:[#allocation5 + $0x48] sm:$0xf0]  ;;  %p2818_p7 = scmp.lt.s32.totalorder %s2816_s22, %s2812_s16 }
  0x58   : > { %573 = vmatpush.bf16.msra.mxu1 %v1878_v9  ;;  %v2048_v39 = vor.u32 %v2371_v37, %v2045_v38  ;;  %v2040_v42 = vor.u32 %v2369_v40, %v2037_v41  ;;  %v2367_v43 = vld [vmem:[#allocation5 + $0x44] sm:$0xf]  ;;  %v2365_v46 = vld [vmem:[#allocation5 + $0x34] sm:$0xf]  ;;  %v2021_v47 = vld [vmem:[#allocation5 + $0x38] sm:$0xf0]  ;;  %p2814_p3 = pnand %p2813_p1, %p3048_p4 }
  0x59   : > { %659 = vmatpush.bf16.msra.mxu2 %v2340_v15  ;;  %v2032_v45 = vor.u32 %v2367_v43, %v2029_v44  ;;  %v2024_v48 = vor.u32 %v2365_v46, %v2021_v47  ;;  %v2363_v49 = vld [vmem:[#allocation5 + $0x24] sm:$0xf]  ;;  %v2013_v50 = vld [vmem:[#allocation5 + $0x28] sm:$0xf0]  ;;  %v2361_v52 = vld [vmem:[#allocation5 + $0x14] sm:$0xf]  ;;  %p2819_p8 = por %p2818_p7, %p2817_p12 }
  0x5a   : > { %v2016_v51 = vor.u32 %v2363_v49, %v2013_v50  ;;  %v2005_v53 = vld [vmem:[#allocation5 + $0x18] sm:$0xf0]  ;;  %v2359_v55 = vld [vmem:[#allocation5 + $0x4] sm:$0xf]  ;;  %v1997_v56 = vld [vmem:[#allocation5 + $0x8] sm:$0xf0]  ;;  %p2815_p5 = pneg %p2814_p3 }
  0x5b   : > { %v2008_v54 = vor.u32 %v2361_v52, %v2005_v53  ;;  %v2000_v57 = vor.u32 %v2359_v55, %v1997_v56  ;;  %v2350_v58 = vld [vmem:[#allocation13 + $0xb8] sm:$0xff]  ;;  %v2349_v59 = vld [vmem:[#allocation13 + $0xb0] sm:$0xff]  ;;  %v1889_v60 = vld [vmem:[#allocation5 + $0x170] sm:$0xf] }
  0x5c   : > { %574 = vmatpush.bf16.msra.mxu1 %v1870_v16  ;;  %742 = vmatpush.bf16.msra.mxu3 %v2350_v58  ;;  %v2334_v61 = vld [vmem:[#allocation5 + $0x174] sm:$0xf0]  ;;  %v3107_v62 = vld [vmem:[#allocation7 + $0x4] sm:$0x3]  ;;  %v1881_v0 = vld [vmem:[#allocation5 + $0x160] sm:$0xf]  ;;  %p2820_p9 = pnand %p2819_p8, %p2815_p5 }
  0x5d   : > { %660 = vmatpush.bf16.msra.mxu2 %v2339_v18  ;;  %v1890_v63 = vor.u32 %v2334_v61, %v1889_v60  ;;  %v2332_v1 = vld [vmem:[#allocation5 + $0x164] sm:$0xf0]  ;;  %v475_v3 = vperm.slane %v3107_v62, 1  ;;  %v2348_v4 = vld [vmem:[#allocation13 + $0xa8] sm:$0xff]  ;;  %v1865_v11 = vld [vmem:[#allocation5 + $0x140] sm:$0xf] }
  0x5e   : > { %v1882_v2 = vor.u32 %v2332_v1, %v1881_v0  ;;  %v1873_v5 = vld [vmem:[#allocation5 + $0x150] sm:$0xf]  ;;  %v2330_v6 = vld [vmem:[#allocation5 + $0x154] sm:$0xf0]  ;;  %v2328_v12 = vld [vmem:[#allocation5 + $0x144] sm:$0xf0] }
  0x5f   : > { %558 = vmatpush.bf16.msra.mxu0 %v1890_v63  ;;  %v1874_v8 = vor.u32 %v2330_v6, %v1873_v5  ;;  %v2347_v10 = vld [vmem:[#allocation13 + $0xa0] sm:$0xff]  ;;  %v1866_v14 = vor.u32 %v2328_v12, %v1865_v11  ;;  %v2346_v16 = vld [vmem:[#allocation13 + $0x98] sm:$0xff]  ;;  %v2326_v18 = vld [vmem:[#allocation5 + $0x134] sm:$0xf0] }
  0x60   : > { %575 = vmatpush.bf16.msra.mxu1 %v1862_v17  ;;  %743 = vmatpush.bf16.msra.mxu3 %v2349_v59  ;;  %v1857_v17 = vld [vmem:[#allocation5 + $0x130] sm:$0xf]  ;;  %v2324_v23 = vld [vmem:[#allocation5 + $0x124] sm:$0xf0]  ;;  %v2322_v27 = vld [vmem:[#allocation5 + $0x114] sm:$0xf0] }
  0x61   : > { %661 = vmatpush.bf16.msra.mxu2 %v2338_v22  ;;  %v1858_v20 = vor.u32 %v2326_v18, %v1857_v17  ;;  %v1849_v22 = vld [vmem:[#allocation5 + $0x120] sm:$0xf]  ;;  %v856_v28 = vld [vmem:[%s3085_s6] sm:$0xff]  ;;  %v2411_v52 = vld [vmem:[#allocation5 + $0xe4] sm:$0xf] }
  0x62   : > { %v1850_v24 = vor.u32 %v2324_v23, %v1849_v22  ;;  %v2343_v30 = vld [vmem:[#allocation13 + $0x80] sm:$0xff]  ;;  %v3111_v32 = vpack.c.bf16 %v856_v28, %v856_v28  ;;  %v2381_v33 = vld [vmem:[#allocation10 + $0x30] sm:$0xff]  ;;  %v2378_v37 = vld [vmem:[#allocation10 + $0x18] sm:$0xff] }
  0x63   : > { %559 = vmatpush.bf16.msra.mxu0 %v1882_v2  ;;  %v2377_v38 = vld [vmem:[#allocation10 + $0x10] sm:$0xff]  ;;  %v2320_v40 = vld [vmem:[#allocation5 + $0x104] sm:$0xf0]  ;;  %v2206_v53 = vld [vmem:[#allocation5 + $0xe8] sm:$0xf0] }
  0x64   : > { %576 = vmatpush.bf16.msra.mxu1 %v1854_v21  ;;  %744 = vmatpush.bf16.msra.mxu3 %v2348_v4  ;;  %v2345_v21 = vld [vmem:[#allocation13 + $0x90] sm:$0xff]  ;;  %v2375_v43 = vld [vmem:[#allocation10] sm:$0xff]  ;;  %v2413_v47 = vld [vmem:[#allocation5 + $0xf4] sm:$0xf]  ;;  %v2209_v56 = vor.u32 %v2411_v52, %v2206_v53 }
  0x65   : > { %662 = vmatpush.bf16.msra.mxu2 %v2337_v26  ;;  %v1841_v26 = vld [vmem:[#allocation5 + $0x110] sm:$0xf]  ;;  %v2565_v44 = vld [vmem:[#allocation11 + $0x2] ss:$0 sm:$0xff]  ;;  %v2198_v58 = vld [vmem:[#allocation5 + $0xd8] sm:$0xf0] }
  0x66   : > { %v3115_v59 = vld [vmem:[#allocation7] sm:$0x3]  ;;  %v2051_v60 = vld [vmem:[#allocation5 + $0x70] sm:$0xf]  ;;  %v2374_v61 = vld [vmem:[#allocation5 + $0x74] sm:$0xf0] }
  0x67   : > { %560 = vmatpush.bf16.msra.mxu0 %v1874_v8  ;;  %v2052_v63 = vor.u32 %v2374_v61, %v2051_v60  ;;  %v877_v1 = vperm.slane %v3115_v59, 1  ;;  %v2407_v2 = vld [vmem:[#allocation5 + $0xc4] sm:$0xf]  ;;  %v2356_v4 = vld [vmem:[#allocation8 + $0xa8] sm:$0xff]  ;;  %v2043_v5 = vld [vmem:[#allocation5 + $0x60] sm:$0xf] }
  0x68   : > { %577 = vmatpush.bf16.msra.mxu1 %v1846_v25  ;;  %745 = vmatpush.bf16.msra.mxu3 %v2347_v10  ;;  %v2344_v25 = vld [vmem:[#allocation13 + $0x88] sm:$0xff]  ;;  %v2372_v6 = vld [vmem:[#allocation5 + $0x64] sm:$0xf0]  ;;  %v2182_v12 = vld [vmem:[#allocation5 + $0xb8] sm:$0xf0] }
  0x69   : > { %663 = vmatpush.bf16.msra.mxu2 %v2336_v31  ;;  %v2382_v31 = vld [vmem:[#allocation10 + $0x38] sm:$0xff]  ;;  %v2405_v11 = vld [vmem:[#allocation5 + $0xb4] sm:$0xf]  ;;  %v2174_v18 = vld [vmem:[#allocation5 + $0xa8] sm:$0xf0] }
  0x6a   : > { %v2403_v17 = vld [vmem:[#allocation5 + $0xa4] sm:$0xf]  ;;  %v2401_v22 = vld [vmem:[#allocation5 + $0x94] sm:$0xf]  ;;  %v2166_v23 = vld [vmem:[#allocation5 + $0x98] sm:$0xf0] }
  0x6b   : > { %561 = vmatpush.bf16.msra.mxu0 %v1866_v14  ;;  %v2352_v28 = vld [vmem:[#allocation8 + $0x88] sm:$0xff]  ;;  %v2366_v53 = vld [vmem:[#allocation5 + $0x34] sm:$0xf0] }
  0x6c   : > { %578 = vmatpush.bf16.msra.mxu1 %v1838_v29  ;;  %746 = vmatpush.bf16.msra.mxu3 %v2346_v16  ;;  %v1842_v29 = vor.u32 %v2322_v27, %v1841_v26  ;;  %v2399_v26 = vld [vmem:[#allocation5 + $0x84] sm:$0xf]  ;;  %v2158_v27 = vld [vmem:[#allocation5 + $0x88] sm:$0xf0]  ;;  %v2019_v52 = vld [vmem:[#allocation5 + $0x30] sm:$0xf] }
  0x6d   : > { %664 = vmatpush.bf16.msra.mxu2 %v2335_v35  ;;  %v2380_v35 = vld [vmem:[#allocation10 + $0x28] sm:$0xff] }
  0x6e   : > { %v2383_v60 = vld [vmem:[#allocation13] sm:$0xff] }
  0x6f   : > { %579 = vmatmul.bf16.vlgmr.msra.gmra.mxu1 %v3104_v34  ;;  %562 = vmatpush.bf16.msra.mxu0 %v1858_v20  ;;  %v2003_v61 = vld [vmem:[#allocation5 + $0x10] sm:$0xf] }
  0x70   : > { %747 = vmatpush.bf16.msra.mxu3 %v2345_v21  ;;  %960 = vmatpush.bf16.msrb.mxu1 %v2052_v63  ;;  %v2177_v21 = vor.u32 %v2403_v17, %v2174_v18  ;;  %v2362_v63 = vld [vmem:[#allocation5 + $0x14] sm:$0xf0] }
  0x71   : > { %973 = vmatpush.bf16.msrb.mxu2 %v2056_v36  ;;  %v2379_v36 = vld [vmem:[#allocation10 + $0x20] sm:$0xff] }
  0x73   : > { %563 = vmatpush.bf16.msra.mxu0 %v1850_v24  ;;  %v2353_v24 = vld [vmem:[#allocation8 + $0x90] sm:$0xff] }
  0x74   : > { %748 = vmatpush.bf16.msra.mxu3 %v2344_v25  ;;  %v2169_v25 = vor.u32 %v2401_v22, %v2166_v23  ;;  %v3127_v22 = vld [vmem:[#allocation7 + $0x2] sm:$0x3] }
  0x75   : > { %974 = vmatpush.bf16.msrb.mxu2 %v2048_v39  ;;  %v1833_v39 = vld [vmem:[#allocation5 + $0x100] sm:$0xf]  ;;  %v1282_v23 = vperm.slane %v3127_v22, 1 }
  0x76   : > { %v1834_v41 = vor.u32 %v2320_v40, %v1833_v39  ;;  %v2035_v39 = vld [vmem:[#allocation5 + $0x50] sm:$0xf]  ;;  %v2370_v40 = vld [vmem:[#allocation5 + $0x54] sm:$0xf0] }
  0x77   : > { %564 = vmatpush.bf16.msra.mxu0 %v1842_v29  ;;  %v2161_v29 = vor.u32 %v2399_v26, %v2158_v27 }
  0x78   : > { %749 = vmatpush.bf16.msra.mxu3 %v2343_v30  ;;  %v2153_v30 = vld [vmem:[%s3085_s6 + $0x8] sm:$0xff] }
  0x79   : > { %975 = vmatpush.bf16.msrb.mxu2 %v2040_v42  ;;  %v2376_v42 = vld [vmem:[#allocation10 + $0x8] sm:$0xff] }
  0x7b   : > { %565 = vmatpush.bf16.msra.mxu0 %v1834_v41  ;;  %v2386_v41 = vld [vmem:[#allocation13 + $0x18] sm:$0xff] }
  0x7c   : > { %1057 = vmatpush.bf16.msrb.mxu3 %v2382_v31  ;;  %v2351_v31 = vld [vmem:[#allocation8 + $0x80] sm:$0xff] }
  0x7d   : > { %976 = vmatpush.bf16.msrb.mxu2 %v2032_v45 }
  0x7e   : > { %566 = vmatmul.bf16.vlgmr.msra.gmra.mxu0 %v3104_v34  ;;  %v2357_v34 = vld [vmem:[#allocation8 + $0xb0] sm:$0xff] }
  0x80   : > { %1058 = vmatpush.bf16.msrb.mxu3 %v2381_v33  ;;  %v2390_v33 = vld [vmem:[#allocation13 + $0x38] sm:$0xff] }
  0x81   : > { %977 = vmatpush.bf16.msrb.mxu2 %v2024_v48  ;;  %v2214_v48 = vld [vmem:[#allocation5 + $0xf8] sm:$0xf0] }
  0x82   : > { %v2217_v50 = vor.u32 %v2413_v47, %v2214_v48  ;;  %v474_v47 = vperm.slane %v3107_v62, 0  ;;  %v2004_v62 = vor.u32 %v2362_v63, %v2003_v61  ;;  %v2570_v61 = vld [vmem:[#allocation11 + $0x1] ss:$0 sm:$0xff] }
  0x84   : > { %1059 = vmatpush.bf16.msrb.mxu3 %v2380_v35  ;;  %v3119_v35 = vpack.c.bf16 %v2153_v30, %v2153_v30  ;;  %v2395_v30 = vld [vmem:[#allocation8 + $0x20] sm:$0xff] }
  0x85   : > { %978 = vmatpush.bf16.msrb.mxu2 %v2016_v51 }
  0x88   : > { %1060 = vmatpush.bf16.msrb.mxu3 %v2379_v36  ;;  %v2389_v36 = vld [vmem:[#allocation13 + $0x30] sm:$0xff] }
  0x89   : > { %979 = vmatpush.bf16.msrb.mxu2 %v2008_v54  ;;  %v2358_v54 = vld [vmem:[#allocation8 + $0xb8] sm:$0xff] }
  0x8a   : > { %835 = vmatpush.bf16.msrb.mxu0 %v2358_v54  ;;  %v2020_v54 = vor.u32 %v2366_v53, %v2019_v52  ;;  %v2426_v53 = vld [vmem:[#allocation13 + $0x58] sm:$0xff] }
  0x8c   : > { %1061 = vmatpush.bf16.msrb.mxu3 %v2378_v37  ;;  %v2388_v37 = vld [vmem:[#allocation13 + $0x28] sm:$0xff] }
  0x8d   : > { %980 = vmatpush.bf16.msrb.mxu2 %v2000_v57  ;;  %v2409_v57 = vld [vmem:[#allocation5 + $0xd4] sm:$0xf] }
  0x8e   : > { %v2201_v0 = vor.u32 %v2409_v57, %v2198_v58  ;;  %836 = vmatpush.bf16.msrb.mxu0 %v2357_v34  ;;  %v2011_v57 = vld [vmem:[#allocation5 + $0x20] sm:$0xf]  ;;  %v2364_v58 = vld [vmem:[#allocation5 + $0x24] sm:$0xf0] }
  0x8f   : > { %v2012_v34 = vor.u32 %v2364_v58, %v2011_v57  ;;  %v2569_v57 = vld [vmem:[%s3207_s8] ss:$0 sm:$0xff] }
  0x90   : > { %1062 = vmatpush.bf16.msrb.mxu3 %v2377_v38  ;;  %v2387_v38 = vld [vmem:[#allocation13 + $0x20] sm:$0xff] }
  0x92   : > { %837 = vmatpush.bf16.msrb.mxu0 %v2356_v4 }
  0x94   : > { %1063 = vmatpush.bf16.msrb.mxu3 %v2376_v42  ;;  %v2036_v42 = vor.u32 %v2370_v40, %v2035_v39  ;;  %v2391_v39 = vld [vmem:[#allocation8] sm:$0xff] }
  0x95   : > { %v2430_v40 = vld [vmem:[#allocation13 + $0x78] sm:$0xff] }
  0x98   : > { %1064 = vmatpush.bf16.msrb.mxu3 %v2375_v43  ;;  %v2027_v43 = vld [vmem:[#allocation5 + $0x40] sm:$0xf] }
  0xec   : > { %v580_v7 = vpop.f32.mrf.mxu1 }
  0xed   : > { %v581_v9 = vadd.f32 %v580_v7, %v475_v3  ;;  %v2190_v3 = vld [vmem:[#allocation5 + $0xc8] sm:$0xf0]  ;;  %v2044_v7 = vor.u32 %v2372_v6, %v2043_v5 }
  0xee   : > { %v2420_v5 = vld [vmem:[#allocation10 + $0x68] sm:$0xff]  ;;  %v2419_v6 = vld [vmem:[#allocation10 + $0x60] sm:$0xff] }
  0xef   : > { %v585_v13 = vmax.f32 %v581_v9, 0.0  ;;  %v2193_v9 = vor.u32 %v2407_v2, %v2190_v3  ;;  %961 = vmatpush.bf16.msrb.mxu1 %v2044_v7  ;;  %v2360_v2 = vld [vmem:[#allocation5 + $0x4] sm:$0xf0]  ;;  %v2421_v3 = vld [vmem:[#allocation10 + $0x70] sm:$0xff]  ;;  %v2418_v7 = vld [vmem:[#allocation10 + $0x58] sm:$0xff] }
  0xf1   : > { %v605_v15 = vpack.c.bf16 %v585_v13, %v585_v13  ;;  %v2355_v13 = vld [vmem:[#allocation8 + $0xa0] sm:$0xff] }
  0xf2   : > { %838 = vmatpush.bf16.msrb.mxu0 %v2355_v13  ;;  %v2415_v13 = vld [vmem:[#allocation10 + $0x40] sm:$0xff] }
  0xf3   : > { %665 = vmatmul.bf16.vlgmr.msra.gmra.mxu2 %v605_v15  ;;  %v2185_v15 = vor.u32 %v2405_v11, %v2182_v12  ;;  %962 = vmatpush.bf16.msrb.mxu1 %v2036_v42 }
  0xf4   : > { %v582_v19 = vpop.f32.mrf.mxu1 }
  0xf5   : > { %v2354_v19 = vld [vmem:[#allocation8 + $0x98] sm:$0xff] }
  0xf6   : > { %839 = vmatpush.bf16.msrb.mxu0 %v2354_v19 }
  0xfa   : > { %840 = vmatpush.bf16.msrb.mxu0 %v2353_v24 }
  0xfb   : > { %v567_v48 = vpop.f32.mrf.mxu0 }
  0xfe   : > { %841 = vmatpush.bf16.msrb.mxu0 %v2352_v28 }
 0x102   : > { %842 = vmatpush.bf16.msrb.mxu0 %v2351_v31  ;;  %v2394_v31 = vld [vmem:[#allocation8 + $0x18] sm:$0xff] }
 0x103   : > { %981 = vmatmul.bf16.vlgmr.msrb.gmra.mxu2 %v3111_v32 }
 0x106   : > { %1140 = vmatpush.bf16.msra.mxu0 %v2390_v33 }
 0x10a   : > { %1141 = vmatpush.bf16.msra.mxu0 %v2389_v36  ;;  %v2393_v36 = vld [vmem:[#allocation8 + $0x10] sm:$0xff] }
 0x10e   : > { %1142 = vmatpush.bf16.msra.mxu0 %v2388_v37  ;;  %v2392_v37 = vld [vmem:[#allocation8 + $0x8] sm:$0xff] }
 0x112   : > { %1143 = vmatpush.bf16.msra.mxu0 %v2387_v38 }
 0x116   : > { %1144 = vmatpush.bf16.msra.mxu0 %v2386_v41  ;;  %v876_v41 = vperm.slane %v3115_v59, 0  ;;  %v2425_v59 = vld [vmem:[#allocation13 + $0x50] sm:$0xff] }
 0x176   : > { %v666_v45 = vpop.f32.mrf.mxu2 }
 0x177   : > { %v667_v46 = vadd.f32 %v2565_v44, %v666_v45  ;;  %v2368_v44 = vld [vmem:[#allocation5 + $0x44] sm:$0xf0]  ;;  %v2385_v45 = vld [vmem:[#allocation13 + $0x10] sm:$0xff] }
 0x178   : > { %1145 = vmatpush.bf16.msra.mxu0 %v2385_v45 }
 0x179   : > { %v670_v49 = vmax.f32 %v667_v46, 0.0  ;;  %v2028_v46 = vor.u32 %v2368_v44, %v2027_v43  ;;  %v2429_v43 = vld [vmem:[#allocation13 + $0x70] sm:$0xff] }
 0x17b   : > { %v671_v51 = vpack.c.bf16 %v670_v49, %v670_v49  ;;  %963 = vmatpush.bf16.msrb.mxu1 %v2028_v46  ;;  %v568_v49 = vadd.f32 %v567_v48, %v474_v47  ;;  %v2428_v47 = vld [vmem:[#allocation13 + $0x68] sm:$0xff] }
 0x17d   : > { %750 = vmatmul.bf16.vlgmr.msra.gmra.mxu3 %v671_v51 }
 0x17e   : > { %v668_v55 = vpop.f32.mrf.mxu2  ;;  %1378 = vmatpush.bf16.msra.mxu3 %v2217_v50  ;;  %v584_v50 = vmax.f32 %v568_v49, 0.0 }
 0x17f   : > { %v569_v55 = vpop.f32.mrf.mxu0  ;;  %964 = vmatpush.bf16.msrb.mxu1 %v2020_v54 }
 0x180   : > { %v783_v51 = vpack.c.bf16 %v584_v50, %v584_v50  ;;  %v2427_v50 = vld [vmem:[#allocation13 + $0x60] sm:$0xff]  ;;  %v2424_v55 = vld [vmem:[#allocation13 + $0x48] sm:$0xff] }
 0x182   : > { %1379 = vmatpush.bf16.msra.mxu3 %v2209_v56  ;;  %843 = vmatmul.bf16.vlgmr.msrb.gmra.mxu0 %v783_v51  ;;  %v2384_v56 = vld [vmem:[#allocation13 + $0x8] sm:$0xff] }
 0x183   : > { %1146 = vmatpush.bf16.msra.mxu0 %v2384_v56  ;;  %965 = vmatpush.bf16.msrb.mxu1 %v2012_v34  ;;  %v2423_v56 = vld [vmem:[#allocation13 + $0x40] sm:$0xff] }
 0x186   : > { %v982_v8 = vpop.f32.mrf.mxu2  ;;  %1380 = vmatpush.bf16.msra.mxu3 %v2201_v0  ;;  %v2422_v0 = vld [vmem:[#allocation10 + $0x78] sm:$0xff] }
 0x187   : > { %v983_v10 = vadd.f32 %v982_v8, %v877_v1  ;;  %1147 = vmatpush.bf16.msra.mxu0 %v2383_v60  ;;  %966 = vmatpush.bf16.msrb.mxu1 %v2004_v62  ;;  %v1995_v1 = vld [vmem:[#allocation5] sm:$0xf]  ;;  %v2417_v8 = vld [vmem:[#allocation10 + $0x50] sm:$0xff] }
 0x188   : > { %v1996_v4 = vor.u32 %v2360_v2, %v1995_v1 }
 0x189   : > { %v987_v14 = vmax.f32 %v983_v10, 0.0  ;;  %v2416_v10 = vld [vmem:[#allocation10 + $0x48] sm:$0xff] }
 0x18a   : > { %1381 = vmatpush.bf16.msra.mxu3 %v2193_v9  ;;  %v2566_v9 = vld [vmem:[%s3207_s8 + $0x2] ss:$0 sm:$0xff] }
 0x18b   : > { %v1005_v16 = vpack.c.bf16 %v987_v14, %v987_v14  ;;  %1464 = vmatpush.bf16.msrb.mxu0 %v2422_v0  ;;  %967 = vmatpush.bf16.msrb.mxu1 %v1996_v4 }
 0x18d   : > { %1065 = vmatmul.bf16.vlgmr.msrb.gmra.mxu3 %v1005_v16  ;;  %v2567_v16 = vld [vmem:[#allocation11] ss:$0 sm:$0xff] }
 0x18e   : > { %v984_v20 = vpop.f32.mrf.mxu2  ;;  %1382 = vmatpush.bf16.msra.mxu3 %v2185_v15  ;;  %968 = vmatmul.bf16.vlgmr.msrb.gmra.mxu1 %v3111_v32  ;;  %v2398_v32 = vld [vmem:[#allocation8 + $0x38] sm:$0xff]  ;;  %v2397_v15 = vld [vmem:[#allocation8 + $0x30] sm:$0xff] }
 0x18f   : > { %1465 = vmatpush.bf16.msrb.mxu0 %v2421_v3  ;;  %1237 = vmatpush.bf16.msra.mxu1 %v2398_v32 }
 0x192   : > { %1383 = vmatpush.bf16.msra.mxu3 %v2177_v21 }
 0x193   : > { %1466 = vmatpush.bf16.msrb.mxu0 %v2420_v5  ;;  %1238 = vmatpush.bf16.msra.mxu1 %v2397_v15  ;;  %v2196_v15 = vld [vmem:[#allocation5 + $0xd0] sm:$0xf] }
 0x196   : > { %1384 = vmatpush.bf16.msra.mxu3 %v2169_v25 }
 0x197   : > { %1467 = vmatpush.bf16.msrb.mxu0 %v2419_v6 }
 0x19a   : > { %1385 = vmatpush.bf16.msra.mxu3 %v2161_v29  ;;  %v2396_v29 = vld [vmem:[#allocation8 + $0x28] sm:$0xff] }
 0x19b   : > { %1468 = vmatpush.bf16.msrb.mxu0 %v2418_v7  ;;  %1239 = vmatpush.bf16.msra.mxu1 %v2396_v29  ;;  %v2404_v29 = vld [vmem:[#allocation5 + $0xa4] sm:$0xf0] }
 0x19d   : > { %1386 = vmatmul.bf16.vlgmr.msra.gmra.mxu3 %v3119_v35 }
 0x19f   : > { %1469 = vmatpush.bf16.msrb.mxu0 %v2417_v8  ;;  %1240 = vmatpush.bf16.msra.mxu1 %v2395_v30  ;;  %v2891_v8 = vmov 0  }
 0x1a0   : > { %2560 = vset.pattern.permute.xlu0 %v2891_v8  ;;  %2562 = vset.pattern.permute.xlu2 %v2891_v8 }
 0x1a3   : > { %1470 = vmatpush.bf16.msrb.mxu0 %v2416_v10  ;;  %1241 = vmatpush.bf16.msra.mxu1 %v2394_v31  ;;  %v2212_v10 = vld [vmem:[#allocation5 + $0xf0] sm:$0xf] }
 0x1a7   : > { %1471 = vmatpush.bf16.msrb.mxu0 %v2415_v13  ;;  %1242 = vmatpush.bf16.msra.mxu1 %v2393_v36 }
 0x1ab   : > { %1243 = vmatpush.bf16.msra.mxu1 %v2392_v37  ;;  %v2164_v37 = vld [vmem:[#allocation5 + $0x90] sm:$0xf] }
 0x1af   : > { %1244 = vmatpush.bf16.msra.mxu1 %v2391_v39 }
 0x1b3   : > { %1549 = vmatpush.bf16.msrb.mxu1 %v2430_v40  ;;  %v2156_v40 = vld [vmem:[#allocation5 + $0x80] sm:$0xf] }
 0x1b7   : > { %1550 = vmatpush.bf16.msrb.mxu1 %v2429_v43 }
 0x1bb   : > { %1551 = vmatpush.bf16.msrb.mxu1 %v2428_v47 }
 0x1bf   : > { %1552 = vmatpush.bf16.msrb.mxu1 %v2427_v50 }
 0x1c3   : > { %1553 = vmatpush.bf16.msrb.mxu1 %v2426_v53  ;;  %v2437_v53 = vld [vmem:[#allocation8 + $0x70] sm:$0xff] }
 0x1c7   : > { %1554 = vmatpush.bf16.msrb.mxu1 %v2425_v59  ;;  %v2436_v59 = vld [vmem:[#allocation8 + $0x68] sm:$0xff] }
 0x1cb   : > { %1555 = vmatpush.bf16.msrb.mxu1 %v2424_v55 }
 0x1cf   : > { %1556 = vmatpush.bf16.msrb.mxu1 %v2423_v56  ;;  %v2435_v56 = vld [vmem:[#allocation8 + $0x60] sm:$0xff] }
 0x1ff   : > { %v3130_v33 = vpop.f32.mrf.mxu0 }
 0x200   : > { %v751_v11 = vpop.f32.mrf.mxu3 }
 0x201   : > { %v752_v12 = vadd.f32 %v2566_v9, %v751_v11  ;;  %v2414_v11 = vld [vmem:[#allocation5 + $0xf4] sm:$0xf0] }
 0x202   : > { %v2213_v13 = vor.u32 %v2414_v11, %v2212_v10 }
 0x203   : > { %755 = vmax.xlane.f32.xlu1 %v752_v12 }
 0x204   : > { %1365 = vmatpush.bf16.msra.mxu2 %v2213_v13 }
 0x207   : > { %v846_v38 = vpop.f32.mrf.mxu0 }
 0x208   : > { %v753_v14 = vpop.f32.mrf.mxu3  ;;  %v2402_v38 = vld [vmem:[#allocation5 + $0x94] sm:$0xf0] }
 0x209   : > { %v2412_v14 = vld [vmem:[#allocation5 + $0xe4] sm:$0xf0]  ;;  %v2165_v39 = vor.u32 %v2402_v38, %v2164_v37 }
 0x20b   : > { %v969_v42 = vpop.f32.mrf.mxu1 }
 0x20c   : > { %v970_v44 = vadd.f32 %v969_v42, %v876_v41  ;;  %v2400_v41 = vld [vmem:[#allocation5 + $0x84] sm:$0xf0] }
 0x20d   : > { %v2157_v43 = vor.u32 %v2400_v41, %v2156_v40 }
 0x20e   : > { %v986_v45 = vmax.f32 %v970_v44, 0.0 }
 0x210   : > { %v1066_v17 = vpop.f32.mrf.mxu3  ;;  %v1185_v46 = vpack.c.bf16 %v986_v45, %v986_v45  ;;  %v2892_v45 = vmov 1  }
 0x211   : > { %v1067_v18 = vadd.f32 %v2567_v16, %v1066_v17  ;;  %v2410_v16 = vld [vmem:[#allocation5 + $0xd4] sm:$0xf0]  ;;  %v2572_v17 = vld [vmem:[%s3207_s8 + $0x1] ss:$0 sm:$0xff]  ;;  %2561 = vset.pattern.permute.xlu1 %v2892_v45 }
 0x212   : > { %1245 = vmatmul.bf16.vlgmr.msra.gmra.mxu1 %v1185_v46 }
 0x213   : > { %v1070_v19 = vmax.f32 %v1067_v18, 0.0  ;;  %v971_v48 = vpop.f32.mrf.mxu1  ;;  %v2197_v18 = vor.u32 %v2410_v16, %v2196_v15 }
 0x215   : > { %v1071_v20 = vpack.c.bf16 %v1070_v19, %v1070_v19  ;;  %v2188_v19 = vld [vmem:[#allocation5 + $0xc0] sm:$0xf] }
 0x217   : > { %1148 = vmatmul.bf16.vlgmr.msra.gmra.mxu0 %v1071_v20  ;;  %v2408_v20 = vld [vmem:[#allocation5 + $0xc4] sm:$0xf0] }
 0x218   : > { %v1068_v21 = vpop.f32.mrf.mxu3 }
 0x220   : > { %v1387_v24 = vpop.f32.mrf.mxu3 }
 0x221   : > { %v1388_v25 = vadd.f32 %v1387_v24, %v1282_v23  ;;  %v2189_v24 = vor.u32 %v2408_v20, %v2188_v19 }
 0x223   : > { %v1392_v26 = vmax.f32 %v1388_v25, 0.0  ;;  %v2180_v25 = vld [vmem:[#allocation5 + $0xb0] sm:$0xf] }
 0x225   : > { %v1412_v27 = vpack.c.bf16 %v1392_v26, %v1392_v26  ;;  %v2406_v26 = vld [vmem:[#allocation5 + $0xb4] sm:$0xf0] }
 0x227   : > { %1472 = vmatmul.bf16.vlgmr.msrb.gmra.mxu0 %v1412_v27  ;;  %v2181_v27 = vor.u32 %v2406_v26, %v2180_v25 }
 0x228   : > { %v1389_v28 = vpop.f32.mrf.mxu3 }
 0x229   : > { %v2172_v28 = vld [vmem:[#allocation5 + $0xa0] sm:$0xf] }
 0x22a   : > { %v2173_v36 = vor.u32 %v2404_v29, %v2172_v28 }
 0x276   : > { %v756_v49 = vpop.xlane.xlu1 %755 }
 0x277   : > { %v757_v51 = vsub.f32 %v752_v12, %v756_v49  ;;  %v2204_v12 = vld [vmem:[#allocation5 + $0xe0] sm:$0xf] }
 0x278   : > { %v2205_v32 = vor.u32 %v2412_v14, %v2204_v12 }
 0x279   : > { %v758_v52 = vmul.f32 1.442695, %v757_v51 }
 0x27a   : > { %1366 = vmatpush.bf16.msra.mxu2 %v2205_v32 }
 0x27b   : > { %2574 = vpow2.f32 %v758_v52  ;;  %v2438_v52 = vld [vmem:[#allocation8 + $0x78] sm:$0xff] }
 0x27e   : > { %1367 = vmatpush.bf16.msra.mxu2 %v2197_v18 }
 0x281   : > { %v3133_v54 = vpop.eup %2574 }
 0x282   : > { %760 = vadd.xlane.f32.xlu2 %v3133_v54  ;;  %1368 = vmatpush.bf16.msra.mxu2 %v2189_v24 }
 0x286   : > { %1369 = vmatpush.bf16.msra.mxu2 %v2181_v27 }
 0x28a   : > { %1370 = vmatpush.bf16.msra.mxu2 %v2173_v36 }
 0x28e   : > { %1371 = vmatpush.bf16.msra.mxu2 %v2165_v39 }
 0x28f   : > { %v3139_v3 = vpop.f32.mrf.mxu1 }
 0x292   : > { %1372 = vmatpush.bf16.msra.mxu2 %v2157_v43 }
 0x294   : > { %v1149_v58 = vpop.f32.mrf.mxu0 }
 0x295   : > { %v1150_v34 = vadd.f32 %v2569_v57, %v1149_v58  ;;  %1373 = vmatmul.bf16.vlgmr.msra.gmra.mxu2 %v3119_v35  ;;  %v2568_v35 = vld [vmem:[%s3203_s4 + $0x2] ss:$0 sm:$0xff]  ;;  %v2434_v58 = vld [vmem:[#allocation8 + $0x58] sm:$0xff] }
 0x296   : > { %1648 = vmatpush.bf16.msrb.mxu2 %v2438_v52  ;;  %v845_v55 = vadd.f32 %v2568_v35, %v3130_v33 }
 0x297   : > { %1153 = vmax.xlane.f32.xlu0 %v1150_v34  ;;  %v1248_v4 = vpop.f32.mrf.mxu1 }
 0x298   : > { %v848_v57 = vmax.f32 %v845_v55, 0.0  ;;  %v2431_v4 = vld [vmem:[#allocation8 + $0x40] sm:$0xff] }
 0x29a   : > { %1649 = vmatpush.bf16.msrb.mxu2 %v2437_v53 }
 0x29c   : > { %v1151_v60 = vpop.f32.mrf.mxu0 }
 0x29e   : > { %1650 = vmatpush.bf16.msrb.mxu2 %v2436_v59 }
 0x2a2   : > { %1651 = vmatpush.bf16.msrb.mxu2 %v2435_v56 }
 0x2a4   : > { %v1473_v63 = vpop.f32.mrf.mxu0 }
 0x2a5   : > { %v1474_v62 = vadd.f32 %v2570_v61, %v1473_v63  ;;  %v2433_v61 = vld [vmem:[#allocation8 + $0x50] sm:$0xff]  ;;  %v2432_v63 = vld [vmem:[#allocation8 + $0x48] sm:$0xff] }
 0x2a6   : > { %1652 = vmatpush.bf16.msrb.mxu2 %v2434_v58 }
 0x2a7   : > { %v1477_v0 = vmax.f32 %v1474_v62, 0.0 }
 0x2a9   : > { %v1478_v1 = vpack.c.bf16 %v1477_v0, %v1477_v0  ;;  %v1281_v0 = vperm.slane %v3127_v22, 0 }
 0x2aa   : > { %1653 = vmatpush.bf16.msrb.mxu2 %v2433_v61 }
 0x2ab   : > { %1557 = vmatmul.bf16.vlgmr.msrb.gmra.mxu1 %v1478_v1 }
 0x2ac   : > { %v1475_v2 = vpop.f32.mrf.mxu0 }
 0x2ae   : > { %1654 = vmatpush.bf16.msrb.mxu2 %v2432_v63 }
 0x2b2   : > { %1655 = vmatpush.bf16.msrb.mxu2 %v2431_v4 }
 0x2f5   : > { %v761_v31 = vpop.xlane.xlu2 %760 }
 0x30a   : > { %v1154_v5 = vpop.xlane.xlu0 %1153 }
 0x30b   : > { %v1155_v6 = vsub.f32 %v1150_v34, %v1154_v5 }
 0x30d   : > { %v1156_v7 = vmul.f32 1.442695, %v1155_v6  ;;  %v2571_v6 = vld [vmem:[%s3203_s4] ss:$0 sm:$0xff] }
 0x30f   : > { %2576 = vpow2.f32 %v1156_v7 }
 0x310   : > { %2578 = vrcp.f32 %v761_v31 }
 0x315   : > { %v2577_v9 = vpop.eup %2576 }
 0x316   : > { %1158 = vadd.xlane.f32.xlu1 %v2577_v9  ;;  %v2579_v42 = vpop.eup %2578 }
 0x317   : > { %v763_v44 = vmul.f32 %v2579_v42, %v3133_v54 }
 0x318   : > { %v1374_v62 = vpop.f32.mrf.mxu2 }
 0x319   : > { %v1375_v1 = vadd.f32 %v1374_v62, %v1281_v0 }
 0x31b   : > { %v1391_v2 = vmax.f32 %v1375_v1, 0.0 }
 0x31d   : > { %v1596_v5 = vpack.c.bf16 %v1391_v2, %v1391_v2 }
 0x31f   : > { %1656 = vmatmul.bf16.vlgmr.msrb.gmra.mxu2 %v1596_v5 }
 0x320   : > { %v1376_v33 = vpop.f32.mrf.mxu2 }
 0x328   : > { %v1558_v21 = vpop.f32.mrf.mxu1 }
 0x329   : > { %v1559_v23 = vadd.f32 %v2572_v17, %v1558_v21 }
 0x32b   : > { %1562 = vmax.xlane.f32.xlu0 %v1559_v23 }
 0x330   : > { %v1560_v30 = vpop.f32.mrf.mxu1 }
 0x33f   : > { %851 = vperm.xlu0 %2560, %v763_v44  }
 0x389   : > { %v1159_v46 = vpop.xlane.xlu1 %1158 }
 0x38a   : > { %2580 = vrcp.f32 %v1159_v46 }
 0x390   : > { %v2581_v47 = vpop.eup %2580 }
 0x391   : > { %v1161_v48 = vmul.f32 %v2581_v47, %v2577_v9 }
 0x393   : > { %1164 = vperm.xlu1 %2561, %v1161_v48  }
 0x39b   : > { %2564 = vset.pattern.permute.xlu1 %v2891_v8  ;;  %v1247_v8 = vadd.f32 %v2571_v6, %v3139_v3  ;;  %v2573_v3 = vld [vmem:[%s3203_s4 + $0x1] ss:$0 sm:$0xff] }
 0x39d   : > { %v1250_v11 = vmax.f32 %v1247_v8, 0.0 }
 0x39e   : > { %v1563_v49 = vpop.xlane.xlu0 %1562 }
 0x39f   : > { %v1564_v50 = vsub.f32 %v1559_v23, %v1563_v49 }
 0x3a1   : > { %v1565_v51 = vmul.f32 1.442695, %v1564_v50 }
 0x3a2   : > { %v1657_v15 = vpop.f32.mrf.mxu2 }
 0x3a3   : > { %2582 = vpow2.f32 %v1565_v51  ;;  %v1658_v17 = vadd.f32 %v2573_v3, %v1657_v15 }
 0x3a5   : > { %v1661_v18 = vmax.f32 %v1658_v17, 0.0 }
 0x3a9   : > { %v2583_v54 = vpop.eup %2582 }
 0x3aa   : > { %1567 = vadd.xlane.f32.xlu2 %v2583_v54  ;;  %v1659_v16 = vpop.f32.mrf.mxu2 }
 0x3b1   : > { %v852_v34 = vpop.permute.xlu0 %851 }
 0x3b2   : > { %v854_v60 = vmul.f32 %v852_v34, %v848_v57 }
 0x3b4   : > { %855 = vst [vmem:[%s3152_s15 + $0x10] sm:$0xff] %v854_v60 }
 0x3c2   : > { %1252 = vperm.xlu2 %2562, %v1161_v48  }
 0x3ca   : > { %2563 = vset.pattern.permute.xlu2 %v2892_v45 }
 0x405   : > { %v1165_v9 = vpop.permute.xlu1 %1164 }
 0x406   : > { %v1167_v13 = vmul.f32 %v1165_v9, %v848_v57 }
 0x41d   : > { %v1568_v7 = vpop.xlane.xlu2 %1567 }
 0x41e   : > { %2584 = vrcp.f32 %v1568_v7 }
 0x424   : > { %v2585_v10 = vpop.eup %2584 }
 0x425   : > { %v1253_v22 = vpop.permute.xlu2 %1252  ;;  %v1570_v12 = vmul.f32 %v2585_v10, %v2583_v54 }
 0x426   : > { %v1255_v14 = vmul.f32 %v1253_v22, %v1250_v11 }
 0x427   : > { %1663 = vperm.xlu1 %2564, %v1570_v12   ;;  %1573 = vperm.xlu2 %2563, %v1570_v12  }
 0x428   : > { %v1256_v32 = vadd.f32 %v1255_v14, %v1167_v13 }
 0x42a   : > { %1257 = vst [vmem:[%s3152_s15] sm:$0xff] %v1256_v32 }
 0x481   : > { %v1574_v19 = vpop.permute.xlu2 %1573 }
 0x482   : > { %v1576_v21 = vmul.f32 %v1574_v19, %v848_v57 }
 0x499   : > { %v1664_v20 = vpop.permute.xlu1 %1663 }
 0x49a   : > { %v1666_v23 = vmul.f32 %v1664_v20, %v1661_v18 }
 0x49c   : > { %v1667_v24 = vadd.f32 %v1666_v23, %v1576_v21 }
 0x49e   : > { %1668 = vst [vmem:[%s3152_s15 + $0x8] sm:$0xff] %v1667_v24 }
 0x49f   : > { %2823 = shalt.err (!%p2820_p9)
}
 0x4a0   : > { %2468 = dma.vmem_to_hbm [thread:$0]  (%p3048_p4), %s1684_s27, 384, %s1686_s23, %s1670_s19  }
 0x4a1 PF: > { %s1697_s5 = sand.u32 1, %s2862_s30   ;;  %p3229_p10 = scmp.ge.s32.totalorder %s2874_s12, 2 }
 0x4a2   : > { %s1698_s15 = scalar_lea.sflag [#allocation4], %s1697_s5 }
 0x4a3   : > { %p2494_p11 = pnand %p3229_p10, %p3052_p6 }
 0x4a5   : > { %p2495_p13 = pneg %p2494_p11 }
 0x4a7   : > { %2857 = dma.done.wait (%p2495_p13), %s1698_s15, 384  }
 0x4a8   : > { %2859 = vsyncadd (%p2495_p13), %s1698_s15, 4294966912  ;;  %p25_p0 = scmp.ge.s32.totalorder %s3026_s14, 4   ;;  %s3230_s30 = smov %s2866_s10 }
 0x4a9   : > { %s3231_s10 = smov %s2870_s11  ;;  %s3232_s11 = smov %s3037_s24 }
 0x4aa   : > { %s3233_s12 = smov %s3026_s14  ;;  %27 = sbr.rel (!%p25_p0) target bundleno = 14 (0xe), region = 143 }
 0x4af   :  { %1704 = vsyncpa [#allocation3], 1 }
 0x4b0   :  { %1706 = vsyncpa [#allocation3 + $0x1], 1 }
 0x4b1   :  { %1707 = vsyncpa [#allocation6], 1 }
 0x4b2   :  { %1708 = vsyncpa [#allocation9], 1 }
 0x4b3   :  { %1709 = vsyncpa [#allocation12], 1 }
 0x4b4   :  { %1710 = vsyncpa [#allocation4], 1 }
 0x4b5   :  { %1712 = vsyncpa [#allocation4 + $0x1], 1 }

// kernel: tpu_custom_call.1
= control target key start
LH: loop header
LB: loop body
LE: loop exit
PB: predicated region body
PF: predicated region fallthrough
CT: control target
= control target key end

     0   :  { %s3199_s0 = inlined_call_operand.hbm [shape: f32[3,16,128], index: 0, kind: input, shape index: {}]   ;;  %s3200_s1 = inlined_call_operand.hbm [shape: bf16[3,128,256], index: 1, kind: input, shape index: {}]   ;;  %s3201_s2 = inlined_call_operand.hbm [shape: f32[3,1,256], index: 2, kind: input, shape index: {}]   ;;  %s3202_s3 = inlined_call_operand.hbm [shape: bf16[3,128,128], index: 3, kind: input, shape index: {}]   ;;  %s3203_s4 = inlined_call_operand.vmem [shape: f32[3,1,128], index: 4, kind: input, shape index: {}]   ;;  %s3204_s5 = inlined_call_operand.hbm [shape: bf16[3,128,128], index: 5, kind: input, shape index: {}]   ;;  %s3205_s6 = inlined_call_operand.hbm [shape: f32[3,1,128], index: 6, kind: input, shape index: {}]   ;;  %s3206_s7 = inlined_call_operand.hbm [shape: bf16[3,128,128], index: 7, kind: input, shape index: {}]   ;;  %s3207_s8 = inlined_call_operand.vmem [shape: f32[3,1,128], index: 8, kind: input, shape index: {}]   ;;  %s3208_s9 = inlined_call_operand.hbm [shape: f32[16,384], index: 9, kind: output, shape index: {}]  }
   0x1   :  { %3211 = sst [smem:[#allocation20_spill]] %s3200_s1 }
   0x2   :  { %3212 = sst [smem:[#allocation21_spill]] %s3201_s2 }
   0x3   :  { %3213 = sst [smem:[#allocation22_spill]] %s3202_s3 }
   0x4   :  { %3214 = sst [smem:[#allocation23_spill]] %s3204_s5 }
   0x5   :  { %3215 = sst [smem:[#allocation24_spill]] %s3205_s6 }
   0x6   :  { %14 = vsyncpa [#allocation3], 0 }
   0x7   :  { %16 = vsyncpa [#allocation3 + $0x1], 0 }
   0x8   :  { %17 = vsyncpa [#allocation6], 0 }
   0x9   :  { %18 = vsyncpa [#allocation9], 0 }
   0xa   :  { %19 = vsyncpa [#allocation12], 0 }
   0xb   :  { %20 = vsyncpa [#allocation4], 0 }
   0xc   :  { %22 = vsyncpa [#allocation4 + $0x1], 0  ;;  %s2943_s30 = smov 0   ;;  %s2945_s10 = smov 0  }
   0xd   :  { %s2947_s11 = smov 0   ;;  %s2949_s12 = smov 0  }
   0xe LB: > { %s3216_s1 = sld [smem:[#allocation20_spill]]  ;;  %s2967_s16 = sadd.s32 4294967295, %s2874_s12   ;;  %s2874_s12 = sphi %s2949_s12, %s3233_s12   ;;  %s2870_s11 = sphi %s2947_s11, %s3232_s11   ;;  %s2866_s10 = sphi %s2945_s10, %s3231_s10   ;;  %s2862_s30 = sphi %s2943_s30, %s3230_s30  }
   0xf   : > { %p1814_p0 = scmp.ge.s32.totalorder %s2874_s12, 1  ;;  %p49_p1 = scmp.eq.s32.totalorder %s2967_s16, 0 }
  0x10   : > { %p253_p2 = scmp.lt.s32.totalorder %s2874_s12, 3  ;;  %s2876_s18 = smov [#allocation5]  }
  0x11   : > { %s266_s19 = sshll.u32 %s2876_s18, 4  ;;  %s3218_s3 = sld [smem:[#allocation22_spill]]  ;;  %s267_s19 = int_to_ptr.vmem [resolvable:$true] %s266_s19 }
  0x12   : > { %p2972_p3 = pnand %p1814_p0, %p253_p2  ;;  %s2877_s24 = smov [#allocation8]  }
  0x13   : > { %s294_s25 = sshll.u32 %s2877_s24, 4  ;;  %s3209_s26 = smov 128   ;;  %s295_s25 = int_to_ptr.vmem [resolvable:$true] %s294_s25 }
  0x14   : > { %s264_s15 = sshll.u32 %s3216_s1, 4  ;;  %p2470_p4 = pneg %p2972_p3  ;;  %s265_s15 = int_to_ptr.hbm [resolvable:$true] %s264_s15 }
  0x15   : > { %s3210_s27 = smov 8   ;;  %s2880_s28 = smov 64  }
  0x16   : > { %p2984_p6 = pnand %p2470_p4, %p49_p1  ;;  %s2881_s29 = smov 4  }
  0x17   : > { %s292_s22 = sshll.u32 %s3218_s3, 4  ;;  %s3220_s6 = sld [smem:[#allocation24_spill]]  ;;  %s293_s22 = int_to_ptr.hbm [resolvable:$true] %s292_s22 }
  0x18   : > { %2473 = dma.hbm_to_vmem [thread:$0]  (!%p2984_p6), %s265_s15, 6144, %s267_s19, [#allocation6], %s3209_s26, %s3209_s26, %s3210_s27  }
  0x19   : > { %2479 = dma.hbm_to_vmem [thread:$0]  (!%p2984_p6), %s293_s22, 3072, %s295_s25, [#allocation9], %s2880_s28, %s2880_s28, %s2881_s29  }
  0x1a   : > { %s2882_s20 = smov [#allocation11]   ;;  %s3221_s2 = sld [smem:[#allocation21_spill]] }
  0x1b   : > { %s325_s21 = sshll.u32 %s2882_s20, 4  ;;  %s2883_s19 = smov 16   ;;  %s326_s21 = int_to_ptr.vmem [resolvable:$true] %s325_s21 }
  0x1c   : > { %s2884_s26 = smov 1   ;;  %s2885_s22 = smov [#allocation7]  }
  0x1d   : > { %s323_s18 = sshll.u32 %s3220_s6, 4  ;;  %s280_s25 = sshll.u32 %s2885_s22, 4  ;;  %s324_s18 = int_to_ptr.hbm [resolvable:$true] %s323_s18  ;;  %s281_s25 = int_to_ptr.vmem [resolvable:$true] %s280_s25 }
  0x1e   : > { %2485 = dma.hbm_to_vmem [thread:$0]  (!%p2984_p6), %s324_s18, 48, %s326_s21, [#allocation12], %s2883_s19, %s2883_s19, %s2884_s26  }
  0x1f   : > { %s2886_s13 = smov 32   ;;  %s2887_s14 = smov 2  }
  0x20   : > { %s278_s15 = sshll.u32 %s3221_s2, 4  ;;  %s3222_s5 = sld [smem:[#allocation23_spill]]  ;;  %s279_s15 = int_to_ptr.hbm [resolvable:$true] %s278_s15 }
  0x21   : > { %2476 = dma.hbm_to_vmem [thread:$0]  (!%p2984_p6), %s279_s15, 96, %s281_s25, [#allocation6], %s2886_s13, %s2886_s13, %s2887_s14  }
  0x22   : > { %s2888_s26 = smov [#allocation10]   ;;  %s337_s22 = sshll.u32 %s3206_s7, 4  ;;  %s338_s22 = int_to_ptr.hbm [resolvable:$true] %s337_s22 }
  0x23   : > { %s311_s18 = sshll.u32 %s2888_s26, 4  ;;  %s2889_s15 = smov [#allocation13]   ;;  %s312_s18 = int_to_ptr.vmem [resolvable:$true] %s311_s18 }
  0x24   : > { %s339_s25 = sshll.u32 %s2889_s15, 4  ;;  %s1813_s13 = sadd.s32 4294967294, %s2874_s12   ;;  %s340_s25 = int_to_ptr.vmem [resolvable:$true] %s339_s25 }
  0x25   : > { %2488 = dma.hbm_to_vmem [thread:$0]  (!%p2984_p6), %s338_s22, 3072, %s340_s25, [#allocation12], %s2880_s28, %s2880_s28, %s2881_s29  }
  0x26   : > { %s309_s24 = sshll.u32 %s3222_s5, 4  ;;  %s3026_s14 = sadd.s32 1, %s2874_s12   ;;  %s310_s24 = int_to_ptr.hbm [resolvable:$true] %s309_s24 }
  0x27   : > { %2482 = dma.hbm_to_vmem [thread:$0]  (!%p2984_p6), %s310_s24, 3072, %s312_s18, [#allocation9], %s2880_s28, %s2880_s28, %s2881_s29  }
  0x28   : > { %s32_s20 = ssub.s32 %s2874_s12, %s3026_s14  ;;  %s35_s1 = sadd.s32 1, %s2870_s11 }
  0x29   : > { %p33_p7 = scmp.eq.s32.totalorder %s32_s20, 0  ;;  %p42_p8 = scmp.ne.s32.totalorder %s2870_s11, %s2866_s10 }
  0x2a   : > { %p43_p9 = scmp.eq.s32.totalorder %s2874_s12, 0  ;;  %p48_p10 = scmp.ne.s32.totalorder %s2866_s10, %s2862_s30 }
  0x2b   : > { %s3037_s24 = scalar_select %p33_p7, %s2870_s11, %s35_s1  }
  0x2c   : > { %p44_p11 = por %p43_p9, %p42_p8  ;;  %p3041_p12 = por %p49_p1, %p48_p10 }
  0x2d   : > { %p240_p13 = scmp.eq.s32.totalorder %s2967_s16, 1  ;;  %p246_p0 = scmp.eq.s32.totalorder %s1813_s13, 1 }
  0x2e   : > { %p2503_p2 = scmp.lt.s32.totalorder %s2874_s12, 2  ;;  %s356_s28 = sand.u32 1, %s2870_s11  }
  0x2f   : > { %p3048_p4 = por %p240_p13, %p42_p8  ;;  %p3052_p6 = por %p246_p0, %p48_p10 }
  0x30   : > { %s2439_s18 = smul.u32 24, %s356_s28  ;;  %s1822_s21 = sshll.u32 %s2874_s12, 3 }
  0x31   : > { %p3057_p7 = pnand %p2503_p2, %p44_p11  ;;  %s364_s25 = scalar_lea.hbm %s3199_s0, %s1822_s21 }
  0x32   : > { %s365_s13 = sshll.u32 %s364_s25, 4  ;;  %s360_s20 = scalar_lea.vmem [#allocation2], %s2439_s18  ;;  %s366_s13 = int_to_ptr.hbm [resolvable:$true] %s365_s13 }
  0x33   : > { %s367_s1 = sshll.u32 %s360_s20, 4  ;;  %s357_s27 = scalar_lea.sflag [#allocation3], %s356_s28  ;;  %s368_s1 = int_to_ptr.vmem [resolvable:$true] %s367_s1 }
  0x34   : > { %s2766_s2 = sshra.s32 %s366_s13, 4  ;;  %p2770_p9 = pneg %p3057_p7  ;;  %s2767_s2 = int_to_ptr.hbm [resolvable:$true] %s2766_s2 }
  0x35   : > { %s2768_s3 = scalar_lea.hbm %s2767_s2, 24  ;;  %s2773_s22 = scalar_lea.hbm %s3199_s0, 48 }
  0x36   : > { %p2769_p8 = scmp.ne.s32.totalorder %s2767_s2, %s2768_s3  ;;  %p2774_p13 = scmp.lt.s32.totalorder %s2767_s2, %s3199_s0 }
  0x37   : > { %p2775_p0 = scmp.lt.s32.totalorder %s2773_s22, %s2768_s3 }
  0x38   : > { %p2771_p10 = pnand %p2770_p9, %p2769_p8 }
  0x39   : > { %p2776_p2 = por %p2775_p0, %p2774_p13 }
  0x3a   : > { %p2772_p11 = pneg %p2771_p10 }
  0x3c   : > { %p2777_p5 = pnand %p2776_p2, %p2772_p11 }
  0x3e   : > { %2780 = shalt.err (!%p2777_p5)
}
  0x3f   : > { %s2890_s28 = smov 256   ;;  %s3227_s18 = smov 8  }
  0x40   : > { %s3228_s25 = smov 128   ;;  %379 = sbr.rel (%p2972_p3) target bundleno = 1185 (0x4a1), region = 56 }
  0x41   : > { %2492 = dma.hbm_to_vmem [thread:$0]  (!%p3057_p7), %s366_s13, 384, %s368_s1, %s357_s27, %s2890_s28, %s3228_s25, %s3227_s18  }
  0x42   : > { %s3079_s5 = sand.u32 (!%p2972_p3), 1, %s2866_s10  }
  0x43   : > { %s2440_s2 = smul.u32 (!%p2972_p3), 24, %s3079_s5  ;;  %s382_s3 = scalar_lea.sflag (!%p2972_p3), [#allocation3], %s3079_s5 }
  0x45   : > { %s3085_s6 = scalar_lea.vmem [#allocation2], %s2440_s2 }
  0x46   : > { %2841 = dma.done.wait (%p3041_p12), %s382_s3, 384  }
  0x47   : > { %2843 = vsyncadd (%p3041_p12), %s382_s3, 4294966912 }
  0x48   : > { %2845 = dma.done.wait (%p49_p1), [#allocation6], 6240  }
  0x49   : > { %2847 = vsyncadd (%p49_p1), [#allocation6], 4294961056 }
  0x4a   : > { %2849 = dma.done.wait (%p49_p1), [#allocation9], 6144  }
  0x4b   : > { %2851 = vsyncadd (%p49_p1), [#allocation9], 4294961152 }
  0x4c   : > { %2853 = dma.done.wait (%p49_p1), [#allocation12], 3120  }
  0x4d   : > { %2855 = vsyncadd (%p49_p1), [#allocation12], 4294964176  ;;  %v2333_v0 = vld [vmem:[#allocation5 + $0x174] sm:$0xf]  ;;  %v1891_v1 = vld [vmem:[#allocation5 + $0x178] sm:$0xf0] }
  0x4e   : > { %v2331_v2 = vld [vmem:[#allocation5 + $0x164] sm:$0xf]  ;;  %v1894_v3 = vor.u32 %v2333_v0, %v1891_v1  ;;  %v1883_v4 = vld [vmem:[#allocation5 + $0x168] sm:$0xf0]  ;;  %v2329_v6 = vld [vmem:[#allocation5 + $0x154] sm:$0xf] }
  0x4f   : > { %v1886_v5 = vor.u32 %v2331_v2, %v1883_v4  ;;  %v1875_v7 = vld [vmem:[#allocation5 + $0x158] sm:$0xf0]  ;;  %v2327_v11 = vld [vmem:[#allocation5 + $0x144] sm:$0xf]  ;;  %v1867_v12 = vld [vmem:[#allocation5 + $0x148] sm:$0xf0] }
  0x50   : > { %571 = vmatpush.bf16.msra.mxu1 %v1894_v3  ;;  %v2342_v8 = vld [vmem:[#allocation10 + $0xb8] sm:$0xff]  ;;  %v1878_v9 = vor.u32 %v2329_v6, %v1875_v7  ;;  %v2341_v10 = vld [vmem:[#allocation10 + $0xb0] sm:$0xff]  ;;  %v2340_v15 = vld [vmem:[#allocation10 + $0xa8] sm:$0xff]  ;;  %v1870_v16 = vor.u32 %v2327_v11, %v1867_v12  ;;  %s3152_s15 = scalar_lea.vmem [#allocation14], %s2440_s2  ;;  %s2441_s2 = smul.u32 24, %s2967_s16 }
  0x51   : > { %657 = vmatpush.bf16.msra.mxu2 %v2342_v8  ;;  %v2325_v13 = vld [vmem:[#allocation5 + $0x134] sm:$0xf]  ;;  %v1859_v14 = vld [vmem:[#allocation5 + $0x138] sm:$0xf0]  ;;  %v2339_v18 = vld [vmem:[#allocation10 + $0xa0] sm:$0xff]  ;;  %s1683_s27 = sshll.u32 %s3152_s15, 4  ;;  %s1684_s27 = int_to_ptr.vmem [resolvable:$true] %s1683_s27 }
  0x52   : > { %v1862_v17 = vor.u32 %v2325_v13, %v1859_v14  ;;  %v2323_v19 = vld [vmem:[#allocation5 + $0x124] sm:$0xf]  ;;  %v1851_v20 = vld [vmem:[#allocation5 + $0x128] sm:$0xf0]  ;;  %v2321_v23 = vld [vmem:[#allocation5 + $0x114] sm:$0xf]  ;;  %s1681_s17 = scalar_lea.hbm %s3208_s9, %s2441_s2 }
  0x53   : > { %v1854_v21 = vor.u32 %v2323_v19, %v1851_v20  ;;  %v2338_v22 = vld [vmem:[#allocation10 + $0x98] sm:$0xff]  ;;  %v2337_v26 = vld [vmem:[#allocation10 + $0x90] sm:$0xff]  ;;  %v1835_v28 = vld [vmem:[#allocation5 + $0x108] sm:$0xf0]  ;;  %s1685_s23 = sshll.u32 %s1681_s17, 4  ;;  %s1670_s19 = scalar_lea.sflag [#allocation4], %s3079_s5  ;;  %s1686_s23 = int_to_ptr.hbm [resolvable:$true] %s1685_s23 }
  0x54   : > { %572 = vmatpush.bf16.msra.mxu1 %v1886_v5  ;;  %v1843_v24 = vld [vmem:[#allocation5 + $0x118] sm:$0xf0]  ;;  %v2319_v27 = vld [vmem:[#allocation5 + $0x104] sm:$0xf]  ;;  %v2336_v31 = vld [vmem:[#allocation10 + $0x88] sm:$0xff]  ;;  %s2810_s13 = sshra.s32 %s1686_s23, 4  ;;  %s2811_s13 = int_to_ptr.hbm [resolvable:$true] %s2810_s13 }
  0x55   : > { %658 = vmatpush.bf16.msra.mxu2 %v2341_v10  ;;  %v1846_v25 = vor.u32 %v2321_v23, %v1843_v24  ;;  %v1838_v29 = vor.u32 %v2319_v27, %v1835_v28  ;;  %v1830_v30 = vld [vmem:[%s3085_s6 + $0x10] sm:$0xff]  ;;  %v2373_v32 = vld [vmem:[#allocation5 + $0x74] sm:$0xf]  ;;  %v2045_v38 = vld [vmem:[#allocation5 + $0x68] sm:$0xf0]  ;;  %s2812_s16 = scalar_lea.hbm %s2811_s13, 24  ;;  %p2817_p12 = scmp.lt.s32.totalorder %s2811_s13, %s3208_s9 }
  0x56   : > { %v2053_v33 = vld [vmem:[#allocation5 + $0x78] sm:$0xf0]  ;;  %v3104_v34 = vpack.c.bf16 %v1830_v30, %v1830_v30  ;;  %v2335_v35 = vld [vmem:[#allocation10 + $0x80] sm:$0xff]  ;;  %v2369_v40 = vld [vmem:[#allocation5 + $0x54] sm:$0xf]  ;;  %p2813_p1 = scmp.ne.s32.totalorder %s2811_s13, %s2812_s16  ;;  %s2816_s22 = scalar_lea.hbm %s3208_s9, 48 }
  0x57   : > { %v2056_v36 = vor.u32 %v2373_v32, %v2053_v33  ;;  %v2371_v37 = vld [vmem:[#allocation5 + $0x64] sm:$0xf]  ;;  %v2037_v41 = vld [vmem:[#allocation5 + $0x58] sm:$0xf0]  ;;  %v2029_v44 = vld [vmem:[#allocation5 + $0x48] sm:$0xf0]  ;;  %p2818_p7 = scmp.lt.s32.totalorder %s2816_s22, %s2812_s16 }
  0x58   : > { %573 = vmatpush.bf16.msra.mxu1 %v1878_v9  ;;  %v2048_v39 = vor.u32 %v2371_v37, %v2045_v38  ;;  %v2040_v42 = vor.u32 %v2369_v40, %v2037_v41  ;;  %v2367_v43 = vld [vmem:[#allocation5 + $0x44] sm:$0xf]  ;;  %v2365_v46 = vld [vmem:[#allocation5 + $0x34] sm:$0xf]  ;;  %v2021_v47 = vld [vmem:[#allocation5 + $0x38] sm:$0xf0]  ;;  %p2814_p3 = pnand %p2813_p1, %p3048_p4 }
  0x59   : > { %659 = vmatpush.bf16.msra.mxu2 %v2340_v15  ;;  %v2032_v45 = vor.u32 %v2367_v43, %v2029_v44  ;;  %v2024_v48 = vor.u32 %v2365_v46, %v2021_v47  ;;  %v2363_v49 = vld [vmem:[#allocation5 + $0x24] sm:$0xf]  ;;  %v2013_v50 = vld [vmem:[#allocation5 + $0x28] sm:$0xf0]  ;;  %v2361_v52 = vld [vmem:[#allocation5 + $0x14] sm:$0xf]  ;;  %p2819_p8 = por %p2818_p7, %p2817_p12 }
  0x5a   : > { %v2016_v51 = vor.u32 %v2363_v49, %v2013_v50  ;;  %v2005_v53 = vld [vmem:[#allocation5 + $0x18] sm:$0xf0]  ;;  %v2359_v55 = vld [vmem:[#allocation5 + $0x4] sm:$0xf]  ;;  %v1997_v56 = vld [vmem:[#allocation5 + $0x8] sm:$0xf0]  ;;  %p2815_p5 = pneg %p2814_p3 }
  0x5b   : > { %v2008_v54 = vor.u32 %v2361_v52, %v2005_v53  ;;  %v2000_v57 = vor.u32 %v2359_v55, %v1997_v56  ;;  %v2350_v58 = vld [vmem:[#allocation13 + $0xb8] sm:$0xff]  ;;  %v2349_v59 = vld [vmem:[#allocation13 + $0xb0] sm:$0xff]  ;;  %v1889_v60 = vld [vmem:[#allocation5 + $0x170] sm:$0xf] }
  0x5c   : > { %574 = vmatpush.bf16.msra.mxu1 %v1870_v16  ;;  %742 = vmatpush.bf16.msra.mxu3 %v2350_v58  ;;  %v2334_v61 = vld [vmem:[#allocation5 + $0x174] sm:$0xf0]  ;;  %v3107_v62 = vld [vmem:[#allocation7 + $0x4] sm:$0x3]  ;;  %v1881_v0 = vld [vmem:[#allocation5 + $0x160] sm:$0xf]  ;;  %p2820_p9 = pnand %p2819_p8, %p2815_p5 }
  0x5d   : > { %660 = vmatpush.bf16.msra.mxu2 %v2339_v18  ;;  %v1890_v63 = vor.u32 %v2334_v61, %v1889_v60  ;;  %v2332_v1 = vld [vmem:[#allocation5 + $0x164] sm:$0xf0]  ;;  %v475_v3 = vperm.slane %v3107_v62, 1  ;;  %v2348_v4 = vld [vmem:[#allocation13 + $0xa8] sm:$0xff]  ;;  %v1865_v11 = vld [vmem:[#allocation5 + $0x140] sm:$0xf] }
  0x5e   : > { %v1882_v2 = vor.u32 %v2332_v1, %v1881_v0  ;;  %v1873_v5 = vld [vmem:[#allocation5 + $0x150] sm:$0xf]  ;;  %v2330_v6 = vld [vmem:[#allocation5 + $0x154] sm:$0xf0]  ;;  %v2328_v12 = vld [vmem:[#allocation5 + $0x144] sm:$0xf0] }
  0x5f   : > { %558 = vmatpush.bf16.msra.mxu0 %v1890_v63  ;;  %v1874_v8 = vor.u32 %v2330_v6, %v1873_v5  ;;  %v2347_v10 = vld [vmem:[#allocation13 + $0xa0] sm:$0xff]  ;;  %v1866_v14 = vor.u32 %v2328_v12, %v1865_v11  ;;  %v2346_v16 = vld [vmem:[#allocation13 + $0x98] sm:$0xff]  ;;  %v2326_v18 = vld [vmem:[#allocation5 + $0x134] sm:$0xf0] }
  0x60   : > { %575 = vmatpush.bf16.msra.mxu1 %v1862_v17  ;;  %743 = vmatpush.bf16.msra.mxu3 %v2349_v59  ;;  %v1857_v17 = vld [vmem:[#allocation5 + $0x130] sm:$0xf]  ;;  %v2324_v23 = vld [vmem:[#allocation5 + $0x124] sm:$0xf0]  ;;  %v2322_v27 = vld [vmem:[#allocation5 + $0x114] sm:$0xf0] }
  0x61   : > { %661 = vmatpush.bf16.msra.mxu2 %v2338_v22  ;;  %v1858_v20 = vor.u32 %v2326_v18, %v1857_v17  ;;  %v1849_v22 = vld [vmem:[#allocation5 + $0x120] sm:$0xf]  ;;  %v856_v28 = vld [vmem:[%s3085_s6] sm:$0xff]  ;;  %v2411_v52 = vld [vmem:[#allocation5 + $0xe4] sm:$0xf] }
  0x62   : > { %v1850_v24 = vor.u32 %v2324_v23, %v1849_v22  ;;  %v2343_v30 = vld [vmem:[#allocation13 + $0x80] sm:$0xff]  ;;  %v3111_v32 = vpack.c.bf16 %v856_v28, %v856_v28  ;;  %v2381_v33 = vld [vmem:[#allocation10 + $0x30] sm:$0xff]  ;;  %v2378_v37 = vld [vmem:[#allocation10 + $0x18] sm:$0xff] }
  0x63   : > { %559 = vmatpush.bf16.msra.mxu0 %v1882_v2  ;;  %v2377_v38 = vld [vmem:[#allocation10 + $0x10] sm:$0xff]  ;;  %v2320_v40 = vld [vmem:[#allocation5 + $0x104] sm:$0xf0]  ;;  %v2206_v53 = vld [vmem:[#allocation5 + $0xe8] sm:$0xf0] }
  0x64   : > { %576 = vmatpush.bf16.msra.mxu1 %v1854_v21  ;;  %744 = vmatpush.bf16.msra.mxu3 %v2348_v4  ;;  %v2345_v21 = vld [vmem:[#allocation13 + $0x90] sm:$0xff]  ;;  %v2375_v43 = vld [vmem:[#allocation10] sm:$0xff]  ;;  %v2413_v47 = vld [vmem:[#allocation5 + $0xf4] sm:$0xf]  ;;  %v2209_v56 = vor.u32 %v2411_v52, %v2206_v53 }
  0x65   : > { %662 = vmatpush.bf16.msra.mxu2 %v2337_v26  ;;  %v1841_v26 = vld [vmem:[#allocation5 + $0x110] sm:$0xf]  ;;  %v2565_v44 = vld [vmem:[#allocation11 + $0x2] ss:$0 sm:$0xff]  ;;  %v2198_v58 = vld [vmem:[#allocation5 + $0xd8] sm:$0xf0] }
  0x66   : > { %v3115_v59 = vld [vmem:[#allocation7] sm:$0x3]  ;;  %v2051_v60 = vld [vmem:[#allocation5 + $0x70] sm:$0xf]  ;;  %v2374_v61 = vld [vmem:[#allocation5 + $0x74] sm:$0xf0] }
  0x67   : > { %560 = vmatpush.bf16.msra.mxu0 %v1874_v8  ;;  %v2052_v63 = vor.u32 %v2374_v61, %v2051_v60  ;;  %v877_v1 = vperm.slane %v3115_v59, 1  ;;  %v2407_v2 = vld [vmem:[#allocation5 + $0xc4] sm:$0xf]  ;;  %v2356_v4 = vld [vmem:[#allocation8 + $0xa8] sm:$0xff]  ;;  %v2043_v5 = vld [vmem:[#allocation5 + $0x60] sm:$0xf] }
  0x68   : > { %577 = vmatpush.bf16.msra.mxu1 %v1846_v25  ;;  %745 = vmatpush.bf16.msra.mxu3 %v2347_v10  ;;  %v2344_v25 = vld [vmem:[#allocation13 + $0x88] sm:$0xff]  ;;  %v2372_v6 = vld [vmem:[#allocation5 + $0x64] sm:$0xf0]  ;;  %v2182_v12 = vld [vmem:[#allocation5 + $0xb8] sm:$0xf0] }
  0x69   : > { %663 = vmatpush.bf16.msra.mxu2 %v2336_v31  ;;  %v2382_v31 = vld [vmem:[#allocation10 + $0x38] sm:$0xff]  ;;  %v2405_v11 = vld [vmem:[#allocation5 + $0xb4] sm:$0xf]  ;;  %v2174_v18 = vld [vmem:[#allocation5 + $0xa8] sm:$0xf0] }
  0x6a   : > { %v2403_v17 = vld [vmem:[#allocation5 + $0xa4] sm:$0xf]  ;;  %v2401_v22 = vld [vmem:[#allocation5 + $0x94] sm:$0xf]  ;;  %v2166_v23 = vld [vmem:[#allocation5 + $0x98] sm:$0xf0] }
  0x6b   : > { %561 = vmatpush.bf16.msra.mxu0 %v1866_v14  ;;  %v2352_v28 = vld [vmem:[#allocation8 + $0x88] sm:$0xff]  ;;  %v2366_v53 = vld [vmem:[#allocation5 + $0x34] sm:$0xf0] }
  0x6c   : > { %578 = vmatpush.bf16.msra.mxu1 %v1838_v29  ;;  %746 = vmatpush.bf16.msra.mxu3 %v2346_v16  ;;  %v1842_v29 = vor.u32 %v2322_v27, %v1841_v26  ;;  %v2399_v26 = vld [vmem:[#allocation5 + $0x84] sm:$0xf]  ;;  %v2158_v27 = vld [vmem:[#allocation5 + $0x88] sm:$0xf0]  ;;  %v2019_v52 = vld [vmem:[#allocation5 + $0x30] sm:$0xf] }
  0x6d   : > { %664 = vmatpush.bf16.msra.mxu2 %v2335_v35  ;;  %v2380_v35 = vld [vmem:[#allocation10 + $0x28] sm:$0xff] }
  0x6e   : > { %v2383_v60 = vld [vmem:[#allocation13] sm:$0xff] }
  0x6f   : > { %579 = vmatmul.bf16.vlgmr.msra.gmra.mxu1 %v3104_v34  ;;  %562 = vmatpush.bf16.msra.mxu0 %v1858_v20  ;;  %v2003_v61 = vld [vmem:[#allocation5 + $0x10] sm:$0xf] }
  0x70   : > { %747 = vmatpush.bf16.msra.mxu3 %v2345_v21  ;;  %960 = vmatpush.bf16.msrb.mxu1 %v2052_v63  ;;  %v2177_v21 = vor.u32 %v2403_v17, %v2174_v18  ;;  %v2362_v63 = vld [vmem:[#allocation5 + $0x14] sm:$0xf0] }
  0x71   : > { %973 = vmatpush.bf16.msrb.mxu2 %v2056_v36  ;;  %v2379_v36 = vld [vmem:[#allocation10 + $0x20] sm:$0xff] }
  0x73   : > { %563 = vmatpush.bf16.msra.mxu0 %v1850_v24  ;;  %v2353_v24 = vld [vmem:[#allocation8 + $0x90] sm:$0xff] }
  0x74   : > { %748 = vmatpush.bf16.msra.mxu3 %v2344_v25  ;;  %v2169_v25 = vor.u32 %v2401_v22, %v2166_v23  ;;  %v3127_v22 = vld [vmem:[#allocation7 + $0x2] sm:$0x3] }
  0x75   : > { %974 = vmatpush.bf16.msrb.mxu2 %v2048_v39  ;;  %v1833_v39 = vld [vmem:[#allocation5 + $0x100] sm:$0xf]  ;;  %v1282_v23 = vperm.slane %v3127_v22, 1 }
  0x76   : > { %v1834_v41 = vor.u32 %v2320_v40, %v1833_v39  ;;  %v2035_v39 = vld [vmem:[#allocation5 + $0x50] sm:$0xf]  ;;  %v2370_v40 = vld [vmem:[#allocation5 + $0x54] sm:$0xf0] }
  0x77   : > { %564 = vmatpush.bf16.msra.mxu0 %v1842_v29  ;;  %v2161_v29 = vor.u32 %v2399_v26, %v2158_v27 }
  0x78   : > { %749 = vmatpush.bf16.msra.mxu3 %v2343_v30  ;;  %v2153_v30 = vld [vmem:[%s3085_s6 + $0x8] sm:$0xff] }
  0x79   : > { %975 = vmatpush.bf16.msrb.mxu2 %v2040_v42  ;;  %v2376_v42 = vld [vmem:[#allocation10 + $0x8] sm:$0xff] }
  0x7b   : > { %565 = vmatpush.bf16.msra.mxu0 %v1834_v41  ;;  %v2386_v41 = vld [vmem:[#allocation13 + $0x18] sm:$0xff] }
  0x7c   : > { %1057 = vmatpush.bf16.msrb.mxu3 %v2382_v31  ;;  %v2351_v31 = vld [vmem:[#allocation8 + $0x80] sm:$0xff] }
  0x7d   : > { %976 = vmatpush.bf16.msrb.mxu2 %v2032_v45 }
  0x7e   : > { %566 = vmatmul.bf16.vlgmr.msra.gmra.mxu0 %v3104_v34  ;;  %v2357_v34 = vld [vmem:[#allocation8 + $0xb0] sm:$0xff] }
  0x80   : > { %1058 = vmatpush.bf16.msrb.mxu3 %v2381_v33  ;;  %v2390_v33 = vld [vmem:[#allocation13 + $0x38] sm:$0xff] }
  0x81   : > { %977 = vmatpush.bf16.msrb.mxu2 %v2024_v48  ;;  %v2214_v48 = vld [vmem:[#allocation5 + $0xf8] sm:$0xf0] }
  0x82   : > { %v2217_v50 = vor.u32 %v2413_v47, %v2214_v48  ;;  %v474_v47 = vperm.slane %v3107_v62, 0  ;;  %v2004_v62 = vor.u32 %v2362_v63, %v2003_v61  ;;  %v2570_v61 = vld [vmem:[#allocation11 + $0x1] ss:$0 sm:$0xff] }
  0x84   : > { %1059 = vmatpush.bf16.msrb.mxu3 %v2380_v35  ;;  %v3119_v35 = vpack.c.bf16 %v2153_v30, %v2153_v30  ;;  %v2395_v30 = vld [vmem:[#allocation8 + $0x20] sm:$0xff] }
  0x85   : > { %978 = vmatpush.bf16.msrb.mxu2 %v2016_v51 }
  0x88   : > { %1060 = vmatpush.bf16.msrb.mxu3 %v2379_v36  ;;  %v2389_v36 = vld [vmem:[#allocation13 + $0x30] sm:$0xff] }
  0x89   : > { %979 = vmatpush.bf16.msrb.mxu2 %v2008_v54  ;;  %v2358_v54 = vld [vmem:[#allocation8 + $0xb8] sm:$0xff] }
  0x8a   : > { %835 = vmatpush.bf16.msrb.mxu0 %v2358_v54  ;;  %v2020_v54 = vor.u32 %v2366_v53, %v2019_v52  ;;  %v2426_v53 = vld [vmem:[#allocation13 + $0x58] sm:$0xff] }
  0x8c   : > { %1061 = vmatpush.bf16.msrb.mxu3 %v2378_v37  ;;  %v2388_v37 = vld [vmem:[#allocation13 + $0x28] sm:$0xff] }
  0x8d   : > { %980 = vmatpush.bf16.msrb.mxu2 %v2000_v57  ;;  %v2409_v57 = vld [vmem:[#allocation5 + $0xd4] sm:$0xf] }
  0x8e   : > { %v2201_v0 = vor.u32 %v2409_v57, %v2198_v58  ;;  %836 = vmatpush.bf16.msrb.mxu0 %v2357_v34  ;;  %v2011_v57 = vld [vmem:[#allocation5 + $0x20] sm:$0xf]  ;;  %v2364_v58 = vld [vmem:[#allocation5 + $0x24] sm:$0xf0] }
  0x8f   : > { %v2012_v34 = vor.u32 %v2364_v58, %v2011_v57  ;;  %v2569_v57 = vld [vmem:[%s3207_s8] ss:$0 sm:$0xff] }
  0x90   : > { %1062 = vmatpush.bf16.msrb.mxu3 %v2377_v38  ;;  %v2387_v38 = vld [vmem:[#allocation13 + $0x20] sm:$0xff] }
  0x92   : > { %837 = vmatpush.bf16.msrb.mxu0 %v2356_v4 }
  0x94   : > { %1063 = vmatpush.bf16.msrb.mxu3 %v2376_v42  ;;  %v2036_v42 = vor.u32 %v2370_v40, %v2035_v39  ;;  %v2391_v39 = vld [vmem:[#allocation8] sm:$0xff] }
  0x95   : > { %v2430_v40 = vld [vmem:[#allocation13 + $0x78] sm:$0xff] }
  0x98   : > { %1064 = vmatpush.bf16.msrb.mxu3 %v2375_v43  ;;  %v2027_v43 = vld [vmem:[#allocation5 + $0x40] sm:$0xf] }
  0xec   : > { %v580_v7 = vpop.f32.mrf.mxu1 }
  0xed   : > { %v581_v9 = vadd.f32 %v580_v7, %v475_v3  ;;  %v2190_v3 = vld [vmem:[#allocation5 + $0xc8] sm:$0xf0]  ;;  %v2044_v7 = vor.u32 %v2372_v6, %v2043_v5 }
  0xee   : > { %v2420_v5 = vld [vmem:[#allocation10 + $0x68] sm:$0xff]  ;;  %v2419_v6 = vld [vmem:[#allocation10 + $0x60] sm:$0xff] }
  0xef   : > { %v585_v13 = vmax.f32 %v581_v9, 0.0  ;;  %v2193_v9 = vor.u32 %v2407_v2, %v2190_v3  ;;  %961 = vmatpush.bf16.msrb.mxu1 %v2044_v7  ;;  %v2360_v2 = vld [vmem:[#allocation5 + $0x4] sm:$0xf0]  ;;  %v2421_v3 = vld [vmem:[#allocation10 + $0x70] sm:$0xff]  ;;  %v2418_v7 = vld [vmem:[#allocation10 + $0x58] sm:$0xff] }
  0xf1   : > { %v605_v15 = vpack.c.bf16 %v585_v13, %v585_v13  ;;  %v2355_v13 = vld [vmem:[#allocation8 + $0xa0] sm:$0xff] }
  0xf2   : > { %838 = vmatpush.bf16.msrb.mxu0 %v2355_v13  ;;  %v2415_v13 = vld [vmem:[#allocation10 + $0x40] sm:$0xff] }
  0xf3   : > { %665 = vmatmul.bf16.vlgmr.msra.gmra.mxu2 %v605_v15  ;;  %v2185_v15 = vor.u32 %v2405_v11, %v2182_v12  ;;  %962 = vmatpush.bf16.msrb.mxu1 %v2036_v42 }
  0xf4   : > { %v582_v19 = vpop.f32.mrf.mxu1 }
  0xf5   : > { %v2354_v19 = vld [vmem:[#allocation8 + $0x98] sm:$0xff] }
  0xf6   : > { %839 = vmatpush.bf16.msrb.mxu0 %v2354_v19 }
  0xfa   : > { %840 = vmatpush.bf16.msrb.mxu0 %v2353_v24 }
  0xfb   : > { %v567_v48 = vpop.f32.mrf.mxu0 }
  0xfe   : > { %841 = vmatpush.bf16.msrb.mxu0 %v2352_v28 }
 0x102   : > { %842 = vmatpush.bf16.msrb.mxu0 %v2351_v31  ;;  %v2394_v31 = vld [vmem:[#allocation8 + $0x18] sm:$0xff] }
 0x103   : > { %981 = vmatmul.bf16.vlgmr.msrb.gmra.mxu2 %v3111_v32 }
 0x106   : > { %1140 = vmatpush.bf16.msra.mxu0 %v2390_v33 }
 0x10a   : > { %1141 = vmatpush.bf16.msra.mxu0 %v2389_v36  ;;  %v2393_v36 = vld [vmem:[#allocation8 + $0x10] sm:$0xff] }
 0x10e   : > { %1142 = vmatpush.bf16.msra.mxu0 %v2388_v37  ;;  %v2392_v37 = vld [vmem:[#allocation8 + $0x8] sm:$0xff] }
 0x112   : > { %1143 = vmatpush.bf16.msra.mxu0 %v2387_v38 }
 0x116   : > { %1144 = vmatpush.bf16.msra.mxu0 %v2386_v41  ;;  %v876_v41 = vperm.slane %v3115_v59, 0  ;;  %v2425_v59 = vld [vmem:[#allocation13 + $0x50] sm:$0xff] }
 0x176   : > { %v666_v45 = vpop.f32.mrf.mxu2 }
 0x177   : > { %v667_v46 = vadd.f32 %v2565_v44, %v666_v45  ;;  %v2368_v44 = vld [vmem:[#allocation5 + $0x44] sm:$0xf0]  ;;  %v2385_v45 = vld [vmem:[#allocation13 + $0x10] sm:$0xff] }
 0x178   : > { %1145 = vmatpush.bf16.msra.mxu0 %v2385_v45 }
 0x179   : > { %v670_v49 = vmax.f32 %v667_v46, 0.0  ;;  %v2028_v46 = vor.u32 %v2368_v44, %v2027_v43  ;;  %v2429_v43 = vld [vmem:[#allocation13 + $0x70] sm:$0xff] }
 0x17b   : > { %v671_v51 = vpack.c.bf16 %v670_v49, %v670_v49  ;;  %963 = vmatpush.bf16.msrb.mxu1 %v2028_v46  ;;  %v568_v49 = vadd.f32 %v567_v48, %v474_v47  ;;  %v2428_v47 = vld [vmem:[#allocation13 + $0x68] sm:$0xff] }
 0x17d   : > { %750 = vmatmul.bf16.vlgmr.msra.gmra.mxu3 %v671_v51 }
 0x17e   : > { %v668_v55 = vpop.f32.mrf.mxu2  ;;  %1378 = vmatpush.bf16.msra.mxu3 %v2217_v50  ;;  %v584_v50 = vmax.f32 %v568_v49, 0.0 }
 0x17f   : > { %v569_v55 = vpop.f32.mrf.mxu0  ;;  %964 = vmatpush.bf16.msrb.mxu1 %v2020_v54 }
 0x180   : > { %v783_v51 = vpack.c.bf16 %v584_v50, %v584_v50  ;;  %v2427_v50 = vld [vmem:[#allocation13 + $0x60] sm:$0xff]  ;;  %v2424_v55 = vld [vmem:[#allocation13 + $0x48] sm:$0xff] }
 0x182   : > { %1379 = vmatpush.bf16.msra.mxu3 %v2209_v56  ;;  %843 = vmatmul.bf16.vlgmr.msrb.gmra.mxu0 %v783_v51  ;;  %v2384_v56 = vld [vmem:[#allocation13 + $0x8] sm:$0xff] }
 0x183   : > { %1146 = vmatpush.bf16.msra.mxu0 %v2384_v56  ;;  %965 = vmatpush.bf16.msrb.mxu1 %v2012_v34  ;;  %v2423_v56 = vld [vmem:[#allocation13 + $0x40] sm:$0xff] }
 0x186   : > { %v982_v8 = vpop.f32.mrf.mxu2  ;;  %1380 = vmatpush.bf16.msra.mxu3 %v2201_v0  ;;  %v2422_v0 = vld [vmem:[#allocation10 + $0x78] sm:$0xff] }
 0x187   : > { %v983_v10 = vadd.f32 %v982_v8, %v877_v1  ;;  %1147 = vmatpush.bf16.msra.mxu0 %v2383_v60  ;;  %966 = vmatpush.bf16.msrb.mxu1 %v2004_v62  ;;  %v1995_v1 = vld [vmem:[#allocation5] sm:$0xf]  ;;  %v2417_v8 = vld [vmem:[#allocation10 + $0x50] sm:$0xff] }
 0x188   : > { %v1996_v4 = vor.u32 %v2360_v2, %v1995_v1 }
 0x189   : > { %v987_v14 = vmax.f32 %v983_v10, 0.0  ;;  %v2416_v10 = vld [vmem:[#allocation10 + $0x48] sm:$0xff] }
 0x18a   : > { %1381 = vmatpush.bf16.msra.mxu3 %v2193_v9  ;;  %v2566_v9 = vld [vmem:[%s3207_s8 + $0x2] ss:$0 sm:$0xff] }
 0x18b   : > { %v1005_v16 = vpack.c.bf16 %v987_v14, %v987_v14  ;;  %1464 = vmatpush.bf16.msrb.mxu0 %v2422_v0  ;;  %967 = vmatpush.bf16.msrb.mxu1 %v1996_v4 }
 0x18d   : > { %1065 = vmatmul.bf16.vlgmr.msrb.gmra.mxu3 %v1005_v16  ;;  %v2567_v16 = vld [vmem:[#allocation11] ss:$0 sm:$0xff] }
 0x18e   : > { %v984_v20 = vpop.f32.mrf.mxu2  ;;  %1382 = vmatpush.bf16.msra.mxu3 %v2185_v15  ;;  %968 = vmatmul.bf16.vlgmr.msrb.gmra.mxu1 %v3111_v32  ;;  %v2398_v32 = vld [vmem:[#allocation8 + $0x38] sm:$0xff]  ;;  %v2397_v15 = vld [vmem:[#allocation8 + $0x30] sm:$0xff] }
 0x18f   : > { %1465 = vmatpush.bf16.msrb.mxu0 %v2421_v3  ;;  %1237 = vmatpush.bf16.msra.mxu1 %v2398_v32 }
 0x192   : > { %1383 = vmatpush.bf16.msra.mxu3 %v2177_v21 }
 0x193   : > { %1466 = vmatpush.bf16.msrb.mxu0 %v2420_v5  ;;  %1238 = vmatpush.bf16.msra.mxu1 %v2397_v15  ;;  %v2196_v15 = vld [vmem:[#allocation5 + $0xd0] sm:$0xf] }
 0x196   : > { %1384 = vmatpush.bf16.msra.mxu3 %v2169_v25 }
 0x197   : > { %1467 = vmatpush.bf16.msrb.mxu0 %v2419_v6 }
 0x19a   : > { %1385 = vmatpush.bf16.msra.mxu3 %v2161_v29  ;;  %v2396_v29 = vld [vmem:[#allocation8 + $0x28] sm:$0xff] }
 0x19b   : > { %1468 = vmatpush.bf16.msrb.mxu0 %v2418_v7  ;;  %1239 = vmatpush.bf16.msra.mxu1 %v2396_v29  ;;  %v2404_v29 = vld [vmem:[#allocation5 + $0xa4] sm:$0xf0] }
 0x19d   : > { %1386 = vmatmul.bf16.vlgmr.msra.gmra.mxu3 %v3119_v35 }
 0x19f   : > { %1469 = vmatpush.bf16.msrb.mxu0 %v2417_v8  ;;  %1240 = vmatpush.bf16.msra.mxu1 %v2395_v30  ;;  %v2891_v8 = vmov 0  }
 0x1a0   : > { %2560 = vset.pattern.permute.xlu0 %v2891_v8  ;;  %2562 = vset.pattern.permute.xlu2 %v2891_v8 }
 0x1a3   : > { %1470 = vmatpush.bf16.msrb.mxu0 %v2416_v10  ;;  %1241 = vmatpush.bf16.msra.mxu1 %v2394_v31  ;;  %v2212_v10 = vld [vmem:[#allocation5 + $0xf0] sm:$0xf] }
 0x1a7   : > { %1471 = vmatpush.bf16.msrb.mxu0 %v2415_v13  ;;  %1242 = vmatpush.bf16.msra.mxu1 %v2393_v36 }
 0x1ab   : > { %1243 = vmatpush.bf16.msra.mxu1 %v2392_v37  ;;  %v2164_v37 = vld [vmem:[#allocation5 + $0x90] sm:$0xf] }
 0x1af   : > { %1244 = vmatpush.bf16.msra.mxu1 %v2391_v39 }
 0x1b3   : > { %1549 = vmatpush.bf16.msrb.mxu1 %v2430_v40  ;;  %v2156_v40 = vld [vmem:[#allocation5 + $0x80] sm:$0xf] }
 0x1b7   : > { %1550 = vmatpush.bf16.msrb.mxu1 %v2429_v43 }
 0x1bb   : > { %1551 = vmatpush.bf16.msrb.mxu1 %v2428_v47 }
 0x1bf   : > { %1552 = vmatpush.bf16.msrb.mxu1 %v2427_v50 }
 0x1c3   : > { %1553 = vmatpush.bf16.msrb.mxu1 %v2426_v53  ;;  %v2437_v53 = vld [vmem:[#allocation8 + $0x70] sm:$0xff] }
 0x1c7   : > { %1554 = vmatpush.bf16.msrb.mxu1 %v2425_v59  ;;  %v2436_v59 = vld [vmem:[#allocation8 + $0x68] sm:$0xff] }
 0x1cb   : > { %1555 = vmatpush.bf16.msrb.mxu1 %v2424_v55 }
 0x1cf   : > { %1556 = vmatpush.bf16.msrb.mxu1 %v2423_v56  ;;  %v2435_v56 = vld [vmem:[#allocation8 + $0x60] sm:$0xff] }
 0x1ff   : > { %v3130_v33 = vpop.f32.mrf.mxu0 }
 0x200   : > { %v751_v11 = vpop.f32.mrf.mxu3 }
 0x201   : > { %v752_v12 = vadd.f32 %v2566_v9, %v751_v11  ;;  %v2414_v11 = vld [vmem:[#allocation5 + $0xf4] sm:$0xf0] }
 0x202   : > { %v2213_v13 = vor.u32 %v2414_v11, %v2212_v10 }
 0x203   : > { %755 = vmax.xlane.f32.xlu1 %v752_v12 }
 0x204   : > { %1365 = vmatpush.bf16.msra.mxu2 %v2213_v13 }
 0x207   : > { %v846_v38 = vpop.f32.mrf.mxu0 }
 0x208   : > { %v753_v14 = vpop.f32.mrf.mxu3  ;;  %v2402_v38 = vld [vmem:[#allocation5 + $0x94] sm:$0xf0] }
 0x209   : > { %v2412_v14 = vld [vmem:[#allocation5 + $0xe4] sm:$0xf0]  ;;  %v2165_v39 = vor.u32 %v2402_v38, %v2164_v37 }
 0x20b   : > { %v969_v42 = vpop.f32.mrf.mxu1 }
 0x20c   : > { %v970_v44 = vadd.f32 %v969_v42, %v876_v41  ;;  %v2400_v41 = vld [vmem:[#allocation5 + $0x84] sm:$0xf0] }
 0x20d   : > { %v2157_v43 = vor.u32 %v2400_v41, %v2156_v40 }
 0x20e   : > { %v986_v45 = vmax.f32 %v970_v44, 0.0 }
 0x210   : > { %v1066_v17 = vpop.f32.mrf.mxu3  ;;  %v1185_v46 = vpack.c.bf16 %v986_v45, %v986_v45  ;;  %v2892_v45 = vmov 1  }
 0x211   : > { %v1067_v18 = vadd.f32 %v2567_v16, %v1066_v17  ;;  %v2410_v16 = vld [vmem:[#allocation5 + $0xd4] sm:$0xf0]  ;;  %v2572_v17 = vld [vmem:[%s3207_s8 + $0x1] ss:$0 sm:$0xff]  ;;  %2561 = vset.pattern.permute.xlu1 %v2892_v45 }
 0x212   : > { %1245 = vmatmul.bf16.vlgmr.msra.gmra.mxu1 %v1185_v46 }
 0x213   : > { %v1070_v19 = vmax.f32 %v1067_v18, 0.0  ;;  %v971_v48 = vpop.f32.mrf.mxu1  ;;  %v2197_v18 = vor.u32 %v2410_v16, %v2196_v15 }
 0x215   : > { %v1071_v20 = vpack.c.bf16 %v1070_v19, %v1070_v19  ;;  %v2188_v19 = vld [vmem:[#allocation5 + $0xc0] sm:$0xf] }
 0x217   : > { %1148 = vmatmul.bf16.vlgmr.msra.gmra.mxu0 %v1071_v20  ;;  %v2408_v20 = vld [vmem:[#allocation5 + $0xc4] sm:$0xf0] }
 0x218   : > { %v1068_v21 = vpop.f32.mrf.mxu3 }
 0x220   : > { %v1387_v24 = vpop.f32.mrf.mxu3 }
 0x221   : > { %v1388_v25 = vadd.f32 %v1387_v24, %v1282_v23  ;;  %v2189_v24 = vor.u32 %v2408_v20, %v2188_v19 }
 0x223   : > { %v1392_v26 = vmax.f32 %v1388_v25, 0.0  ;;  %v2180_v25 = vld [vmem:[#allocation5 + $0xb0] sm:$0xf] }
 0x225   : > { %v1412_v27 = vpack.c.bf16 %v1392_v26, %v1392_v26  ;;  %v2406_v26 = vld [vmem:[#allocation5 + $0xb4] sm:$0xf0] }
 0x227   : > { %1472 = vmatmul.bf16.vlgmr.msrb.gmra.mxu0 %v1412_v27  ;;  %v2181_v27 = vor.u32 %v2406_v26, %v2180_v25 }
 0x228   : > { %v1389_v28 = vpop.f32.mrf.mxu3 }
 0x229   : > { %v2172_v28 = vld [vmem:[#allocation5 + $0xa0] sm:$0xf] }
 0x22a   : > { %v2173_v36 = vor.u32 %v2404_v29, %v2172_v28 }
 0x276   : > { %v756_v49 = vpop.xlane.xlu1 %755 }
 0x277   : > { %v757_v51 = vsub.f32 %v752_v12, %v756_v49  ;;  %v2204_v12 = vld [vmem:[#allocation5 + $0xe0] sm:$0xf] }
 0x278   : > { %v2205_v32 = vor.u32 %v2412_v14, %v2204_v12 }
 0x279   : > { %v758_v52 = vmul.f32 1.442695, %v757_v51 }
 0x27a   : > { %1366 = vmatpush.bf16.msra.mxu2 %v2205_v32 }
 0x27b   : > { %2574 = vpow2.f32 %v758_v52  ;;  %v2438_v52 = vld [vmem:[#allocation8 + $0x78] sm:$0xff] }
 0x27e   : > { %1367 = vmatpush.bf16.msra.mxu2 %v2197_v18 }
 0x281   : > { %v3133_v54 = vpop.eup %2574 }
 0x282   : > { %760 = vadd.xlane.f32.xlu2 %v3133_v54  ;;  %1368 = vmatpush.bf16.msra.mxu2 %v2189_v24 }
 0x286   : > { %1369 = vmatpush.bf16.msra.mxu2 %v2181_v27 }
 0x28a   : > { %1370 = vmatpush.bf16.msra.mxu2 %v2173_v36 }
 0x28e   : > { %1371 = vmatpush.bf16.msra.mxu2 %v2165_v39 }
 0x28f   : > { %v3139_v3 = vpop.f32.mrf.mxu1 }
 0x292   : > { %1372 = vmatpush.bf16.msra.mxu2 %v2157_v43 }
 0x294   : > { %v1149_v58 = vpop.f32.mrf.mxu0 }
 0x295   : > { %v1150_v34 = vadd.f32 %v2569_v57, %v1149_v58  ;;  %1373 = vmatmul.bf16.vlgmr.msra.gmra.mxu2 %v3119_v35  ;;  %v2568_v35 = vld [vmem:[%s3203_s4 + $0x2] ss:$0 sm:$0xff]  ;;  %v2434_v58 = vld [vmem:[#allocation8 + $0x58] sm:$0xff] }
 0x296   : > { %1648 = vmatpush.bf16.msrb.mxu2 %v2438_v52  ;;  %v845_v55 = vadd.f32 %v2568_v35, %v3130_v33 }
 0x297   : > { %1153 = vmax.xlane.f32.xlu0 %v1150_v34  ;;  %v1248_v4 = vpop.f32.mrf.mxu1 }
 0x298   : > { %v848_v57 = vmax.f32 %v845_v55, 0.0  ;;  %v2431_v4 = vld [vmem:[#allocation8 + $0x40] sm:$0xff] }
 0x29a   : > { %1649 = vmatpush.bf16.msrb.mxu2 %v2437_v53 }
 0x29c   : > { %v1151_v60 = vpop.f32.mrf.mxu0 }
 0x29e   : > { %1650 = vmatpush.bf16.msrb.mxu2 %v2436_v59 }
 0x2a2   : > { %1651 = vmatpush.bf16.msrb.mxu2 %v2435_v56 }
 0x2a4   : > { %v1473_v63 = vpop.f32.mrf.mxu0 }
 0x2a5   : > { %v1474_v62 = vadd.f32 %v2570_v61, %v1473_v63  ;;  %v2433_v61 = vld [vmem:[#allocation8 + $0x50] sm:$0xff]  ;;  %v2432_v63 = vld [vmem:[#allocation8 + $0x48] sm:$0xff] }
 0x2a6   : > { %1652 = vmatpush.bf16.msrb.mxu2 %v2434_v58 }
 0x2a7   : > { %v1477_v0 = vmax.f32 %v1474_v62, 0.0 }
 0x2a9   : > { %v1478_v1 = vpack.c.bf16 %v1477_v0, %v1477_v0  ;;  %v1281_v0 = vperm.slane %v3127_v22, 0 }
 0x2aa   : > { %1653 = vmatpush.bf16.msrb.mxu2 %v2433_v61 }
 0x2ab   : > { %1557 = vmatmul.bf16.vlgmr.msrb.gmra.mxu1 %v1478_v1 }
 0x2ac   : > { %v1475_v2 = vpop.f32.mrf.mxu0 }
 0x2ae   : > { %1654 = vmatpush.bf16.msrb.mxu2 %v2432_v63 }
 0x2b2   : > { %1655 = vmatpush.bf16.msrb.mxu2 %v2431_v4 }
 0x2f5   : > { %v761_v31 = vpop.xlane.xlu2 %760 }
 0x30a   : > { %v1154_v5 = vpop.xlane.xlu0 %1153 }
 0x30b   : > { %v1155_v6 = vsub.f32 %v1150_v34, %v1154_v5 }
 0x30d   : > { %v1156_v7 = vmul.f32 1.442695, %v1155_v6  ;;  %v2571_v6 = vld [vmem:[%s3203_s4] ss:$0 sm:$0xff] }
 0x30f   : > { %2576 = vpow2.f32 %v1156_v7 }
 0x310   : > { %2578 = vrcp.f32 %v761_v31 }
 0x315   : > { %v2577_v9 = vpop.eup %2576 }
 0x316   : > { %1158 = vadd.xlane.f32.xlu1 %v2577_v9  ;;  %v2579_v42 = vpop.eup %2578 }
 0x317   : > { %v763_v44 = vmul.f32 %v2579_v42, %v3133_v54 }
 0x318   : > { %v1374_v62 = vpop.f32.mrf.mxu2 }
 0x319   : > { %v1375_v1 = vadd.f32 %v1374_v62, %v1281_v0 }
 0x31b   : > { %v1391_v2 = vmax.f32 %v1375_v1, 0.0 }
 0x31d   : > { %v1596_v5 = vpack.c.bf16 %v1391_v2, %v1391_v2 }
 0x31f   : > { %1656 = vmatmul.bf16.vlgmr.msrb.gmra.mxu2 %v1596_v5 }
 0x320   : > { %v1376_v33 = vpop.f32.mrf.mxu2 }
 0x328   : > { %v1558_v21 = vpop.f32.mrf.mxu1 }
 0x329   : > { %v1559_v23 = vadd.f32 %v2572_v17, %v1558_v21 }
 0x32b   : > { %1562 = vmax.xlane.f32.xlu0 %v1559_v23 }
 0x330   : > { %v1560_v30 = vpop.f32.mrf.mxu1 }
 0x33f   : > { %851 = vperm.xlu0 %2560, %v763_v44  }
 0x389   : > { %v1159_v46 = vpop.xlane.xlu1 %1158 }
 0x38a   : > { %2580 = vrcp.f32 %v1159_v46 }
 0x390   : > { %v2581_v47 = vpop.eup %2580 }
 0x391   : > { %v1161_v48 = vmul.f32 %v2581_v47, %v2577_v9 }
 0x393   : > { %1164 = vperm.xlu1 %2561, %v1161_v48  }
 0x39b   : > { %2564 = vset.pattern.permute.xlu1 %v2891_v8  ;;  %v1247_v8 = vadd.f32 %v2571_v6, %v3139_v3  ;;  %v2573_v3 = vld [vmem:[%s3203_s4 + $0x1] ss:$0 sm:$0xff] }
 0x39d   : > { %v1250_v11 = vmax.f32 %v1247_v8, 0.0 }
 0x39e   : > { %v1563_v49 = vpop.xlane.xlu0 %1562 }
 0x39f   : > { %v1564_v50 = vsub.f32 %v1559_v23, %v1563_v49 }
 0x3a1   : > { %v1565_v51 = vmul.f32 1.442695, %v1564_v50 }
 0x3a2   : > { %v1657_v15 = vpop.f32.mrf.mxu2 }
 0x3a3   : > { %2582 = vpow2.f32 %v1565_v51  ;;  %v1658_v17 = vadd.f32 %v2573_v3, %v1657_v15 }
 0x3a5   : > { %v1661_v18 = vmax.f32 %v1658_v17, 0.0 }
 0x3a9   : > { %v2583_v54 = vpop.eup %2582 }
 0x3aa   : > { %1567 = vadd.xlane.f32.xlu2 %v2583_v54  ;;  %v1659_v16 = vpop.f32.mrf.mxu2 }
 0x3b1   : > { %v852_v34 = vpop.permute.xlu0 %851 }
 0x3b2   : > { %v854_v60 = vmul.f32 %v852_v34, %v848_v57 }
 0x3b4   : > { %855 = vst [vmem:[%s3152_s15 + $0x10] sm:$0xff] %v854_v60 }
 0x3c2   : > { %1252 = vperm.xlu2 %2562, %v1161_v48  }
 0x3ca   : > { %2563 = vset.pattern.permute.xlu2 %v2892_v45 }
 0x405   : > { %v1165_v9 = vpop.permute.xlu1 %1164 }
 0x406   : > { %v1167_v13 = vmul.f32 %v1165_v9, %v848_v57 }
 0x41d   : > { %v1568_v7 = vpop.xlane.xlu2 %1567 }
 0x41e   : > { %2584 = vrcp.f32 %v1568_v7 }
 0x424   : > { %v2585_v10 = vpop.eup %2584 }
 0x425   : > { %v1253_v22 = vpop.permute.xlu2 %1252  ;;  %v1570_v12 = vmul.f32 %v2585_v10, %v2583_v54 }
 0x426   : > { %v1255_v14 = vmul.f32 %v1253_v22, %v1250_v11 }
 0x427   : > { %1663 = vperm.xlu1 %2564, %v1570_v12   ;;  %1573 = vperm.xlu2 %2563, %v1570_v12  }
 0x428   : > { %v1256_v32 = vadd.f32 %v1255_v14, %v1167_v13 }
 0x42a   : > { %1257 = vst [vmem:[%s3152_s15] sm:$0xff] %v1256_v32 }
 0x481   : > { %v1574_v19 = vpop.permute.xlu2 %1573 }
 0x482   : > { %v1576_v21 = vmul.f32 %v1574_v19, %v848_v57 }
 0x499   : > { %v1664_v20 = vpop.permute.xlu1 %1663 }
 0x49a   : > { %v1666_v23 = vmul.f32 %v1664_v20, %v1661_v18 }
 0x49c   : > { %v1667_v24 = vadd.f32 %v1666_v23, %v1576_v21 }
 0x49e   : > { %1668 = vst [vmem:[%s3152_s15 + $0x8] sm:$0xff] %v1667_v24 }
 0x49f   : > { %2823 = shalt.err (!%p2820_p9)
}
 0x4a0   : > { %2468 = dma.vmem_to_hbm [thread:$0]  (%p3048_p4), %s1684_s27, 384, %s1686_s23, %s1670_s19  }
 0x4a1 PF: > { %s1697_s5 = sand.u32 1, %s2862_s30   ;;  %p3229_p10 = scmp.ge.s32.totalorder %s2874_s12, 2 }
 0x4a2   : > { %s1698_s15 = scalar_lea.sflag [#allocation4], %s1697_s5 }
 0x4a3   : > { %p2494_p11 = pnand %p3229_p10, %p3052_p6 }
 0x4a5   : > { %p2495_p13 = pneg %p2494_p11 }
 0x4a7   : > { %2857 = dma.done.wait (%p2495_p13), %s1698_s15, 384  }
 0x4a8   : > { %2859 = vsyncadd (%p2495_p13), %s1698_s15, 4294966912  ;;  %p25_p0 = scmp.ge.s32.totalorder %s3026_s14, 4   ;;  %s3230_s30 = smov %s2866_s10 }
 0x4a9   : > { %s3231_s10 = smov %s2870_s11  ;;  %s3232_s11 = smov %s3037_s24 }
 0x4aa   : > { %s3233_s12 = smov %s3026_s14  ;;  %27 = sbr.rel (!%p25_p0) target bundleno = 14 (0xe), region = 143 }
 0x4af   :  { %1704 = vsyncpa [#allocation3], 1 }
 0x4b0   :  { %1706 = vsyncpa [#allocation3 + $0x1], 1 }
 0x4b1   :  { %1707 = vsyncpa [#allocation6], 1 }
 0x4b2   :  { %1708 = vsyncpa [#allocation9], 1 }
 0x4b3   :  { %1709 = vsyncpa [#allocation12], 1 }
 0x4b4   :  { %1710 = vsyncpa [#allocation4], 1 }
 0x4b5   :  { %1712 = vsyncpa [#allocation4 + $0x1], 1 }

</bundles_post_ra>
